<compile_context>
chip_gen: v5e
topology: v5e:2x2
jax: 0.10.0
libtpu: 0.0.40
codegen_flags: <defaults>
</compile_context>

<pallas_src>
import math

import jax
import jax.numpy as jnp
from jax.experimental import pallas as pl
from jax.experimental.pallas import tpu as pltpu

# ----------------------------- small config ---------------------------------
IMG = 16          # img_size
PS = 4            # patch_size
C = 3             # in_channels
D = 32            # embed_dim
DEPTH = 2         # depth
NH = 4            # n_heads
HD = D // NH      # head_dim = 8
MLP_H = int(D * 4.0)       # 128
VOCAB = 64        # vocab_size
VPAD = 128        # vocab padded to a full lane tile (lane-dense output store)
NP = (IMG // PS) ** 2      # n_patches = 16
S = NP + 1                 # true sequence length with cls token = 17
S_PAD = 24                 # padded to a multiple of 8 sublanes
PD = C * PS * PS           # patch dim = 48
EPS = 1e-6
INIT_STD = 0.02
NEG_INF = -1e30


# ----------------------------- kernel helpers --------------------------------
def _layernorm(x, w, b):
    mu = jnp.mean(x, axis=-1, keepdims=True)
    var = jnp.mean(jnp.square(x - mu), axis=-1, keepdims=True)
    return (x - mu) * jax.lax.rsqrt(var + EPS) * w + b


def _gelu(x):
    # tanh-form GELU: the transcendental goes through the EUP slot instead of a
    # long VPU erf polynomial.  ~1e-3 abs deviation vs torch's exact erf GELU.
    c = 0.7978845608028654   # sqrt(2/pi)
    return 0.5 * x * (1.0 + jnp.tanh(c * (x + 0.044715 * x * x * x)))


# ----------------------------- fused Pallas kernel ---------------------------
def _vit_fused_kernel(patches_ref, addterm_ref, pw_ref,
                      ln1w_ref, ln1b_ref, wqkv_ref, bqkv_ref, wo_ref, bo_ref,
                      ln2w_ref, ln2b_ref, w1_ref, b1_ref, w2_ref, b2_ref,
                      nw_ref, nb_ref, hw1_ref, hb1_ref, hw2_ref, hb2_ref,
                      out_ref, x_sc, ctx_sc):
    """Whole ViT forward for the full batch in one kernel invocation."""
    B = patches_ref.shape[0] // S_PAD

    # ---- patch embedding + [cls] + pos-embed, written straight into the
    #      aligned (B*S_PAD, D) scratch.  patches has zeros at the cls slot and
    #      pad rows; addterm carries cls+pos[0] / pos[1:]+patch_bias / 0.
    x_sc[...] = (jnp.dot(patches_ref[...], pw_ref[...],
                         preferred_element_type=jnp.float32) + addterm_ref[...])
    # pos_drop has p=0.0 -> identity.

    # additive key mask: 0 for the S real tokens, -1e30 for pad key columns
    col = jax.lax.broadcasted_iota(jnp.int32, (1, S_PAD), 1)
    key_mask = jnp.where(col < S, 0.0, NEG_INF).astype(jnp.float32)   # (1, S_PAD)

    for l in range(DEPTH):
        x = x_sc[...]                                                 # (B*S_PAD, D)

        # ---- attention branch: one fused QKV matmul (scale folded in w_q) ----
        xn = _layernorm(x, ln1w_ref[l], ln1b_ref[l])
        qkv = (jnp.dot(xn, wqkv_ref[l], preferred_element_type=jnp.float32)
               + bqkv_ref[l])                                          # (B*S_PAD, 3D)

        for b in range(B):                       # unrolled, B=2
            r0 = b * S_PAD
            for h in range(NH):                  # unrolled, NH=4
                c0 = h * HD
                qh = qkv[r0:r0 + S_PAD, c0:c0 + HD]
                kh = qkv[r0:r0 + S_PAD, D + c0:D + c0 + HD]
                vh = qkv[r0:r0 + S_PAD, 2 * D + c0:2 * D + c0 + HD]
                s = jax.lax.dot_general(qh, kh, (((1,), (1,)), ((), ())),
                                        preferred_element_type=jnp.float32)
                s = s + key_mask                                       # mask pad keys
                m = jnp.max(s, axis=-1, keepdims=True)
                e = jnp.exp(s - m)
                denom = jnp.sum(e, axis=-1, keepdims=True)             # (S_PAD, 1)
                oh = jnp.dot(e, vh, preferred_element_type=jnp.float32)
                # deferred softmax normalization on the small (S_PAD, HD) output
                oh = oh * pl.reciprocal(denom, approx=False)
                ctx_sc[r0:r0 + S_PAD, c0:c0 + HD] = oh                 # aligned store

        x = x + (jnp.dot(ctx_sc[...], wo_ref[l],
                         preferred_element_type=jnp.float32) + bo_ref[l])

        # ---- MLP branch ----
        xn2 = _layernorm(x, ln2w_ref[l], ln2b_ref[l])
        h1 = _gelu(jnp.dot(xn2, w1_ref[l],
                           preferred_element_type=jnp.float32) + b1_ref[l])
        x_sc[...] = x + (jnp.dot(h1, w2_ref[l],
                                 preferred_element_type=jnp.float32) + b2_ref[l])

    # ---- final LayerNorm on the cls rows (LayerNorm is per-token) + head ----
    cls = jnp.concatenate(
        [x_sc[b * S_PAD:b * S_PAD + 1, :] for b in range(B)], axis=0)   # (B, D)
    cls = _layernorm(cls, nw_ref[...], nb_ref[...])
    hh = (jnp.dot(cls, hw1_ref[...],
                  preferred_element_type=jnp.float32) + hb1_ref[...])   # (B, 4D)
    out_ref[...] = (jnp.dot(hh, hw2_ref[...],
                            preferred_element_type=jnp.float32)
                    + hb2_ref[...])                                     # (B, VPAD)


# ----------------------------- wrapper ---------------------------------------
@jax.jit
def vit_forward(x, params):
    B = x.shape[0]

    # NCHW -> (B, NP, PD) patch matrix.  Pure layout plumbing; the embedding
    # matmul itself runs inside the fused kernel.
    p = x.reshape(B, C, IMG // PS, PS, IMG // PS, PS)
    p = p.transpose(0, 2, 4, 1, 3, 5).reshape(B, NP, PD)

    # Place patch rows at token slots 1..NP of a 24-row block; the cls slot
    # (row 0) and the 7 pad rows stay zero so a single dense matmul + add inside
    # the kernel assembles the whole sublane-aligned (B*S_PAD, D) activation.
    patches = jnp.zeros((B, S_PAD, PD), jnp.float32).at[:, 1:1 + NP, :].set(p)
    patches = patches.reshape(B * S_PAD, PD)

    clspos = params["cls_token"][0] + params["pos_embed"][:, 0, :]       # (1, D)
    pospatch = params["pos_embed"][0, 1:, :] + params["patch_b"]         # (NP, D)
    add1 = jnp.zeros((S_PAD, D), jnp.float32)
    add1 = add1.at[0:1, :].set(clspos).at[1:1 + NP, :].set(pospatch)
    addterm = jnp.broadcast_to(add1[None], (B, S_PAD, D)).reshape(B * S_PAD, D)

    blk = params["blocks"]
    args = (patches, addterm, params["patch_w"],
            blk["ln1_w"], blk["ln1_b"], blk["w_qkv"], blk["b_qkv"],
            blk["w_proj"], blk["b_proj"], blk["ln2_w"], blk["ln2_b"],
            blk["w_fc1"], blk["b_fc1"], blk["w_fc2"], blk["b_fc2"],
            params["norm_w"], params["norm_b"],
            params["head_w1"], params["head_b1"],
            params["head_w2"], params["head_b2"])

    logits_pad = pl.pallas_call(
        _vit_fused_kernel,
        out_shape=jax.ShapeDtypeStruct((B, VPAD), jnp.float32),
        in_specs=[pl.BlockSpec(memory_space=pltpu.MemorySpace.VMEM)] * len(args),
        out_specs=pl.BlockSpec(memory_space=pltpu.MemorySpace.VMEM),
        scratch_shapes=[pltpu.VMEM((B * S_PAD, D), jnp.float32),   # residual stream
                        pltpu.VMEM((B * S_PAD, D), jnp.float32)],  # attn context
    )(*args)

    # TODO(synk): MaskingGenerator / mask-token mixing is dead code (`if False`)
    # in the reference; batch_of_masks is always None here.
    return logits_pad[:, :VOCAB], None


# ----------------------------- deterministic init ----------------------------
def _trunc_normal(key, shape, std=INIT_STD):
    return std * jax.random.truncated_normal(key, -2.0, 2.0, shape, jnp.float32)


def init_params(key):
    ks = iter(jax.random.split(key, 32))
    params = {}
    scale = HD ** -0.5

    conv_w = _trunc_normal(next(ks), (D, C, PS, PS))
    params["patch_w"] = conv_w.reshape(D, PD).T                          # (PD, D)
    params["patch_b"] = jnp.zeros((1, D), jnp.float32)
    params["cls_token"] = _trunc_normal(next(ks), (1, 1, D))
    params["pos_embed"] = _trunc_normal(next(ks), (1, S, D))

    names = ["ln1_w", "ln1_b", "w_qkv", "b_qkv", "w_proj", "b_proj",
             "ln2_w", "ln2_b", "w_fc1", "b_fc1", "w_fc2", "b_fc2"]
    per_layer = {n: [] for n in names}
    for layer_id in range(DEPTH):
        rescale = 1.0 / math.sqrt(2.0 * (layer_id + 1))
        w_qkv_t = _trunc_normal(next(ks), (3 * D, D))        # torch (out, in)
        wq = w_qkv_t[0:D].T * scale                          # attn scale folded in
        wk = w_qkv_t[D:2 * D].T
        wv = w_qkv_t[2 * D:3 * D].T
        per_layer["w_qkv"].append(jnp.concatenate([wq, wk, wv], axis=1))  # (D, 3D)
        per_layer["b_qkv"].append(jnp.zeros((1, 3 * D), jnp.float32))
        per_layer["w_proj"].append((_trunc_normal(next(ks), (D, D)) * rescale).T)
        per_layer["b_proj"].append(jnp.zeros((1, D), jnp.float32))
        per_layer["ln1_w"].append(jnp.ones((1, D), jnp.float32))
        per_layer["ln1_b"].append(jnp.zeros((1, D), jnp.float32))
        per_layer["ln2_w"].append(jnp.ones((1, D), jnp.float32))
        per_layer["ln2_b"].append(jnp.zeros((1, D), jnp.float32))
        per_layer["w_fc1"].append(_trunc_normal(next(ks), (MLP_H, D)).T)
        per_layer["b_fc1"].append(jnp.zeros((1, MLP_H), jnp.float32))
        per_layer["w_fc2"].append((_trunc_normal(next(ks), (D, MLP_H)) * rescale).T)
        per_layer["b_fc2"].append(jnp.zeros((1, D), jnp.float32))
    params["blocks"] = {n: jnp.stack(v, axis=0) for n, v in per_layer.items()}

    params["norm_w"] = jnp.ones((1, D), jnp.float32)
    params["norm_b"] = jnp.zeros((1, D), jnp.float32)
    params["head_w1"] = _trunc_normal(next(ks), (4 * D, D)).T            # (D, 4D)
    params["head_b1"] = jnp.zeros((1, 4 * D), jnp.float32)
    hw2 = _trunc_normal(next(ks), (VOCAB, 4 * D)).T                      # (4D, V)
    params["head_w2"] = jnp.pad(hw2, ((0, 0), (0, VPAD - VOCAB)))        # (4D, 128)
    params["head_b2"] = jnp.zeros((1, VPAD), jnp.float32)
    return params


# ------------------------------------ main -----------------------------------
if __name__ == "__main__":
    key = jax.random.PRNGKey(0)
    k_x, k_p = jax.random.split(key)
    x = jax.random.normal(k_x, (2, C, IMG, IMG), jnp.float32)            # NCHW
    params = init_params(k_p)

    logits, batch_of_masks = vit_forward(x, params)
    logits = jax.block_until_ready(logits)

    assert logits.shape == (2, VOCAB)
    assert bool(jnp.all(jnp.isfinite(logits)))
    print("KERNEL_OK")
</pallas_src>

<mosaic_0001>
module attributes {stable_mosaic.version = 11 : i64} {
  func.func @_vit_fused_kernel(%arg0: memref<48x48xf32, #tpu.memory_space<vmem>>, %arg1: memref<48x32xf32, #tpu.memory_space<vmem>>, %arg2: memref<48x32xf32, #tpu.memory_space<vmem>>, %arg3: memref<2x1x32xf32, #tpu.memory_space<vmem>>, %arg4: memref<2x1x32xf32, #tpu.memory_space<vmem>>, %arg5: memref<2x32x96xf32, #tpu.memory_space<vmem>>, %arg6: memref<2x1x96xf32, #tpu.memory_space<vmem>>, %arg7: memref<2x32x32xf32, #tpu.memory_space<vmem>>, %arg8: memref<2x1x32xf32, #tpu.memory_space<vmem>>, %arg9: memref<2x1x32xf32, #tpu.memory_space<vmem>>, %arg10: memref<2x1x32xf32, #tpu.memory_space<vmem>>, %arg11: memref<2x32x128xf32, #tpu.memory_space<vmem>>, %arg12: memref<2x1x128xf32, #tpu.memory_space<vmem>>, %arg13: memref<2x128x32xf32, #tpu.memory_space<vmem>>, %arg14: memref<2x1x32xf32, #tpu.memory_space<vmem>>, %arg15: memref<1x32xf32, #tpu.memory_space<vmem>>, %arg16: memref<1x32xf32, #tpu.memory_space<vmem>>, %arg17: memref<32x128xf32, #tpu.memory_space<vmem>>, %arg18: memref<1x128xf32, #tpu.memory_space<vmem>>, %arg19: memref<128x128xf32, #tpu.memory_space<vmem>>, %arg20: memref<1x128xf32, #tpu.memory_space<vmem>>, %arg21: memref<2x128xf32, #tpu.memory_space<vmem>>, %arg22: memref<48x32xf32, #tpu.memory_space<vmem>>, %arg23: memref<48x32xf32, #tpu.memory_space<vmem>>) attributes {dimension_semantics = [], scalar_prefetch = 0 : i64, scratch_operands = 2 : i64, tpu.core_type = #tpu.core_type<tc>} {
    %c0 = arith.constant 0 : index
    %c0_0 = arith.constant 0 : index
    %0 = vector.load %arg0[%c0, %c0_0] : memref<48x48xf32, #tpu.memory_space<vmem>>, vector<48x48xf32>
    %c0_1 = arith.constant 0 : index
    %c0_2 = arith.constant 0 : index
    %1 = vector.load %arg2[%c0_1, %c0_2] : memref<48x32xf32, #tpu.memory_space<vmem>>, vector<48x32xf32>
    %cst = arith.constant dense<0.000000e+00> : vector<48x32xf32>
    %2 = tpu.matmul %0, %1, %cst {dimension_numbers = #tpu.dot_dimension_numbers<[1], [0], [0], [1], [0, 0, 1, 1], [], []>} : vector<48x48xf32>, vector<48x32xf32>, vector<48x32xf32> -> vector<48x32xf32>
    %c0_3 = arith.constant 0 : index
    %c0_4 = arith.constant 0 : index
    %3 = vector.load %arg1[%c0_3, %c0_4] : memref<48x32xf32, #tpu.memory_space<vmem>>, vector<48x32xf32>
    %4 = arith.addf %2, %3 : vector<48x32xf32>
    %c0_5 = arith.constant 0 : index
    %c0_6 = arith.constant 0 : index
    %5 = vector.load %arg22[%c0_5, %c0_6] : memref<48x32xf32, #tpu.memory_space<vmem>>, vector<48x32xf32>
    tpu.vector_store %arg22[%c0_5, %c0_6], %4 {strides = array<i32>} : memref<48x32xf32, #tpu.memory_space<vmem>>, vector<48x32xf32>,
    %6 = tpu.iota {dimensions = array<i32: 1>} : vector<1x24xi32>
    %c17_i32 = arith.constant 17 : i32
    %7 = vector.broadcast %c17_i32 : i32 to vector<1x24xi32>
    %8 = arith.cmpi slt, %6, %7 : vector<1x24xi32>
    %cst_7 = arith.constant 0.000000e+00 : f32
    %cst_8 = arith.constant -1.000000e+30 : f32
    %9 = vector.broadcast %cst_7 : f32 to vector<1x24xf32>
    %10 = vector.broadcast %cst_8 : f32 to vector<1x24xf32>
    %11 = arith.select %8, %9, %10 : vector<1x24xi1>, vector<1x24xf32>
    %c0_9 = arith.constant 0 : index
    %c0_10 = arith.constant 0 : index
    %12 = vector.load %arg22[%c0_9, %c0_10] : memref<48x32xf32, #tpu.memory_space<vmem>>, vector<48x32xf32>
    %c0_11 = arith.constant 0 : index
    %c0_12 = arith.constant 0 : index
    %c0_13 = arith.constant 0 : index
    %13 = vector.load %arg3[%c0_11, %c0_12, %c0_13] : memref<2x1x32xf32, #tpu.memory_space<vmem>>, vector<1x1x32xf32>
    %14 = vector.shape_cast %13 : vector<1x1x32xf32> to vector<1x32xf32>
    %c0_14 = arith.constant 0 : index
    %c0_15 = arith.constant 0 : index
    %c0_16 = arith.constant 0 : index
    %15 = vector.load %arg4[%c0_14, %c0_15, %c0_16] : memref<2x1x32xf32, #tpu.memory_space<vmem>>, vector<1x1x32xf32>
    %16 = vector.shape_cast %15 : vector<1x1x32xf32> to vector<1x32xf32>
    %cst_17 = arith.constant dense<0.000000e+00> : vector<48xf32>
    %17 = vector.multi_reduction <add>, %12, %cst_17 [1] : vector<48x32xf32> to vector<48xf32>
    %18 = vector.shape_cast %17 : vector<48xf32> to vector<48x1xf32>
    %cst_18 = arith.constant 3.200000e+01 : f32
    %19 = vector.broadcast %cst_18 : f32 to vector<48x1xf32>
    %20 = arith.divf %18, %19 : vector<48x1xf32>
    %21 = vector.broadcast %20 : vector<48x1xf32> to vector<48x32xf32>
    %22 = arith.subf %12, %21 : vector<48x32xf32>
    %23 = arith.mulf %22, %22 : vector<48x32xf32>
    %cst_19 = arith.constant dense<0.000000e+00> : vector<48xf32>
    %24 = vector.multi_reduction <add>, %23, %cst_19 [1] : vector<48x32xf32> to vector<48xf32>
    %25 = vector.shape_cast %24 : vector<48xf32> to vector<48x1xf32>
    %cst_20 = arith.constant 3.200000e+01 : f32
    %26 = vector.broadcast %cst_20 : f32 to vector<48x1xf32>
    %27 = arith.divf %25, %26 : vector<48x1xf32>
    %28 = vector.broadcast %20 : vector<48x1xf32> to vector<48x32xf32>
    %29 = arith.subf %12, %28 : vector<48x32xf32>
    %cst_21 = arith.constant 9.99999997E-7 : f32
    %30 = vector.broadcast %cst_21 : f32 to vector<48x1xf32>
    %31 = arith.addf %27, %30 : vector<48x1xf32>
    %32 = math.rsqrt %31 : vector<48x1xf32>
    %33 = vector.broadcast %32 : vector<48x1xf32> to vector<48x32xf32>
    %34 = arith.mulf %29, %33 : vector<48x32xf32>
    %35 = vector.broadcast %14 : vector<1x32xf32> to vector<48x32xf32>
    %36 = arith.mulf %34, %35 : vector<48x32xf32>
    %37 = vector.broadcast %16 : vector<1x32xf32> to vector<48x32xf32>
    %38 = arith.addf %36, %37 : vector<48x32xf32>
    %c0_22 = arith.constant 0 : index
    %c0_23 = arith.constant 0 : index
    %c0_24 = arith.constant 0 : index
    %39 = vector.load %arg5[%c0_22, %c0_23, %c0_24] : memref<2x32x96xf32, #tpu.memory_space<vmem>>, vector<1x32x96xf32>
    %40 = vector.shape_cast %39 : vector<1x32x96xf32> to vector<32x96xf32>
    %cst_25 = arith.constant dense<0.000000e+00> : vector<48x96xf32>
    %41 = tpu.matmul %38, %40, %cst_25 {dimension_numbers = #tpu.dot_dimension_numbers<[1], [0], [0], [1], [0, 0, 1, 1], [], []>} : vector<48x32xf32>, vector<32x96xf32>, vector<48x96xf32> -> vector<48x96xf32>
    %c0_26 = arith.constant 0 : index
    %c0_27 = arith.constant 0 : index
    %c0_28 = arith.constant 0 : index
    %42 = vector.load %arg6[%c0_26, %c0_27, %c0_28] : memref<2x1x96xf32, #tpu.memory_space<vmem>>, vector<1x1x96xf32>
    %43 = vector.shape_cast %42 : vector<1x1x96xf32> to vector<1x96xf32>
    %44 = vector.broadcast %43 : vector<1x96xf32> to vector<48x96xf32>
    %45 = arith.addf %41, %44 : vector<48x96xf32>
    %46 = vector.extract_strided_slice %45 {offsets = [0, 0], sizes = [24, 8], strides = [1, 1]} : vector<48x96xf32> to vector<24x8xf32>
    %47 = vector.extract_strided_slice %45 {offsets = [0, 32], sizes = [24, 8], strides = [1, 1]} : vector<48x96xf32> to vector<24x8xf32>
    %48 = vector.extract_strided_slice %45 {offsets = [0, 64], sizes = [24, 8], strides = [1, 1]} : vector<48x96xf32> to vector<24x8xf32>
    %cst_29 = arith.constant dense<0.000000e+00> : vector<24x24xf32>
    %49 = tpu.matmul %46, %47, %cst_29 {dimension_numbers = #tpu.dot_dimension_numbers<[1], [1], [0], [0], [0, 0, 1, 0], [], []>} : vector<24x8xf32>, vector<24x8xf32>, vector<24x24xf32> -> vector<24x24xf32>
    %50 = vector.broadcast %11 : vector<1x24xf32> to vector<24x24xf32>
    %51 = arith.addf %49, %50 : vector<24x24xf32>
    %cst_30 = arith.constant dense<0xFF800000> : vector<24xf32>
    %52 = vector.multi_reduction <maximumf>, %51, %cst_30 [1] : vector<24x24xf32> to vector<24xf32>
    %53 = vector.shape_cast %52 : vector<24xf32> to vector<24x1xf32>
    %54 = vector.broadcast %53 : vector<24x1xf32> to vector<24x24xf32>
    %55 = arith.subf %51, %54 : vector<24x24xf32>
    %56 = math.exp %55 : vector<24x24xf32>
    %cst_31 = arith.constant dense<0.000000e+00> : vector<24xf32>
    %57 = vector.multi_reduction <add>, %56, %cst_31 [1] : vector<24x24xf32> to vector<24xf32>
    %58 = vector.shape_cast %57 : vector<24xf32> to vector<24x1xf32>
    %cst_32 = arith.constant dense<0.000000e+00> : vector<24x8xf32>
    %59 = tpu.matmul %56, %48, %cst_32 {dimension_numbers = #tpu.dot_dimension_numbers<[1], [0], [0], [1], [0, 0, 1, 1], [], []>} : vector<24x24xf32>, vector<24x8xf32>, vector<24x8xf32> -> vector<24x8xf32>
    %60 = tpu.reciprocal %58 : vector<24x1xf32> -> vector<24x1xf32>
    %61 = vector.broadcast %60 : vector<24x1xf32> to vector<24x8xf32>
    %62 = arith.mulf %59, %61 : vector<24x8xf32>
    %c0_33 = arith.constant 0 : index
    %c0_34 = arith.constant 0 : index
    %63 = vector.load %arg23[%c0_33, %c0_34] : memref<48x32xf32, #tpu.memory_space<vmem>>, vector<24x8xf32>
    tpu.vector_store %arg23[%c0_33, %c0_34], %62 {strides = array<i32>} : memref<48x32xf32, #tpu.memory_space<vmem>>, vector<24x8xf32>,
    %64 = vector.extract_strided_slice %45 {offsets = [0, 8], sizes = [24, 8], strides = [1, 1]} : vector<48x96xf32> to vector<24x8xf32>
    %65 = vector.extract_strided_slice %45 {offsets = [0, 40], sizes = [24, 8], strides = [1, 1]} : vector<48x96xf32> to vector<24x8xf32>
    %66 = vector.extract_strided_slice %45 {offsets = [0, 72], sizes = [24, 8], strides = [1, 1]} : vector<48x96xf32> to vector<24x8xf32>
    %cst_35 = arith.constant dense<0.000000e+00> : vector<24x24xf32>
    %67 = tpu.matmul %64, %65, %cst_35 {dimension_numbers = #tpu.dot_dimension_numbers<[1], [1], [0], [0], [0, 0, 1, 0], [], []>} : vector<24x8xf32>, vector<24x8xf32>, vector<24x24xf32> -> vector<24x24xf32>
    %68 = vector.broadcast %11 : vector<1x24xf32> to vector<24x24xf32>
    %69 = arith.addf %67, %68 : vector<24x24xf32>
    %cst_36 = arith.constant dense<0xFF800000> : vector<24xf32>
    %70 = vector.multi_reduction <maximumf>, %69, %cst_36 [1] : vector<24x24xf32> to vector<24xf32>
    %71 = vector.shape_cast %70 : vector<24xf32> to vector<24x1xf32>
    %72 = vector.broadcast %71 : vector<24x1xf32> to vector<24x24xf32>
    %73 = arith.subf %69, %72 : vector<24x24xf32>
    %74 = math.exp %73 : vector<24x24xf32>
    %cst_37 = arith.constant dense<0.000000e+00> : vector<24xf32>
    %75 = vector.multi_reduction <add>, %74, %cst_37 [1] : vector<24x24xf32> to vector<24xf32>
    %76 = vector.shape_cast %75 : vector<24xf32> to vector<24x1xf32>
    %cst_38 = arith.constant dense<0.000000e+00> : vector<24x8xf32>
    %77 = tpu.matmul %74, %66, %cst_38 {dimension_numbers = #tpu.dot_dimension_numbers<[1], [0], [0], [1], [0, 0, 1, 1], [], []>} : vector<24x24xf32>, vector<24x8xf32>, vector<24x8xf32> -> vector<24x8xf32>
    %78 = tpu.reciprocal %76 : vector<24x1xf32> -> vector<24x1xf32>
    %79 = vector.broadcast %78 : vector<24x1xf32> to vector<24x8xf32>
    %80 = arith.mulf %77, %79 : vector<24x8xf32>
    %c0_39 = arith.constant 0 : index
    %c8 = arith.constant 8 : index
    %81 = vector.load %arg23[%c0_39, %c8] : memref<48x32xf32, #tpu.memory_space<vmem>>, vector<24x8xf32>
    tpu.vector_store %arg23[%c0_39, %c8], %80 {strides = array<i32>} : memref<48x32xf32, #tpu.memory_space<vmem>>, vector<24x8xf32>,
    %82 = vector.extract_strided_slice %45 {offsets = [0, 16], sizes = [24, 8], strides = [1, 1]} : vector<48x96xf32> to vector<24x8xf32>
    %83 = vector.extract_strided_slice %45 {offsets = [0, 48], sizes = [24, 8], strides = [1, 1]} : vector<48x96xf32> to vector<24x8xf32>
    %84 = vector.extract_strided_slice %45 {offsets = [0, 80], sizes = [24, 8], strides = [1, 1]} : vector<48x96xf32> to vector<24x8xf32>
    %cst_40 = arith.constant dense<0.000000e+00> : vector<24x24xf32>
    %85 = tpu.matmul %82, %83, %cst_40 {dimension_numbers = #tpu.dot_dimension_numbers<[1], [1], [0], [0], [0, 0, 1, 0], [], []>} : vector<24x8xf32>, vector<24x8xf32>, vector<24x24xf32> -> vector<24x24xf32>
    %86 = vector.broadcast %11 : vector<1x24xf32> to vector<24x24xf32>
    %87 = arith.addf %85, %86 : vector<24x24xf32>
    %cst_41 = arith.constant dense<0xFF800000> : vector<24xf32>
    %88 = vector.multi_reduction <maximumf>, %87, %cst_41 [1] : vector<24x24xf32> to vector<24xf32>
    %89 = vector.shape_cast %88 : vector<24xf32> to vector<24x1xf32>
    %90 = vector.broadcast %89 : vector<24x1xf32> to vector<24x24xf32>
    %91 = arith.subf %87, %90 : vector<24x24xf32>
    %92 = math.exp %91 : vector<24x24xf32>
    %cst_42 = arith.constant dense<0.000000e+00> : vector<24xf32>
    %93 = vector.multi_reduction <add>, %92, %cst_42 [1] : vector<24x24xf32> to vector<24xf32>
    %94 = vector.shape_cast %93 : vector<24xf32> to vector<24x1xf32>
    %cst_43 = arith.constant dense<0.000000e+00> : vector<24x8xf32>
    %95 = tpu.matmul %92, %84, %cst_43 {dimension_numbers = #tpu.dot_dimension_numbers<[1], [0], [0], [1], [0, 0, 1, 1], [], []>} : vector<24x24xf32>, vector<24x8xf32>, vector<24x8xf32> -> vector<24x8xf32>
    %96 = tpu.reciprocal %94 : vector<24x1xf32> -> vector<24x1xf32>
    %97 = vector.broadcast %96 : vector<24x1xf32> to vector<24x8xf32>
    %98 = arith.mulf %95, %97 : vector<24x8xf32>
    %c0_44 = arith.constant 0 : index
    %c16 = arith.constant 16 : index
    %99 = vector.load %arg23[%c0_44, %c16] : memref<48x32xf32, #tpu.memory_space<vmem>>, vector<24x8xf32>
    tpu.vector_store %arg23[%c0_44, %c16], %98 {strides = array<i32>} : memref<48x32xf32, #tpu.memory_space<vmem>>, vector<24x8xf32>,
    %100 = vector.extract_strided_slice %45 {offsets = [0, 24], sizes = [24, 8], strides = [1, 1]} : vector<48x96xf32> to vector<24x8xf32>
    %101 = vector.extract_strided_slice %45 {offsets = [0, 56], sizes = [24, 8], strides = [1, 1]} : vector<48x96xf32> to vector<24x8xf32>
    %102 = vector.extract_strided_slice %45 {offsets = [0, 88], sizes = [24, 8], strides = [1, 1]} : vector<48x96xf32> to vector<24x8xf32>
    %cst_45 = arith.constant dense<0.000000e+00> : vector<24x24xf32>
    %103 = tpu.matmul %100, %101, %cst_45 {dimension_numbers = #tpu.dot_dimension_numbers<[1], [1], [0], [0], [0, 0, 1, 0], [], []>} : vector<24x8xf32>, vector<24x8xf32>, vector<24x24xf32> -> vector<24x24xf32>
    %104 = vector.broadcast %11 : vector<1x24xf32> to vector<24x24xf32>
    %105 = arith.addf %103, %104 : vector<24x24xf32>
    %cst_46 = arith.constant dense<0xFF800000> : vector<24xf32>
    %106 = vector.multi_reduction <maximumf>, %105, %cst_46 [1] : vector<24x24xf32> to vector<24xf32>
    %107 = vector.shape_cast %106 : vector<24xf32> to vector<24x1xf32>
    %108 = vector.broadcast %107 : vector<24x1xf32> to vector<24x24xf32>
    %109 = arith.subf %105, %108 : vector<24x24xf32>
    %110 = math.exp %109 : vector<24x24xf32>
    %cst_47 = arith.constant dense<0.000000e+00> : vector<24xf32>
    %111 = vector.multi_reduction <add>, %110, %cst_47 [1] : vector<24x24xf32> to vector<24xf32>
    %112 = vector.shape_cast %111 : vector<24xf32> to vector<24x1xf32>
    %cst_48 = arith.constant dense<0.000000e+00> : vector<24x8xf32>
    %113 = tpu.matmul %110, %102, %cst_48 {dimension_numbers = #tpu.dot_dimension_numbers<[1], [0], [0], [1], [0, 0, 1, 1], [], []>} : vector<24x24xf32>, vector<24x8xf32>, vector<24x8xf32> -> vector<24x8xf32>
    %114 = tpu.reciprocal %112 : vector<24x1xf32> -> vector<24x1xf32>
    %115 = vector.broadcast %114 : vector<24x1xf32> to vector<24x8xf32>
    %116 = arith.mulf %113, %115 : vector<24x8xf32>
    %c0_49 = arith.constant 0 : index
    %c24 = arith.constant 24 : index
    %117 = vector.load %arg23[%c0_49, %c24] : memref<48x32xf32, #tpu.memory_space<vmem>>, vector<24x8xf32>
    tpu.vector_store %arg23[%c0_49, %c24], %116 {strides = array<i32>} : memref<48x32xf32, #tpu.memory_space<vmem>>, vector<24x8xf32>,
    %118 = vector.extract_strided_slice %45 {offsets = [24, 0], sizes = [24, 8], strides = [1, 1]} : vector<48x96xf32> to vector<24x8xf32>
    %119 = vector.extract_strided_slice %45 {offsets = [24, 32], sizes = [24, 8], strides = [1, 1]} : vector<48x96xf32> to vector<24x8xf32>
    %120 = vector.extract_strided_slice %45 {offsets = [24, 64], sizes = [24, 8], strides = [1, 1]} : vector<48x96xf32> to vector<24x8xf32>
    %cst_50 = arith.constant dense<0.000000e+00> : vector<24x24xf32>
    %121 = tpu.matmul %118, %119, %cst_50 {dimension_numbers = #tpu.dot_dimension_numbers<[1], [1], [0], [0], [0, 0, 1, 0], [], []>} : vector<24x8xf32>, vector<24x8xf32>, vector<24x24xf32> -> vector<24x24xf32>
    %122 = vector.broadcast %11 : vector<1x24xf32> to vector<24x24xf32>
    %123 = arith.addf %121, %122 : vector<24x24xf32>
    %cst_51 = arith.constant dense<0xFF800000> : vector<24xf32>
    %124 = vector.multi_reduction <maximumf>, %123, %cst_51 [1] : vector<24x24xf32> to vector<24xf32>
    %125 = vector.shape_cast %124 : vector<24xf32> to vector<24x1xf32>
    %126 = vector.broadcast %125 : vector<24x1xf32> to vector<24x24xf32>
    %127 = arith.subf %123, %126 : vector<24x24xf32>
    %128 = math.exp %127 : vector<24x24xf32>
    %cst_52 = arith.constant dense<0.000000e+00> : vector<24xf32>
    %129 = vector.multi_reduction <add>, %128, %cst_52 [1] : vector<24x24xf32> to vector<24xf32>
    %130 = vector.shape_cast %129 : vector<24xf32> to vector<24x1xf32>
    %cst_53 = arith.constant dense<0.000000e+00> : vector<24x8xf32>
    %131 = tpu.matmul %128, %120, %cst_53 {dimension_numbers = #tpu.dot_dimension_numbers<[1], [0], [0], [1], [0, 0, 1, 1], [], []>} : vector<24x24xf32>, vector<24x8xf32>, vector<24x8xf32> -> vector<24x8xf32>
    %132 = tpu.reciprocal %130 : vector<24x1xf32> -> vector<24x1xf32>
    %133 = vector.broadcast %132 : vector<24x1xf32> to vector<24x8xf32>
    %134 = arith.mulf %131, %133 : vector<24x8xf32>
    %c24_54 = arith.constant 24 : index
    %c0_55 = arith.constant 0 : index
    %135 = vector.load %arg23[%c24_54, %c0_55] : memref<48x32xf32, #tpu.memory_space<vmem>>, vector<24x8xf32>
    tpu.vector_store %arg23[%c24_54, %c0_55], %134 {strides = array<i32>} : memref<48x32xf32, #tpu.memory_space<vmem>>, vector<24x8xf32>,
    %136 = vector.extract_strided_slice %45 {offsets = [24, 8], sizes = [24, 8], strides = [1, 1]} : vector<48x96xf32> to vector<24x8xf32>
    %137 = vector.extract_strided_slice %45 {offsets = [24, 40], sizes = [24, 8], strides = [1, 1]} : vector<48x96xf32> to vector<24x8xf32>
    %138 = vector.extract_strided_slice %45 {offsets = [24, 72], sizes = [24, 8], strides = [1, 1]} : vector<48x96xf32> to vector<24x8xf32>
    %cst_56 = arith.constant dense<0.000000e+00> : vector<24x24xf32>
    %139 = tpu.matmul %136, %137, %cst_56 {dimension_numbers = #tpu.dot_dimension_numbers<[1], [1], [0], [0], [0, 0, 1, 0], [], []>} : vector<24x8xf32>, vector<24x8xf32>, vector<24x24xf32> -> vector<24x24xf32>
    %140 = vector.broadcast %11 : vector<1x24xf32> to vector<24x24xf32>
    %141 = arith.addf %139, %140 : vector<24x24xf32>
    %cst_57 = arith.constant dense<0xFF800000> : vector<24xf32>
    %142 = vector.multi_reduction <maximumf>, %141, %cst_57 [1] : vector<24x24xf32> to vector<24xf32>
    %143 = vector.shape_cast %142 : vector<24xf32> to vector<24x1xf32>
    %144 = vector.broadcast %143 : vector<24x1xf32> to vector<24x24xf32>
    %145 = arith.subf %141, %144 : vector<24x24xf32>
    %146 = math.exp %145 : vector<24x24xf32>
    %cst_58 = arith.constant dense<0.000000e+00> : vector<24xf32>
    %147 = vector.multi_reduction <add>, %146, %cst_58 [1] : vector<24x24xf32> to vector<24xf32>
    %148 = vector.shape_cast %147 : vector<24xf32> to vector<24x1xf32>
    %cst_59 = arith.constant dense<0.000000e+00> : vector<24x8xf32>
    %149 = tpu.matmul %146, %138, %cst_59 {dimension_numbers = #tpu.dot_dimension_numbers<[1], [0], [0], [1], [0, 0, 1, 1], [], []>} : vector<24x24xf32>, vector<24x8xf32>, vector<24x8xf32> -> vector<24x8xf32>
    %150 = tpu.reciprocal %148 : vector<24x1xf32> -> vector<24x1xf32>
    %151 = vector.broadcast %150 : vector<24x1xf32> to vector<24x8xf32>
    %152 = arith.mulf %149, %151 : vector<24x8xf32>
    %c24_60 = arith.constant 24 : index
    %c8_61 = arith.constant 8 : index
    %153 = vector.load %arg23[%c24_60, %c8_61] : memref<48x32xf32, #tpu.memory_space<vmem>>, vector<24x8xf32>
    tpu.vector_store %arg23[%c24_60, %c8_61], %152 {strides = array<i32>} : memref<48x32xf32, #tpu.memory_space<vmem>>, vector<24x8xf32>,
    %154 = vector.extract_strided_slice %45 {offsets = [24, 16], sizes = [24, 8], strides = [1, 1]} : vector<48x96xf32> to vector<24x8xf32>
    %155 = vector.extract_strided_slice %45 {offsets = [24, 48], sizes = [24, 8], strides = [1, 1]} : vector<48x96xf32> to vector<24x8xf32>
    %156 = vector.extract_strided_slice %45 {offsets = [24, 80], sizes = [24, 8], strides = [1, 1]} : vector<48x96xf32> to vector<24x8xf32>
    %cst_62 = arith.constant dense<0.000000e+00> : vector<24x24xf32>
    %157 = tpu.matmul %154, %155, %cst_62 {dimension_numbers = #tpu.dot_dimension_numbers<[1], [1], [0], [0], [0, 0, 1, 0], [], []>} : vector<24x8xf32>, vector<24x8xf32>, vector<24x24xf32> -> vector<24x24xf32>
    %158 = vector.broadcast %11 : vector<1x24xf32> to vector<24x24xf32>
    %159 = arith.addf %157, %158 : vector<24x24xf32>
    %cst_63 = arith.constant dense<0xFF800000> : vector<24xf32>
    %160 = vector.multi_reduction <maximumf>, %159, %cst_63 [1] : vector<24x24xf32> to vector<24xf32>
    %161 = vector.shape_cast %160 : vector<24xf32> to vector<24x1xf32>
    %162 = vector.broadcast %161 : vector<24x1xf32> to vector<24x24xf32>
    %163 = arith.subf %159, %162 : vector<24x24xf32>
    %164 = math.exp %163 : vector<24x24xf32>
    %cst_64 = arith.constant dense<0.000000e+00> : vector<24xf32>
    %165 = vector.multi_reduction <add>, %164, %cst_64 [1] : vector<24x24xf32> to vector<24xf32>
    %166 = vector.shape_cast %165 : vector<24xf32> to vector<24x1xf32>
    %cst_65 = arith.constant dense<0.000000e+00> : vector<24x8xf32>
    %167 = tpu.matmul %164, %156, %cst_65 {dimension_numbers = #tpu.dot_dimension_numbers<[1], [0], [0], [1], [0, 0, 1, 1], [], []>} : vector<24x24xf32>, vector<24x8xf32>, vector<24x8xf32> -> vector<24x8xf32>
    %168 = tpu.reciprocal %166 : vector<24x1xf32> -> vector<24x1xf32>
    %169 = vector.broadcast %168 : vector<24x1xf32> to vector<24x8xf32>
    %170 = arith.mulf %167, %169 : vector<24x8xf32>
    %c24_66 = arith.constant 24 : index
    %c16_67 = arith.constant 16 : index
    %171 = vector.load %arg23[%c24_66, %c16_67] : memref<48x32xf32, #tpu.memory_space<vmem>>, vector<24x8xf32>
    tpu.vector_store %arg23[%c24_66, %c16_67], %170 {strides = array<i32>} : memref<48x32xf32, #tpu.memory_space<vmem>>, vector<24x8xf32>,
    %172 = vector.extract_strided_slice %45 {offsets = [24, 24], sizes = [24, 8], strides = [1, 1]} : vector<48x96xf32> to vector<24x8xf32>
    %173 = vector.extract_strided_slice %45 {offsets = [24, 56], sizes = [24, 8], strides = [1, 1]} : vector<48x96xf32> to vector<24x8xf32>
    %174 = vector.extract_strided_slice %45 {offsets = [24, 88], sizes = [24, 8], strides = [1, 1]} : vector<48x96xf32> to vector<24x8xf32>
    %cst_68 = arith.constant dense<0.000000e+00> : vector<24x24xf32>
    %175 = tpu.matmul %172, %173, %cst_68 {dimension_numbers = #tpu.dot_dimension_numbers<[1], [1], [0], [0], [0, 0, 1, 0], [], []>} : vector<24x8xf32>, vector<24x8xf32>, vector<24x24xf32> -> vector<24x24xf32>
    %176 = vector.broadcast %11 : vector<1x24xf32> to vector<24x24xf32>
    %177 = arith.addf %175, %176 : vector<24x24xf32>
    %cst_69 = arith.constant dense<0xFF800000> : vector<24xf32>
    %178 = vector.multi_reduction <maximumf>, %177, %cst_69 [1] : vector<24x24xf32> to vector<24xf32>
    %179 = vector.shape_cast %178 : vector<24xf32> to vector<24x1xf32>
    %180 = vector.broadcast %179 : vector<24x1xf32> to vector<24x24xf32>
    %181 = arith.subf %177, %180 : vector<24x24xf32>
    %182 = math.exp %181 : vector<24x24xf32>
    %cst_70 = arith.constant dense<0.000000e+00> : vector<24xf32>
    %183 = vector.multi_reduction <add>, %182, %cst_70 [1] : vector<24x24xf32> to vector<24xf32>
    %184 = vector.shape_cast %183 : vector<24xf32> to vector<24x1xf32>
    %cst_71 = arith.constant dense<0.000000e+00> : vector<24x8xf32>
    %185 = tpu.matmul %182, %174, %cst_71 {dimension_numbers = #tpu.dot_dimension_numbers<[1], [0], [0], [1], [0, 0, 1, 1], [], []>} : vector<24x24xf32>, vector<24x8xf32>, vector<24x8xf32> -> vector<24x8xf32>
    %186 = tpu.reciprocal %184 : vector<24x1xf32> -> vector<24x1xf32>
    %187 = vector.broadcast %186 : vector<24x1xf32> to vector<24x8xf32>
    %188 = arith.mulf %185, %187 : vector<24x8xf32>
    %c24_72 = arith.constant 24 : index
    %c24_73 = arith.constant 24 : index
    %189 = vector.load %arg23[%c24_72, %c24_73] : memref<48x32xf32, #tpu.memory_space<vmem>>, vector<24x8xf32>
    tpu.vector_store %arg23[%c24_72, %c24_73], %188 {strides = array<i32>} : memref<48x32xf32, #tpu.memory_space<vmem>>, vector<24x8xf32>,
    %c0_74 = arith.constant 0 : index
    %c0_75 = arith.constant 0 : index
    %190 = vector.load %arg23[%c0_74, %c0_75] : memref<48x32xf32, #tpu.memory_space<vmem>>, vector<48x32xf32>
    %c0_76 = arith.constant 0 : index
    %c0_77 = arith.constant 0 : index
    %c0_78 = arith.constant 0 : index
    %191 = vector.load %arg7[%c0_76, %c0_77, %c0_78] : memref<2x32x32xf32, #tpu.memory_space<vmem>>, vector<1x32x32xf32>
    %192 = vector.shape_cast %191 : vector<1x32x32xf32> to vector<32x32xf32>
    %cst_79 = arith.constant dense<0.000000e+00> : vector<48x32xf32>
    %193 = tpu.matmul %190, %192, %cst_79 {dimension_numbers = #tpu.dot_dimension_numbers<[1], [0], [0], [1], [0, 0, 1, 1], [], []>} : vector<48x32xf32>, vector<32x32xf32>, vector<48x32xf32> -> vector<48x32xf32>
    %c0_80 = arith.constant 0 : index
    %c0_81 = arith.constant 0 : index
    %c0_82 = arith.constant 0 : index
    %194 = vector.load %arg8[%c0_80, %c0_81, %c0_82] : memref<2x1x32xf32, #tpu.memory_space<vmem>>, vector<1x1x32xf32>
    %195 = vector.shape_cast %194 : vector<1x1x32xf32> to vector<1x32xf32>
    %196 = vector.broadcast %195 : vector<1x32xf32> to vector<48x32xf32>
    %197 = arith.addf %193, %196 : vector<48x32xf32>
    %198 = arith.addf %12, %197 : vector<48x32xf32>
    %c0_83 = arith.constant 0 : index
    %c0_84 = arith.constant 0 : index
    %c0_85 = arith.constant 0 : index
    %199 = vector.load %arg9[%c0_83, %c0_84, %c0_85] : memref<2x1x32xf32, #tpu.memory_space<vmem>>, vector<1x1x32xf32>
    %200 = vector.shape_cast %199 : vector<1x1x32xf32> to vector<1x32xf32>
    %c0_86 = arith.constant 0 : index
    %c0_87 = arith.constant 0 : index
    %c0_88 = arith.constant 0 : index
    %201 = vector.load %arg10[%c0_86, %c0_87, %c0_88] : memref<2x1x32xf32, #tpu.memory_space<vmem>>, vector<1x1x32xf32>
    %202 = vector.shape_cast %201 : vector<1x1x32xf32> to vector<1x32xf32>
    %cst_89 = arith.constant dense<0.000000e+00> : vector<48xf32>
    %203 = vector.multi_reduction <add>, %198, %cst_89 [1] : vector<48x32xf32> to vector<48xf32>
    %204 = vector.shape_cast %203 : vector<48xf32> to vector<48x1xf32>
    %cst_90 = arith.constant 3.200000e+01 : f32
    %205 = vector.broadcast %cst_90 : f32 to vector<48x1xf32>
    %206 = arith.divf %204, %205 : vector<48x1xf32>
    %207 = vector.broadcast %206 : vector<48x1xf32> to vector<48x32xf32>
    %208 = arith.subf %198, %207 : vector<48x32xf32>
    %209 = arith.mulf %208, %208 : vector<48x32xf32>
    %cst_91 = arith.constant dense<0.000000e+00> : vector<48xf32>
    %210 = vector.multi_reduction <add>, %209, %cst_91 [1] : vector<48x32xf32> to vector<48xf32>
    %211 = vector.shape_cast %210 : vector<48xf32> to vector<48x1xf32>
    %cst_92 = arith.constant 3.200000e+01 : f32
    %212 = vector.broadcast %cst_92 : f32 to vector<48x1xf32>
    %213 = arith.divf %211, %212 : vector<48x1xf32>
    %214 = vector.broadcast %206 : vector<48x1xf32> to vector<48x32xf32>
    %215 = arith.subf %198, %214 : vector<48x32xf32>
    %cst_93 = arith.constant 9.99999997E-7 : f32
    %216 = vector.broadcast %cst_93 : f32 to vector<48x1xf32>
    %217 = arith.addf %213, %216 : vector<48x1xf32>
    %218 = math.rsqrt %217 : vector<48x1xf32>
    %219 = vector.broadcast %218 : vector<48x1xf32> to vector<48x32xf32>
    %220 = arith.mulf %215, %219 : vector<48x32xf32>
    %221 = vector.broadcast %200 : vector<1x32xf32> to vector<48x32xf32>
    %222 = arith.mulf %220, %221 : vector<48x32xf32>
    %223 = vector.broadcast %202 : vector<1x32xf32> to vector<48x32xf32>
    %224 = arith.addf %222, %223 : vector<48x32xf32>
    %c0_94 = arith.constant 0 : index
    %c0_95 = arith.constant 0 : index
    %c0_96 = arith.constant 0 : index
    %225 = vector.load %arg11[%c0_94, %c0_95, %c0_96] : memref<2x32x128xf32, #tpu.memory_space<vmem>>, vector<1x32x128xf32>
    %226 = vector.shape_cast %225 : vector<1x32x128xf32> to vector<32x128xf32>
    %cst_97 = arith.constant dense<0.000000e+00> : vector<48x128xf32>
    %227 = tpu.matmul %224, %226, %cst_97 {dimension_numbers = #tpu.dot_dimension_numbers<[1], [0], [0], [1], [0, 0, 1, 1], [], []>} : vector<48x32xf32>, vector<32x128xf32>, vector<48x128xf32> -> vector<48x128xf32>
    %c0_98 = arith.constant 0 : index
    %c0_99 = arith.constant 0 : index
    %c0_100 = arith.constant 0 : index
    %228 = vector.load %arg12[%c0_98, %c0_99, %c0_100] : memref<2x1x128xf32, #tpu.memory_space<vmem>>, vector<1x1x128xf32>
    %229 = vector.shape_cast %228 : vector<1x1x128xf32> to vector<1x128xf32>
    %230 = vector.broadcast %229 : vector<1x128xf32> to vector<48x128xf32>
    %231 = arith.addf %227, %230 : vector<48x128xf32>
    %cst_101 = arith.constant 5.000000e-01 : f32
    %232 = vector.broadcast %cst_101 : f32 to vector<48x128xf32>
    %233 = arith.mulf %232, %231 : vector<48x128xf32>
    %cst_102 = arith.constant 4.471500e-02 : f32
    %234 = vector.broadcast %cst_102 : f32 to vector<48x128xf32>
    %235 = arith.mulf %234, %231 : vector<48x128xf32>
    %236 = arith.mulf %235, %231 : vector<48x128xf32>
    %237 = arith.mulf %236, %231 : vector<48x128xf32>
    %238 = arith.addf %231, %237 : vector<48x128xf32>
    %cst_103 = arith.constant 0.797884583 : f32
    %239 = vector.broadcast %cst_103 : f32 to vector<48x128xf32>
    %240 = arith.mulf %239, %238 : vector<48x128xf32>
    %241 = math.tanh %240 : vector<48x128xf32>
    %cst_104 = arith.constant 1.000000e+00 : f32
    %242 = vector.broadcast %cst_104 : f32 to vector<48x128xf32>
    %243 = arith.addf %242, %241 : vector<48x128xf32>
    %244 = arith.mulf %233, %243 : vector<48x128xf32>
    %c0_105 = arith.constant 0 : index
    %c0_106 = arith.constant 0 : index
    %c0_107 = arith.constant 0 : index
    %245 = vector.load %arg13[%c0_105, %c0_106, %c0_107] : memref<2x128x32xf32, #tpu.memory_space<vmem>>, vector<1x128x32xf32>
    %246 = vector.shape_cast %245 : vector<1x128x32xf32> to vector<128x32xf32>
    %cst_108 = arith.constant dense<0.000000e+00> : vector<48x32xf32>
    %247 = tpu.matmul %244, %246, %cst_108 {dimension_numbers = #tpu.dot_dimension_numbers<[1], [0], [0], [1], [0, 0, 1, 1], [], []>} : vector<48x128xf32>, vector<128x32xf32>, vector<48x32xf32> -> vector<48x32xf32>
    %c0_109 = arith.constant 0 : index
    %c0_110 = arith.constant 0 : index
    %c0_111 = arith.constant 0 : index
    %248 = vector.load %arg14[%c0_109, %c0_110, %c0_111] : memref<2x1x32xf32, #tpu.memory_space<vmem>>, vector<1x1x32xf32>
    %249 = vector.shape_cast %248 : vector<1x1x32xf32> to vector<1x32xf32>
    %250 = vector.broadcast %249 : vector<1x32xf32> to vector<48x32xf32>
    %251 = arith.addf %247, %250 : vector<48x32xf32>
    %252 = arith.addf %198, %251 : vector<48x32xf32>
    %c0_112 = arith.constant 0 : index
    %c0_113 = arith.constant 0 : index
    %253 = vector.load %arg22[%c0_112, %c0_113] : memref<48x32xf32, #tpu.memory_space<vmem>>, vector<48x32xf32>
    tpu.vector_store %arg22[%c0_112, %c0_113], %252 {strides = array<i32>} : memref<48x32xf32, #tpu.memory_space<vmem>>, vector<48x32xf32>,
    %c0_114 = arith.constant 0 : index
    %c0_115 = arith.constant 0 : index
    %254 = vector.load %arg22[%c0_114, %c0_115] : memref<48x32xf32, #tpu.memory_space<vmem>>, vector<48x32xf32>
    %c1 = arith.constant 1 : index
    %c0_116 = arith.constant 0 : index
    %c0_117 = arith.constant 0 : index
    %255 = vector.load %arg3[%c1, %c0_116, %c0_117] : memref<2x1x32xf32, #tpu.memory_space<vmem>>, vector<1x1x32xf32>
    %256 = vector.shape_cast %255 : vector<1x1x32xf32> to vector<1x32xf32>
    %c1_118 = arith.constant 1 : index
    %c0_119 = arith.constant 0 : index
    %c0_120 = arith.constant 0 : index
    %257 = vector.load %arg4[%c1_118, %c0_119, %c0_120] : memref<2x1x32xf32, #tpu.memory_space<vmem>>, vector<1x1x32xf32>
    %258 = vector.shape_cast %257 : vector<1x1x32xf32> to vector<1x32xf32>
    %cst_121 = arith.constant dense<0.000000e+00> : vector<48xf32>
    %259 = vector.multi_reduction <add>, %254, %cst_121 [1] : vector<48x32xf32> to vector<48xf32>
    %260 = vector.shape_cast %259 : vector<48xf32> to vector<48x1xf32>
    %cst_122 = arith.constant 3.200000e+01 : f32
    %261 = vector.broadcast %cst_122 : f32 to vector<48x1xf32>
    %262 = arith.divf %260, %261 : vector<48x1xf32>
    %263 = vector.broadcast %262 : vector<48x1xf32> to vector<48x32xf32>
    %264 = arith.subf %254, %263 : vector<48x32xf32>
    %265 = arith.mulf %264, %264 : vector<48x32xf32>
    %cst_123 = arith.constant dense<0.000000e+00> : vector<48xf32>
    %266 = vector.multi_reduction <add>, %265, %cst_123 [1] : vector<48x32xf32> to vector<48xf32>
    %267 = vector.shape_cast %266 : vector<48xf32> to vector<48x1xf32>
    %cst_124 = arith.constant 3.200000e+01 : f32
    %268 = vector.broadcast %cst_124 : f32 to vector<48x1xf32>
    %269 = arith.divf %267, %268 : vector<48x1xf32>
    %270 = vector.broadcast %262 : vector<48x1xf32> to vector<48x32xf32>
    %271 = arith.subf %254, %270 : vector<48x32xf32>
    %cst_125 = arith.constant 9.99999997E-7 : f32
    %272 = vector.broadcast %cst_125 : f32 to vector<48x1xf32>
    %273 = arith.addf %269, %272 : vector<48x1xf32>
    %274 = math.rsqrt %273 : vector<48x1xf32>
    %275 = vector.broadcast %274 : vector<48x1xf32> to vector<48x32xf32>
    %276 = arith.mulf %271, %275 : vector<48x32xf32>
    %277 = vector.broadcast %256 : vector<1x32xf32> to vector<48x32xf32>
    %278 = arith.mulf %276, %277 : vector<48x32xf32>
    %279 = vector.broadcast %258 : vector<1x32xf32> to vector<48x32xf32>
    %280 = arith.addf %278, %279 : vector<48x32xf32>
    %c1_126 = arith.constant 1 : index
    %c0_127 = arith.constant 0 : index
    %c0_128 = arith.constant 0 : index
    %281 = vector.load %arg5[%c1_126, %c0_127, %c0_128] : memref<2x32x96xf32, #tpu.memory_space<vmem>>, vector<1x32x96xf32>
    %282 = vector.shape_cast %281 : vector<1x32x96xf32> to vector<32x96xf32>
    %cst_129 = arith.constant dense<0.000000e+00> : vector<48x96xf32>
    %283 = tpu.matmul %280, %282, %cst_129 {dimension_numbers = #tpu.dot_dimension_numbers<[1], [0], [0], [1], [0, 0, 1, 1], [], []>} : vector<48x32xf32>, vector<32x96xf32>, vector<48x96xf32> -> vector<48x96xf32>
    %c1_130 = arith.constant 1 : index
    %c0_131 = arith.constant 0 : index
    %c0_132 = arith.constant 0 : index
    %284 = vector.load %arg6[%c1_130, %c0_131, %c0_132] : memref<2x1x96xf32, #tpu.memory_space<vmem>>, vector<1x1x96xf32>
    %285 = vector.shape_cast %284 : vector<1x1x96xf32> to vector<1x96xf32>
    %286 = vector.broadcast %285 : vector<1x96xf32> to vector<48x96xf32>
    %287 = arith.addf %283, %286 : vector<48x96xf32>
    %288 = vector.extract_strided_slice %287 {offsets = [0, 0], sizes = [24, 8], strides = [1, 1]} : vector<48x96xf32> to vector<24x8xf32>
    %289 = vector.extract_strided_slice %287 {offsets = [0, 32], sizes = [24, 8], strides = [1, 1]} : vector<48x96xf32> to vector<24x8xf32>
    %290 = vector.extract_strided_slice %287 {offsets = [0, 64], sizes = [24, 8], strides = [1, 1]} : vector<48x96xf32> to vector<24x8xf32>
    %cst_133 = arith.constant dense<0.000000e+00> : vector<24x24xf32>
    %291 = tpu.matmul %288, %289, %cst_133 {dimension_numbers = #tpu.dot_dimension_numbers<[1], [1], [0], [0], [0, 0, 1, 0], [], []>} : vector<24x8xf32>, vector<24x8xf32>, vector<24x24xf32> -> vector<24x24xf32>
    %292 = vector.broadcast %11 : vector<1x24xf32> to vector<24x24xf32>
    %293 = arith.addf %291, %292 : vector<24x24xf32>
    %cst_134 = arith.constant dense<0xFF800000> : vector<24xf32>
    %294 = vector.multi_reduction <maximumf>, %293, %cst_134 [1] : vector<24x24xf32> to vector<24xf32>
    %295 = vector.shape_cast %294 : vector<24xf32> to vector<24x1xf32>
    %296 = vector.broadcast %295 : vector<24x1xf32> to vector<24x24xf32>
    %297 = arith.subf %293, %296 : vector<24x24xf32>
    %298 = math.exp %297 : vector<24x24xf32>
    %cst_135 = arith.constant dense<0.000000e+00> : vector<24xf32>
    %299 = vector.multi_reduction <add>, %298, %cst_135 [1] : vector<24x24xf32> to vector<24xf32>
    %300 = vector.shape_cast %299 : vector<24xf32> to vector<24x1xf32>
    %cst_136 = arith.constant dense<0.000000e+00> : vector<24x8xf32>
    %301 = tpu.matmul %298, %290, %cst_136 {dimension_numbers = #tpu.dot_dimension_numbers<[1], [0], [0], [1], [0, 0, 1, 1], [], []>} : vector<24x24xf32>, vector<24x8xf32>, vector<24x8xf32> -> vector<24x8xf32>
    %302 = tpu.reciprocal %300 : vector<24x1xf32> -> vector<24x1xf32>
    %303 = vector.broadcast %302 : vector<24x1xf32> to vector<24x8xf32>
    %304 = arith.mulf %301, %303 : vector<24x8xf32>
    %c0_137 = arith.constant 0 : index
    %c0_138 = arith.constant 0 : index
    %305 = vector.load %arg23[%c0_137, %c0_138] : memref<48x32xf32, #tpu.memory_space<vmem>>, vector<24x8xf32>
    tpu.vector_store %arg23[%c0_137, %c0_138], %304 {strides = array<i32>} : memref<48x32xf32, #tpu.memory_space<vmem>>, vector<24x8xf32>,
    %306 = vector.extract_strided_slice %287 {offsets = [0, 8], sizes = [24, 8], strides = [1, 1]} : vector<48x96xf32> to vector<24x8xf32>
    %307 = vector.extract_strided_slice %287 {offsets = [0, 40], sizes = [24, 8], strides = [1, 1]} : vector<48x96xf32> to vector<24x8xf32>
    %308 = vector.extract_strided_slice %287 {offsets = [0, 72], sizes = [24, 8], strides = [1, 1]} : vector<48x96xf32> to vector<24x8xf32>
    %cst_139 = arith.constant dense<0.000000e+00> : vector<24x24xf32>
    %309 = tpu.matmul %306, %307, %cst_139 {dimension_numbers = #tpu.dot_dimension_numbers<[1], [1], [0], [0], [0, 0, 1, 0], [], []>} : vector<24x8xf32>, vector<24x8xf32>, vector<24x24xf32> -> vector<24x24xf32>
    %310 = vector.broadcast %11 : vector<1x24xf32> to vector<24x24xf32>
    %311 = arith.addf %309, %310 : vector<24x24xf32>
    %cst_140 = arith.constant dense<0xFF800000> : vector<24xf32>
    %312 = vector.multi_reduction <maximumf>, %311, %cst_140 [1] : vector<24x24xf32> to vector<24xf32>
    %313 = vector.shape_cast %312 : vector<24xf32> to vector<24x1xf32>
    %314 = vector.broadcast %313 : vector<24x1xf32> to vector<24x24xf32>
    %315 = arith.subf %311, %314 : vector<24x24xf32>
    %316 = math.exp %315 : vector<24x24xf32>
    %cst_141 = arith.constant dense<0.000000e+00> : vector<24xf32>
    %317 = vector.multi_reduction <add>, %316, %cst_141 [1] : vector<24x24xf32> to vector<24xf32>
    %318 = vector.shape_cast %317 : vector<24xf32> to vector<24x1xf32>
    %cst_142 = arith.constant dense<0.000000e+00> : vector<24x8xf32>
    %319 = tpu.matmul %316, %308, %cst_142 {dimension_numbers = #tpu.dot_dimension_numbers<[1], [0], [0], [1], [0, 0, 1, 1], [], []>} : vector<24x24xf32>, vector<24x8xf32>, vector<24x8xf32> -> vector<24x8xf32>
    %320 = tpu.reciprocal %318 : vector<24x1xf32> -> vector<24x1xf32>
    %321 = vector.broadcast %320 : vector<24x1xf32> to vector<24x8xf32>
    %322 = arith.mulf %319, %321 : vector<24x8xf32>
    %c0_143 = arith.constant 0 : index
    %c8_144 = arith.constant 8 : index
    %323 = vector.load %arg23[%c0_143, %c8_144] : memref<48x32xf32, #tpu.memory_space<vmem>>, vector<24x8xf32>
    tpu.vector_store %arg23[%c0_143, %c8_144], %322 {strides = array<i32>} : memref<48x32xf32, #tpu.memory_space<vmem>>, vector<24x8xf32>,
    %324 = vector.extract_strided_slice %287 {offsets = [0, 16], sizes = [24, 8], strides = [1, 1]} : vector<48x96xf32> to vector<24x8xf32>
    %325 = vector.extract_strided_slice %287 {offsets = [0, 48], sizes = [24, 8], strides = [1, 1]} : vector<48x96xf32> to vector<24x8xf32>
    %326 = vector.extract_strided_slice %287 {offsets = [0, 80], sizes = [24, 8], strides = [1, 1]} : vector<48x96xf32> to vector<24x8xf32>
    %cst_145 = arith.constant dense<0.000000e+00> : vector<24x24xf32>
    %327 = tpu.matmul %324, %325, %cst_145 {dimension_numbers = #tpu.dot_dimension_numbers<[1], [1], [0], [0], [0, 0, 1, 0], [], []>} : vector<24x8xf32>, vector<24x8xf32>, vector<24x24xf32> -> vector<24x24xf32>
    %328 = vector.broadcast %11 : vector<1x24xf32> to vector<24x24xf32>
    %329 = arith.addf %327, %328 : vector<24x24xf32>
    %cst_146 = arith.constant dense<0xFF800000> : vector<24xf32>
    %330 = vector.multi_reduction <maximumf>, %329, %cst_146 [1] : vector<24x24xf32> to vector<24xf32>
    %331 = vector.shape_cast %330 : vector<24xf32> to vector<24x1xf32>
    %332 = vector.broadcast %331 : vector<24x1xf32> to vector<24x24xf32>
    %333 = arith.subf %329, %332 : vector<24x24xf32>
    %334 = math.exp %333 : vector<24x24xf32>
    %cst_147 = arith.constant dense<0.000000e+00> : vector<24xf32>
    %335 = vector.multi_reduction <add>, %334, %cst_147 [1] : vector<24x24xf32> to vector<24xf32>
    %336 = vector.shape_cast %335 : vector<24xf32> to vector<24x1xf32>
    %cst_148 = arith.constant dense<0.000000e+00> : vector<24x8xf32>
    %337 = tpu.matmul %334, %326, %cst_148 {dimension_numbers = #tpu.dot_dimension_numbers<[1], [0], [0], [1], [0, 0, 1, 1], [], []>} : vector<24x24xf32>, vector<24x8xf32>, vector<24x8xf32> -> vector<24x8xf32>
    %338 = tpu.reciprocal %336 : vector<24x1xf32> -> vector<24x1xf32>
    %339 = vector.broadcast %338 : vector<24x1xf32> to vector<24x8xf32>
    %340 = arith.mulf %337, %339 : vector<24x8xf32>
    %c0_149 = arith.constant 0 : index
    %c16_150 = arith.constant 16 : index
    %341 = vector.load %arg23[%c0_149, %c16_150] : memref<48x32xf32, #tpu.memory_space<vmem>>, vector<24x8xf32>
    tpu.vector_store %arg23[%c0_149, %c16_150], %340 {strides = array<i32>} : memref<48x32xf32, #tpu.memory_space<vmem>>, vector<24x8xf32>,
    %342 = vector.extract_strided_slice %287 {offsets = [0, 24], sizes = [24, 8], strides = [1, 1]} : vector<48x96xf32> to vector<24x8xf32>
    %343 = vector.extract_strided_slice %287 {offsets = [0, 56], sizes = [24, 8], strides = [1, 1]} : vector<48x96xf32> to vector<24x8xf32>
    %344 = vector.extract_strided_slice %287 {offsets = [0, 88], sizes = [24, 8], strides = [1, 1]} : vector<48x96xf32> to vector<24x8xf32>
    %cst_151 = arith.constant dense<0.000000e+00> : vector<24x24xf32>
    %345 = tpu.matmul %342, %343, %cst_151 {dimension_numbers = #tpu.dot_dimension_numbers<[1], [1], [0], [0], [0, 0, 1, 0], [], []>} : vector<24x8xf32>, vector<24x8xf32>, vector<24x24xf32> -> vector<24x24xf32>
    %346 = vector.broadcast %11 : vector<1x24xf32> to vector<24x24xf32>
    %347 = arith.addf %345, %346 : vector<24x24xf32>
    %cst_152 = arith.constant dense<0xFF800000> : vector<24xf32>
    %348 = vector.multi_reduction <maximumf>, %347, %cst_152 [1] : vector<24x24xf32> to vector<24xf32>
    %349 = vector.shape_cast %348 : vector<24xf32> to vector<24x1xf32>
    %350 = vector.broadcast %349 : vector<24x1xf32> to vector<24x24xf32>
    %351 = arith.subf %347, %350 : vector<24x24xf32>
    %352 = math.exp %351 : vector<24x24xf32>
    %cst_153 = arith.constant dense<0.000000e+00> : vector<24xf32>
    %353 = vector.multi_reduction <add>, %352, %cst_153 [1] : vector<24x24xf32> to vector<24xf32>
    %354 = vector.shape_cast %353 : vector<24xf32> to vector<24x1xf32>
    %cst_154 = arith.constant dense<0.000000e+00> : vector<24x8xf32>
    %355 = tpu.matmul %352, %344, %cst_154 {dimension_numbers = #tpu.dot_dimension_numbers<[1], [0], [0], [1], [0, 0, 1, 1], [], []>} : vector<24x24xf32>, vector<24x8xf32>, vector<24x8xf32> -> vector<24x8xf32>
    %356 = tpu.reciprocal %354 : vector<24x1xf32> -> vector<24x1xf32>
    %357 = vector.broadcast %356 : vector<24x1xf32> to vector<24x8xf32>
    %358 = arith.mulf %355, %357 : vector<24x8xf32>
    %c0_155 = arith.constant 0 : index
    %c24_156 = arith.constant 24 : index
    %359 = vector.load %arg23[%c0_155, %c24_156] : memref<48x32xf32, #tpu.memory_space<vmem>>, vector<24x8xf32>
    tpu.vector_store %arg23[%c0_155, %c24_156], %358 {strides = array<i32>} : memref<48x32xf32, #tpu.memory_space<vmem>>, vector<24x8xf32>,
    %360 = vector.extract_strided_slice %287 {offsets = [24, 0], sizes = [24, 8], strides = [1, 1]} : vector<48x96xf32> to vector<24x8xf32>
    %361 = vector.extract_strided_slice %287 {offsets = [24, 32], sizes = [24, 8], strides = [1, 1]} : vector<48x96xf32> to vector<24x8xf32>
    %362 = vector.extract_strided_slice %287 {offsets = [24, 64], sizes = [24, 8], strides = [1, 1]} : vector<48x96xf32> to vector<24x8xf32>
    %cst_157 = arith.constant dense<0.000000e+00> : vector<24x24xf32>
    %363 = tpu.matmul %360, %361, %cst_157 {dimension_numbers = #tpu.dot_dimension_numbers<[1], [1], [0], [0], [0, 0, 1, 0], [], []>} : vector<24x8xf32>, vector<24x8xf32>, vector<24x24xf32> -> vector<24x24xf32>
    %364 = vector.broadcast %11 : vector<1x24xf32> to vector<24x24xf32>
    %365 = arith.addf %363, %364 : vector<24x24xf32>
    %cst_158 = arith.constant dense<0xFF800000> : vector<24xf32>
    %366 = vector.multi_reduction <maximumf>, %365, %cst_158 [1] : vector<24x24xf32> to vector<24xf32>
    %367 = vector.shape_cast %366 : vector<24xf32> to vector<24x1xf32>
    %368 = vector.broadcast %367 : vector<24x1xf32> to vector<24x24xf32>
    %369 = arith.subf %365, %368 : vector<24x24xf32>
    %370 = math.exp %369 : vector<24x24xf32>
    %cst_159 = arith.constant dense<0.000000e+00> : vector<24xf32>
    %371 = vector.multi_reduction <add>, %370, %cst_159 [1] : vector<24x24xf32> to vector<24xf32>
    %372 = vector.shape_cast %371 : vector<24xf32> to vector<24x1xf32>
    %cst_160 = arith.constant dense<0.000000e+00> : vector<24x8xf32>
    %373 = tpu.matmul %370, %362, %cst_160 {dimension_numbers = #tpu.dot_dimension_numbers<[1], [0], [0], [1], [0, 0, 1, 1], [], []>} : vector<24x24xf32>, vector<24x8xf32>, vector<24x8xf32> -> vector<24x8xf32>
    %374 = tpu.reciprocal %372 : vector<24x1xf32> -> vector<24x1xf32>
    %375 = vector.broadcast %374 : vector<24x1xf32> to vector<24x8xf32>
    %376 = arith.mulf %373, %375 : vector<24x8xf32>
    %c24_161 = arith.constant 24 : index
    %c0_162 = arith.constant 0 : index
    %377 = vector.load %arg23[%c24_161, %c0_162] : memref<48x32xf32, #tpu.memory_space<vmem>>, vector<24x8xf32>
    tpu.vector_store %arg23[%c24_161, %c0_162], %376 {strides = array<i32>} : memref<48x32xf32, #tpu.memory_space<vmem>>, vector<24x8xf32>,
    %378 = vector.extract_strided_slice %287 {offsets = [24, 8], sizes = [24, 8], strides = [1, 1]} : vector<48x96xf32> to vector<24x8xf32>
    %379 = vector.extract_strided_slice %287 {offsets = [24, 40], sizes = [24, 8], strides = [1, 1]} : vector<48x96xf32> to vector<24x8xf32>
    %380 = vector.extract_strided_slice %287 {offsets = [24, 72], sizes = [24, 8], strides = [1, 1]} : vector<48x96xf32> to vector<24x8xf32>
    %cst_163 = arith.constant dense<0.000000e+00> : vector<24x24xf32>
    %381 = tpu.matmul %378, %379, %cst_163 {dimension_numbers = #tpu.dot_dimension_numbers<[1], [1], [0], [0], [0, 0, 1, 0], [], []>} : vector<24x8xf32>, vector<24x8xf32>, vector<24x24xf32> -> vector<24x24xf32>
    %382 = vector.broadcast %11 : vector<1x24xf32> to vector<24x24xf32>
    %383 = arith.addf %381, %382 : vector<24x24xf32>
    %cst_164 = arith.constant dense<0xFF800000> : vector<24xf32>
    %384 = vector.multi_reduction <maximumf>, %383, %cst_164 [1] : vector<24x24xf32> to vector<24xf32>
    %385 = vector.shape_cast %384 : vector<24xf32> to vector<24x1xf32>
    %386 = vector.broadcast %385 : vector<24x1xf32> to vector<24x24xf32>
    %387 = arith.subf %383, %386 : vector<24x24xf32>
    %388 = math.exp %387 : vector<24x24xf32>
    %cst_165 = arith.constant dense<0.000000e+00> : vector<24xf32>
    %389 = vector.multi_reduction <add>, %388, %cst_165 [1] : vector<24x24xf32> to vector<24xf32>
    %390 = vector.shape_cast %389 : vector<24xf32> to vector<24x1xf32>
    %cst_166 = arith.constant dense<0.000000e+00> : vector<24x8xf32>
    %391 = tpu.matmul %388, %380, %cst_166 {dimension_numbers = #tpu.dot_dimension_numbers<[1], [0], [0], [1], [0, 0, 1, 1], [], []>} : vector<24x24xf32>, vector<24x8xf32>, vector<24x8xf32> -> vector<24x8xf32>
    %392 = tpu.reciprocal %390 : vector<24x1xf32> -> vector<24x1xf32>
    %393 = vector.broadcast %392 : vector<24x1xf32> to vector<24x8xf32>
    %394 = arith.mulf %391, %393 : vector<24x8xf32>
    %c24_167 = arith.constant 24 : index
    %c8_168 = arith.constant 8 : index
    %395 = vector.load %arg23[%c24_167, %c8_168] : memref<48x32xf32, #tpu.memory_space<vmem>>, vector<24x8xf32>
    tpu.vector_store %arg23[%c24_167, %c8_168], %394 {strides = array<i32>} : memref<48x32xf32, #tpu.memory_space<vmem>>, vector<24x8xf32>,
    %396 = vector.extract_strided_slice %287 {offsets = [24, 16], sizes = [24, 8], strides = [1, 1]} : vector<48x96xf32> to vector<24x8xf32>
    %397 = vector.extract_strided_slice %287 {offsets = [24, 48], sizes = [24, 8], strides = [1, 1]} : vector<48x96xf32> to vector<24x8xf32>
    %398 = vector.extract_strided_slice %287 {offsets = [24, 80], sizes = [24, 8], strides = [1, 1]} : vector<48x96xf32> to vector<24x8xf32>
    %cst_169 = arith.constant dense<0.000000e+00> : vector<24x24xf32>
    %399 = tpu.matmul %396, %397, %cst_169 {dimension_numbers = #tpu.dot_dimension_numbers<[1], [1], [0], [0], [0, 0, 1, 0], [], []>} : vector<24x8xf32>, vector<24x8xf32>, vector<24x24xf32> -> vector<24x24xf32>
    %400 = vector.broadcast %11 : vector<1x24xf32> to vector<24x24xf32>
    %401 = arith.addf %399, %400 : vector<24x24xf32>
    %cst_170 = arith.constant dense<0xFF800000> : vector<24xf32>
    %402 = vector.multi_reduction <maximumf>, %401, %cst_170 [1] : vector<24x24xf32> to vector<24xf32>
    %403 = vector.shape_cast %402 : vector<24xf32> to vector<24x1xf32>
    %404 = vector.broadcast %403 : vector<24x1xf32> to vector<24x24xf32>
    %405 = arith.subf %401, %404 : vector<24x24xf32>
    %406 = math.exp %405 : vector<24x24xf32>
    %cst_171 = arith.constant dense<0.000000e+00> : vector<24xf32>
    %407 = vector.multi_reduction <add>, %406, %cst_171 [1] : vector<24x24xf32> to vector<24xf32>
    %408 = vector.shape_cast %407 : vector<24xf32> to vector<24x1xf32>
    %cst_172 = arith.constant dense<0.000000e+00> : vector<24x8xf32>
    %409 = tpu.matmul %406, %398, %cst_172 {dimension_numbers = #tpu.dot_dimension_numbers<[1], [0], [0], [1], [0, 0, 1, 1], [], []>} : vector<24x24xf32>, vector<24x8xf32>, vector<24x8xf32> -> vector<24x8xf32>
    %410 = tpu.reciprocal %408 : vector<24x1xf32> -> vector<24x1xf32>
    %411 = vector.broadcast %410 : vector<24x1xf32> to vector<24x8xf32>
    %412 = arith.mulf %409, %411 : vector<24x8xf32>
    %c24_173 = arith.constant 24 : index
    %c16_174 = arith.constant 16 : index
    %413 = vector.load %arg23[%c24_173, %c16_174] : memref<48x32xf32, #tpu.memory_space<vmem>>, vector<24x8xf32>
    tpu.vector_store %arg23[%c24_173, %c16_174], %412 {strides = array<i32>} : memref<48x32xf32, #tpu.memory_space<vmem>>, vector<24x8xf32>,
    %414 = vector.extract_strided_slice %287 {offsets = [24, 24], sizes = [24, 8], strides = [1, 1]} : vector<48x96xf32> to vector<24x8xf32>
    %415 = vector.extract_strided_slice %287 {offsets = [24, 56], sizes = [24, 8], strides = [1, 1]} : vector<48x96xf32> to vector<24x8xf32>
    %416 = vector.extract_strided_slice %287 {offsets = [24, 88], sizes = [24, 8], strides = [1, 1]} : vector<48x96xf32> to vector<24x8xf32>
    %cst_175 = arith.constant dense<0.000000e+00> : vector<24x24xf32>
    %417 = tpu.matmul %414, %415, %cst_175 {dimension_numbers = #tpu.dot_dimension_numbers<[1], [1], [0], [0], [0, 0, 1, 0], [], []>} : vector<24x8xf32>, vector<24x8xf32>, vector<24x24xf32> -> vector<24x24xf32>
    %418 = vector.broadcast %11 : vector<1x24xf32> to vector<24x24xf32>
    %419 = arith.addf %417, %418 : vector<24x24xf32>
    %cst_176 = arith.constant dense<0xFF800000> : vector<24xf32>
    %420 = vector.multi_reduction <maximumf>, %419, %cst_176 [1] : vector<24x24xf32> to vector<24xf32>
    %421 = vector.shape_cast %420 : vector<24xf32> to vector<24x1xf32>
    %422 = vector.broadcast %421 : vector<24x1xf32> to vector<24x24xf32>
    %423 = arith.subf %419, %422 : vector<24x24xf32>
    %424 = math.exp %423 : vector<24x24xf32>
    %cst_177 = arith.constant dense<0.000000e+00> : vector<24xf32>
    %425 = vector.multi_reduction <add>, %424, %cst_177 [1] : vector<24x24xf32> to vector<24xf32>
    %426 = vector.shape_cast %425 : vector<24xf32> to vector<24x1xf32>
    %cst_178 = arith.constant dense<0.000000e+00> : vector<24x8xf32>
    %427 = tpu.matmul %424, %416, %cst_178 {dimension_numbers = #tpu.dot_dimension_numbers<[1], [0], [0], [1], [0, 0, 1, 1], [], []>} : vector<24x24xf32>, vector<24x8xf32>, vector<24x8xf32> -> vector<24x8xf32>
    %428 = tpu.reciprocal %426 : vector<24x1xf32> -> vector<24x1xf32>
    %429 = vector.broadcast %428 : vector<24x1xf32> to vector<24x8xf32>
    %430 = arith.mulf %427, %429 : vector<24x8xf32>
    %c24_179 = arith.constant 24 : index
    %c24_180 = arith.constant 24 : index
    %431 = vector.load %arg23[%c24_179, %c24_180] : memref<48x32xf32, #tpu.memory_space<vmem>>, vector<24x8xf32>
    tpu.vector_store %arg23[%c24_179, %c24_180], %430 {strides = array<i32>} : memref<48x32xf32, #tpu.memory_space<vmem>>, vector<24x8xf32>,
    %c0_181 = arith.constant 0 : index
    %c0_182 = arith.constant 0 : index
    %432 = vector.load %arg23[%c0_181, %c0_182] : memref<48x32xf32, #tpu.memory_space<vmem>>, vector<48x32xf32>
    %c1_183 = arith.constant 1 : index
    %c0_184 = arith.constant 0 : index
    %c0_185 = arith.constant 0 : index
    %433 = vector.load %arg7[%c1_183, %c0_184, %c0_185] : memref<2x32x32xf32, #tpu.memory_space<vmem>>, vector<1x32x32xf32>
    %434 = vector.shape_cast %433 : vector<1x32x32xf32> to vector<32x32xf32>
    %cst_186 = arith.constant dense<0.000000e+00> : vector<48x32xf32>
    %435 = tpu.matmul %432, %434, %cst_186 {dimension_numbers = #tpu.dot_dimension_numbers<[1], [0], [0], [1], [0, 0, 1, 1], [], []>} : vector<48x32xf32>, vector<32x32xf32>, vector<48x32xf32> -> vector<48x32xf32>
    %c1_187 = arith.constant 1 : index
    %c0_188 = arith.constant 0 : index
    %c0_189 = arith.constant 0 : index
    %436 = vector.load %arg8[%c1_187, %c0_188, %c0_189] : memref<2x1x32xf32, #tpu.memory_space<vmem>>, vector<1x1x32xf32>
    %437 = vector.shape_cast %436 : vector<1x1x32xf32> to vector<1x32xf32>
    %438 = vector.broadcast %437 : vector<1x32xf32> to vector<48x32xf32>
    %439 = arith.addf %435, %438 : vector<48x32xf32>
    %440 = arith.addf %254, %439 : vector<48x32xf32>
    %c1_190 = arith.constant 1 : index
    %c0_191 = arith.constant 0 : index
    %c0_192 = arith.constant 0 : index
    %441 = vector.load %arg9[%c1_190, %c0_191, %c0_192] : memref<2x1x32xf32, #tpu.memory_space<vmem>>, vector<1x1x32xf32>
    %442 = vector.shape_cast %441 : vector<1x1x32xf32> to vector<1x32xf32>
    %c1_193 = arith.constant 1 : index
    %c0_194 = arith.constant 0 : index
    %c0_195 = arith.constant 0 : index
    %443 = vector.load %arg10[%c1_193, %c0_194, %c0_195] : memref<2x1x32xf32, #tpu.memory_space<vmem>>, vector<1x1x32xf32>
    %444 = vector.shape_cast %443 : vector<1x1x32xf32> to vector<1x32xf32>
    %cst_196 = arith.constant dense<0.000000e+00> : vector<48xf32>
    %445 = vector.multi_reduction <add>, %440, %cst_196 [1] : vector<48x32xf32> to vector<48xf32>
    %446 = vector.shape_cast %445 : vector<48xf32> to vector<48x1xf32>
    %cst_197 = arith.constant 3.200000e+01 : f32
    %447 = vector.broadcast %cst_197 : f32 to vector<48x1xf32>
    %448 = arith.divf %446, %447 : vector<48x1xf32>
    %449 = vector.broadcast %448 : vector<48x1xf32> to vector<48x32xf32>
    %450 = arith.subf %440, %449 : vector<48x32xf32>
    %451 = arith.mulf %450, %450 : vector<48x32xf32>
    %cst_198 = arith.constant dense<0.000000e+00> : vector<48xf32>
    %452 = vector.multi_reduction <add>, %451, %cst_198 [1] : vector<48x32xf32> to vector<48xf32>
    %453 = vector.shape_cast %452 : vector<48xf32> to vector<48x1xf32>
    %cst_199 = arith.constant 3.200000e+01 : f32
    %454 = vector.broadcast %cst_199 : f32 to vector<48x1xf32>
    %455 = arith.divf %453, %454 : vector<48x1xf32>
    %456 = vector.broadcast %448 : vector<48x1xf32> to vector<48x32xf32>
    %457 = arith.subf %440, %456 : vector<48x32xf32>
    %cst_200 = arith.constant 9.99999997E-7 : f32
    %458 = vector.broadcast %cst_200 : f32 to vector<48x1xf32>
    %459 = arith.addf %455, %458 : vector<48x1xf32>
    %460 = math.rsqrt %459 : vector<48x1xf32>
    %461 = vector.broadcast %460 : vector<48x1xf32> to vector<48x32xf32>
    %462 = arith.mulf %457, %461 : vector<48x32xf32>
    %463 = vector.broadcast %442 : vector<1x32xf32> to vector<48x32xf32>
    %464 = arith.mulf %462, %463 : vector<48x32xf32>
    %465 = vector.broadcast %444 : vector<1x32xf32> to vector<48x32xf32>
    %466 = arith.addf %464, %465 : vector<48x32xf32>
    %c1_201 = arith.constant 1 : index
    %c0_202 = arith.constant 0 : index
    %c0_203 = arith.constant 0 : index
    %467 = vector.load %arg11[%c1_201, %c0_202, %c0_203] : memref<2x32x128xf32, #tpu.memory_space<vmem>>, vector<1x32x128xf32>
    %468 = vector.shape_cast %467 : vector<1x32x128xf32> to vector<32x128xf32>
    %cst_204 = arith.constant dense<0.000000e+00> : vector<48x128xf32>
    %469 = tpu.matmul %466, %468, %cst_204 {dimension_numbers = #tpu.dot_dimension_numbers<[1], [0], [0], [1], [0, 0, 1, 1], [], []>} : vector<48x32xf32>, vector<32x128xf32>, vector<48x128xf32> -> vector<48x128xf32>
    %c1_205 = arith.constant 1 : index
    %c0_206 = arith.constant 0 : index
    %c0_207 = arith.constant 0 : index
    %470 = vector.load %arg12[%c1_205, %c0_206, %c0_207] : memref<2x1x128xf32, #tpu.memory_space<vmem>>, vector<1x1x128xf32>
    %471 = vector.shape_cast %470 : vector<1x1x128xf32> to vector<1x128xf32>
    %472 = vector.broadcast %471 : vector<1x128xf32> to vector<48x128xf32>
    %473 = arith.addf %469, %472 : vector<48x128xf32>
    %cst_208 = arith.constant 5.000000e-01 : f32
    %474 = vector.broadcast %cst_208 : f32 to vector<48x128xf32>
    %475 = arith.mulf %474, %473 : vector<48x128xf32>
    %cst_209 = arith.constant 4.471500e-02 : f32
    %476 = vector.broadcast %cst_209 : f32 to vector<48x128xf32>
    %477 = arith.mulf %476, %473 : vector<48x128xf32>
    %478 = arith.mulf %477, %473 : vector<48x128xf32>
    %479 = arith.mulf %478, %473 : vector<48x128xf32>
    %480 = arith.addf %473, %479 : vector<48x128xf32>
    %cst_210 = arith.constant 0.797884583 : f32
    %481 = vector.broadcast %cst_210 : f32 to vector<48x128xf32>
    %482 = arith.mulf %481, %480 : vector<48x128xf32>
    %483 = math.tanh %482 : vector<48x128xf32>
    %cst_211 = arith.constant 1.000000e+00 : f32
    %484 = vector.broadcast %cst_211 : f32 to vector<48x128xf32>
    %485 = arith.addf %484, %483 : vector<48x128xf32>
    %486 = arith.mulf %475, %485 : vector<48x128xf32>
    %c1_212 = arith.constant 1 : index
    %c0_213 = arith.constant 0 : index
    %c0_214 = arith.constant 0 : index
    %487 = vector.load %arg13[%c1_212, %c0_213, %c0_214] : memref<2x128x32xf32, #tpu.memory_space<vmem>>, vector<1x128x32xf32>
    %488 = vector.shape_cast %487 : vector<1x128x32xf32> to vector<128x32xf32>
    %cst_215 = arith.constant dense<0.000000e+00> : vector<48x32xf32>
    %489 = tpu.matmul %486, %488, %cst_215 {dimension_numbers = #tpu.dot_dimension_numbers<[1], [0], [0], [1], [0, 0, 1, 1], [], []>} : vector<48x128xf32>, vector<128x32xf32>, vector<48x32xf32> -> vector<48x32xf32>
    %c1_216 = arith.constant 1 : index
    %c0_217 = arith.constant 0 : index
    %c0_218 = arith.constant 0 : index
    %490 = vector.load %arg14[%c1_216, %c0_217, %c0_218] : memref<2x1x32xf32, #tpu.memory_space<vmem>>, vector<1x1x32xf32>
    %491 = vector.shape_cast %490 : vector<1x1x32xf32> to vector<1x32xf32>
    %492 = vector.broadcast %491 : vector<1x32xf32> to vector<48x32xf32>
    %493 = arith.addf %489, %492 : vector<48x32xf32>
    %494 = arith.addf %440, %493 : vector<48x32xf32>
    %c0_219 = arith.constant 0 : index
    %c0_220 = arith.constant 0 : index
    %495 = vector.load %arg22[%c0_219, %c0_220] : memref<48x32xf32, #tpu.memory_space<vmem>>, vector<48x32xf32>
    tpu.vector_store %arg22[%c0_219, %c0_220], %494 {strides = array<i32>} : memref<48x32xf32, #tpu.memory_space<vmem>>, vector<48x32xf32>,
    %c0_221 = arith.constant 0 : index
    %c0_222 = arith.constant 0 : index
    %496 = vector.load %arg22[%c0_221, %c0_222] : memref<48x32xf32, #tpu.memory_space<vmem>>, vector<1x32xf32>
    %c24_223 = arith.constant 24 : index
    %c0_224 = arith.constant 0 : index
    %497 = vector.load %arg22[%c24_223, %c0_224] : memref<48x32xf32, #tpu.memory_space<vmem>>, vector<1x32xf32>
    %498 = tpu.concatenate %496, %497 in 0 : vector<1x32xf32>, vector<1x32xf32> -> vector<2x32xf32>
    %c0_225 = arith.constant 0 : index
    %c0_226 = arith.constant 0 : index
    %499 = vector.load %arg15[%c0_225, %c0_226] : memref<1x32xf32, #tpu.memory_space<vmem>>, vector<1x32xf32>
    %c0_227 = arith.constant 0 : index
    %c0_228 = arith.constant 0 : index
    %500 = vector.load %arg16[%c0_227, %c0_228] : memref<1x32xf32, #tpu.memory_space<vmem>>, vector<1x32xf32>
    %cst_229 = arith.constant dense<0.000000e+00> : vector<2xf32>
    %501 = vector.multi_reduction <add>, %498, %cst_229 [1] : vector<2x32xf32> to vector<2xf32>
    %502 = vector.shape_cast %501 : vector<2xf32> to vector<2x1xf32>
    %cst_230 = arith.constant 3.200000e+01 : f32
    %503 = vector.broadcast %cst_230 : f32 to vector<2x1xf32>
    %504 = arith.divf %502, %503 : vector<2x1xf32>
    %505 = vector.broadcast %504 : vector<2x1xf32> to vector<2x32xf32>
    %506 = arith.subf %498, %505 : vector<2x32xf32>
    %507 = arith.mulf %506, %506 : vector<2x32xf32>
    %cst_231 = arith.constant dense<0.000000e+00> : vector<2xf32>
    %508 = vector.multi_reduction <add>, %507, %cst_231 [1] : vector<2x32xf32> to vector<2xf32>
    %509 = vector.shape_cast %508 : vector<2xf32> to vector<2x1xf32>
    %cst_232 = arith.constant 3.200000e+01 : f32
    %510 = vector.broadcast %cst_232 : f32 to vector<2x1xf32>
    %511 = arith.divf %509, %510 : vector<2x1xf32>
    %512 = vector.broadcast %504 : vector<2x1xf32> to vector<2x32xf32>
    %513 = arith.subf %498, %512 : vector<2x32xf32>
    %cst_233 = arith.constant 9.99999997E-7 : f32
    %514 = vector.broadcast %cst_233 : f32 to vector<2x1xf32>
    %515 = arith.addf %511, %514 : vector<2x1xf32>
    %516 = math.rsqrt %515 : vector<2x1xf32>
    %517 = vector.broadcast %516 : vector<2x1xf32> to vector<2x32xf32>
    %518 = arith.mulf %513, %517 : vector<2x32xf32>
    %519 = vector.broadcast %499 : vector<1x32xf32> to vector<2x32xf32>
    %520 = arith.mulf %518, %519 : vector<2x32xf32>
    %521 = vector.broadcast %500 : vector<1x32xf32> to vector<2x32xf32>
    %522 = arith.addf %520, %521 : vector<2x32xf32>
    %c0_234 = arith.constant 0 : index
    %c0_235 = arith.constant 0 : index
    %523 = vector.load %arg17[%c0_234, %c0_235] : memref<32x128xf32, #tpu.memory_space<vmem>>, vector<32x128xf32>
    %cst_236 = arith.constant dense<0.000000e+00> : vector<2x128xf32>
    %524 = tpu.matmul %522, %523, %cst_236 {dimension_numbers = #tpu.dot_dimension_numbers<[1], [0], [0], [1], [0, 0, 1, 1], [], []>} : vector<2x32xf32>, vector<32x128xf32>, vector<2x128xf32> -> vector<2x128xf32>
    %c0_237 = arith.constant 0 : index
    %c0_238 = arith.constant 0 : index
    %525 = vector.load %arg18[%c0_237, %c0_238] : memref<1x128xf32, #tpu.memory_space<vmem>>, vector<1x128xf32>
    %526 = vector.broadcast %525 : vector<1x128xf32> to vector<2x128xf32>
    %527 = arith.addf %524, %526 : vector<2x128xf32>
    %c0_239 = arith.constant 0 : index
    %c0_240 = arith.constant 0 : index
    %528 = vector.load %arg19[%c0_239, %c0_240] : memref<128x128xf32, #tpu.memory_space<vmem>>, vector<128x128xf32>
    %cst_241 = arith.constant dense<0.000000e+00> : vector<2x128xf32>
    %529 = tpu.matmul %527, %528, %cst_241 {dimension_numbers = #tpu.dot_dimension_numbers<[1], [0], [0], [1], [0, 0, 1, 1], [], []>} : vector<2x128xf32>, vector<128x128xf32>, vector<2x128xf32> -> vector<2x128xf32>
    %c0_242 = arith.constant 0 : index
    %c0_243 = arith.constant 0 : index
    %530 = vector.load %arg20[%c0_242, %c0_243] : memref<1x128xf32, #tpu.memory_space<vmem>>, vector<1x128xf32>
    %531 = vector.broadcast %530 : vector<1x128xf32> to vector<2x128xf32>
    %532 = arith.addf %529, %531 : vector<2x128xf32>
    %c0_244 = arith.constant 0 : index
    %c0_245 = arith.constant 0 : index
    %533 = vector.load %arg21[%c0_244, %c0_245] : memref<2x128xf32, #tpu.memory_space<vmem>>, vector<2x128xf32>
    tpu.vector_store %arg21[%c0_244, %c0_245], %532 {strides = array<i32>} : memref<2x128xf32, #tpu.memory_space<vmem>>, vector<2x128xf32>,
    return
  }
}

</mosaic_0001>

<bundles_post_ra>
// kernel: vit_forward.1
= control target key start
LH: loop header
LB: loop body
LE: loop exit
PB: predicated region body
PF: predicated region fallthrough
CT: control target
= control target key end

     0   :  { %s7399_s0 = inlined_call_operand.vmem [shape: f32[48,48], index: 0, kind: input, shape index: {}]   ;;  %s7400_s1 = inlined_call_operand.vmem [shape: f32[48,32], index: 1, kind: input, shape index: {}]   ;;  %s7401_s2 = inlined_call_operand.vmem [shape: f32[48,32], index: 2, kind: input, shape index: {}]   ;;  %s7402_s3 = inlined_call_operand.vmem [shape: f32[2,1,32], index: 3, kind: input, shape index: {}]   ;;  %s7403_s4 = inlined_call_operand.vmem [shape: f32[2,1,32], index: 4, kind: input, shape index: {}]   ;;  %s7404_s5 = inlined_call_operand.vmem [shape: f32[2,32,96], index: 5, kind: input, shape index: {}]   ;;  %s7405_s6 = inlined_call_operand.vmem [shape: f32[2,1,96], index: 6, kind: input, shape index: {}]   ;;  %s7406_s7 = inlined_call_operand.vmem [shape: f32[2,32,32], index: 7, kind: input, shape index: {}]   ;;  %s7407_s8 = inlined_call_operand.vmem [shape: f32[2,1,32], index: 8, kind: input, shape index: {}]   ;;  %s7408_s9 = inlined_call_operand.vmem [shape: f32[2,1,32], index: 9, kind: input, shape index: {}]   ;;  %s7409_s10 = inlined_call_operand.vmem [shape: f32[2,1,32], index: 10, kind: input, shape index: {}]   ;;  %s7410_s11 = inlined_call_operand.vmem [shape: f32[2,32,128], index: 11, kind: input, shape index: {}]   ;;  %s7411_s12 = inlined_call_operand.vmem [shape: f32[2,1,128], index: 12, kind: input, shape index: {}]   ;;  %s7412_s13 = inlined_call_operand.vmem [shape: f32[2,128,32], index: 13, kind: input, shape index: {}]   ;;  %s7413_s14 = inlined_call_operand.vmem [shape: f32[2,1,32], index: 14, kind: input, shape index: {}]   ;;  %s7414_s15 = inlined_call_operand.vmem [shape: f32[1,32], index: 15, kind: input, shape index: {}]   ;;  %s7415_s16 = inlined_call_operand.vmem [shape: f32[1,32], index: 16, kind: input, shape index: {}]   ;;  %s7416_s17 = inlined_call_operand.vmem [shape: f32[32,128], index: 17, kind: input, shape index: {}]   ;;  %s7417_s18 = inlined_call_operand.vmem [shape: f32[1,128], index: 18, kind: input, shape index: {}]   ;;  %s7418_s19 = inlined_call_operand.vmem [shape: f32[128,128], index: 19, kind: input, shape index: {}]   ;;  %s7419_s20 = inlined_call_operand.vmem [shape: f32[1,128], index: 20, kind: input, shape index: {}]   ;;  %s7420_s21 = inlined_call_operand.hbm [shape: f32[2,128], index: 21, kind: output, shape index: {}]  }
   0x1   :  { %7451 = sst [smem:[#allocation7_spill]] %s7399_s0 }
   0x2   :  { %7452 = sst [smem:[#allocation8_spill]] %s7400_s1 }
   0x3   :  { %7453 = sst [smem:[#allocation9_spill]] %s7401_s2 }
   0x4   :  { %7454 = sst [smem:[#allocation10_spill]] %s7402_s3 }
   0x5   :  { %7455 = sst [smem:[#allocation11_spill]] %s7403_s4 }
   0x6   :  { %7456 = sst [smem:[#allocation12_spill]] %s7404_s5 }
   0x7   :  { %s7457_s26 = sld [smem:[#allocation9_spill]]  ;;  %vm87_vm0 = vcmask 392192  }
   0x8   :  { %s7458_s2 = sld [smem:[#allocation7_spill]] }
   0xd   :  { %v80_v0 = vld [vmem:[%s7457_s26 + $0x28] sm:$0xff]  ;;  %v79_v1 = vld [vmem:[%s7457_s26 + $0x20] sm:$0xff]  ;;  %v78_v2 = vld [vmem:[%s7457_s26 + $0x18] sm:$0xff] }
   0xe   :  { %116 = vmatpush.msra.mxu0 %v80_v0  ;;  %v77_v3 = vld [vmem:[%s7457_s26 + $0x10] sm:$0xff]  ;;  %v76_v4 = vld [vmem:[%s7457_s26 + $0x8] sm:$0xff]  ;;  %v75_v5 = vld [vmem:[%s7457_s26] sm:$0xff] }
   0xf   :  { %v69_v6 = vld [vmem:[%s7458_s2] sm:$0xff] }
  0x10   :  { %117 = vmatpush.msra.mxu0 %v79_v1 }
  0x12   :  { %118 = vmatpush.msra.mxu0 %v78_v2 }
  0x14   :  { %119 = vmatpush.msra.mxu0 %v77_v3 }
  0x16   :  { %120 = vmatpush.msra.mxu0 %v76_v4 }
  0x17   :  { %26 = vsyncpa [#allocation5], 0  ;;  %v70_v7 = vld [vmem:[%s7458_s2 + $0x8] sm:$0xff]  ;;  %v71_v8 = vld [vmem:[%s7458_s2 + $0x10] sm:$0xff]  ;;  %s7459_s0 = sld [smem:[#allocation8_spill]]  ;;  %vm141_vm1 = vcmask 261120  }
  0x18   :  { %121 = vmatpush.msra.mxu0 %v75_v5  ;;  %v5061_v24 = vmov 32.0   ;;  %v72_v29 = vld [vmem:[%s7458_s2 + $0x18] sm:$0xff]  ;;  %s7460_s27 = sld [smem:[#allocation12_spill]]  ;;  %v73_v59 = vld [vmem:[%s7458_s2 + $0x20] sm:$0xff]  ;;  %s7449_s25 = smov 96   ;;  %vm387_vm12 = vcmask 64512  }
  0x19   :  { %4392 = vmatmul.msk.f32.vlgmr.msra.gmra.mxu0 %vm87_vm0, %v69_v6  ;;  %4755 = vrcp.f32 %v5061_v24  ;;  %v74_v6 = vld [vmem:[%s7458_s2 + $0x28] sm:$0xff]  ;;  %s7461_s26 = sld [smem:[#allocation10_spill]]  ;;  %s5064_s3 = smov 88  }
  0x1a   :  { %s7462_s30 = sld [smem:[#allocation11_spill]]  ;;  %s7441_s28 = smov 72  }
  0x1b   :  { %s7433_s29 = smov 64   ;;  %s5067_s4 = smov 120  }
  0x1c   :  { %s7439_s2 = smov 112   ;;  %s7437_s5 = smov 104  }
  0x1d   :  { %v81_v9 = vld [vmem:[%s7459_s0] sm:$0xff]  ;;  %v82_v12 = vld [vmem:[%s7459_s0 + $0x8] sm:$0xff]  ;;  %v83_v17 = vld [vmem:[%s7459_s0 + $0x10] sm:$0xff]  ;;  %s7429_s22 = smov 56   ;;  %s7435_s23 = smov 40  }
  0x1e   :  { %v320_v47 = vld [vmem:[%s7460_s27 + $0x18] sm:$0xff]  ;;  %v319_v48 = vld [vmem:[%s7460_s27 + $0x10] sm:$0xff]  ;;  %v318_v49 = vld [vmem:[%s7460_s27 + $0x8] sm:$0xff]  ;;  %s7427_s1 = smov 48   ;;  %s7445_s24 = smov 8  }
  0x1f   :  { %v4756_v25 = vpop.eup %4755  ;;  %355 = vmatpush.msra.mxu1 %v320_v47  ;;  %v317_v50 = vld [vmem:[%s7460_s27] sm:$0xff]  ;;  %v84_v60 = vld [vmem:[%s7459_s0 + $0x18] sm:$0xff] }
  0x20   :  { %v179_v26 = vmul.f32 32.0, %v4756_v25  ;;  %vm183_vm2 = vweird.f32 %v4756_v25 }
  0x21   :  { %4393 = vmatmul.msk.f32.gmra.mxu0 %vm87_vm0, %v70_v7  ;;  %356 = vmatpush.msra.mxu1 %v319_v48 }
  0x22   :  { %v180_v27 = vsub.f32 1.0, %v179_v26 }
  0x23   :  { %357 = vmatpush.msra.mxu1 %v318_v49 }
  0x24   :  { %v181_v28 = vmul.f32 %v4756_v25, %v180_v27 }
  0x25   :  { %358 = vmatpush.msra.mxu1 %v317_v50 }
  0x26   :  { %v182_v30 = vadd.f32 %v4756_v25, %v181_v28 }
  0x28   :  { %v5237_v31 = vsel %vm183_vm2, %v4756_v25, %v182_v30  ;;  %vm426_vm2 = vcmask 195584  }
  0x29   :  { %4394 = vmatmul.msk.f32.gmra.mxu0 %vm87_vm0, %v71_v8 }
  0x31   :  { %4395 = vmatmul.msk.f32.gmra.mxu0 %vm87_vm0, %v72_v29 }
  0x39   :  { %4396 = vmatmul.msk.f32.gmra.mxu0 %vm87_vm0, %v73_v59 }
  0x41   :  { %4397 = vmatmul.msk.f32.gmra.mxu0 %vm87_vm0, %v74_v6 }
  0x96   :  { %v123_v10 = vpop.f32.mrf.mxu0 }
  0x97   :  { %v124_v11 = vadd.f32 %v123_v10, %v81_v9  ;;  %v5282_v9 = vld [vmem:[%s7461_s26] ss:$0 sm:$0xff] }
  0x99   :  { %142 = vst.msk [vmem:[#allocation2] sm:$0xff] %vm141_vm1, %v124_v11 }
  0x9e   :  { %v126_v13 = vpop.f32.mrf.mxu0 }
  0x9f   :  { %v127_v14 = vadd.f32 %v126_v13, %v82_v12  ;;  %v5288_v13 = vld [vmem:[%s7462_s30] ss:$0 sm:$0xff] }
  0xa0   :  { %v152_v15 = vld [vmem:[#allocation2] sm:$0xff] }
  0xa1   :  { %143 = vst.msk [vmem:[#allocation2 + $0x8] sm:$0xff] %vm141_vm1, %v127_v14  ;;  %v160_v16 = vsel %vm141_vm1, %v152_v15, 0.0 }
  0xa2   :  { %161 = vadd.xlane.f32.xlu0 %v160_v16 }
  0xa6   :  { %v129_v18 = vpop.f32.mrf.mxu0 }
  0xa7   :  { %v130_v19 = vadd.f32 %v129_v18, %v83_v17 }
  0xa8   :  { %v153_v20 = vld [vmem:[#allocation2 + $0x8] sm:$0xff] }
  0xa9   :  { %144 = vst.msk [vmem:[#allocation2 + $0x10] sm:$0xff] %vm141_vm1, %v130_v19  ;;  %v163_v21 = vsel %vm141_vm1, %v153_v20, 0.0 }
  0xaa   :  { %164 = vadd.xlane.f32.xlu0 %v163_v21 }
  0xae   :  { %v132_v61 = vpop.f32.mrf.mxu0 }
  0xaf   :  { %v133_v63 = vadd.f32 %v132_v61, %v84_v60 }
  0xb0   :  { %v154_v22 = vld [vmem:[#allocation2 + $0x10] sm:$0xff] }
  0xb1   :  { %v166_v23 = vsel %vm141_vm1, %v154_v22, 0.0  ;;  %145 = vst.msk [vmem:[#allocation2 + $0x18] sm:$0xff] %vm141_vm1, %v133_v63 }
  0xb2   :  { %167 = vadd.xlane.f32.xlu1 %v166_v23 }
  0xb8   :  { %v155_v14 = vld [vmem:[#allocation2 + $0x18] sm:$0xff] }
  0xb9   :  { %v169_v16 = vsel %vm141_vm1, %v155_v14, 0.0 }
 0x115   :  { %v162_v32 = vpop.xlane.xlu0 %161 }
 0x116   :  { %v185_v33 = vmul.f32 %v5237_v31, %v162_v32 }
 0x118   :  { %v191_v34 = vsub.f32 %v152_v15, %v185_v33 }
 0x11a   :  { %v197_v35 = vmul.f32 %v191_v34, %v191_v34 }
 0x11c   :  { %v203_v36 = vsel %vm141_vm1, %v197_v35, 0.0 }
 0x11d   :  { %204 = vadd.xlane.f32.xlu1 %v203_v36  ;;  %v165_v37 = vpop.xlane.xlu0 %164  ;;  %v85_v36 = vld [vmem:[%s7459_s0 + $0x20] sm:$0xff] }
 0x11e   :  { %v186_v38 = vmul.f32 %v5237_v31, %v165_v37  ;;  %v135_v37 = vpop.f32.mrf.mxu0 }
 0x120   :  { %v5242_v39 = vsub.f32 %v153_v20, %v186_v38  ;;  %v136_v38 = vadd.f32 %v135_v37, %v85_v36 }
 0x122   :  { %v198_v40 = vmul.f32 %v5242_v39, %v5242_v39  ;;  %146 = vst.msk [vmem:[#allocation2 + $0x20] sm:$0xff] %vm141_vm1, %v136_v38 }
 0x124   :  { %v206_v41 = vsel %vm141_vm1, %v198_v40, 0.0 }
 0x125   :  { %v168_v42 = vpop.xlane.xlu1 %167  ;;  %207 = vadd.xlane.f32.xlu2 %v206_v41  ;;  %170 = vadd.xlane.f32.xlu1 %v169_v16 }
 0x126   :  { %v187_v43 = vmul.f32 %v5237_v31, %v168_v42  ;;  %v138_v40 = vpop.f32.mrf.mxu0  ;;  %v5312_v42 = vld [vmem:[%s7405_s6] ss:$0 sm:$0xff] }
 0x128   :  { %v5248_v44 = vsub.f32 %v154_v22, %v187_v43 }
 0x12a   :  { %v199_v45 = vmul.f32 %v5248_v44, %v5248_v44 }
 0x12c   :  { %v209_v46 = vsel %vm141_vm1, %v199_v45, 0.0 }
 0x12d   :  { %210 = vadd.xlane.f32.xlu2 %v209_v46 }
 0x190   :  { %v205_v51 = vpop.xlane.xlu1 %204 }
 0x191   :  { %v221_v52 = vmul.f32 %v205_v51, %v5237_v31 }
 0x193   :  { %v227_v53 = vadd.f32 1e-06, %v221_v52 }
 0x195   :  { %4757 = vrsqrt.f32 %v227_v53  ;;  %vm239_vm4 = vweird.f32 %v227_v53 }
 0x198   :  { %v208_v54 = vpop.xlane.xlu2 %207  ;;  %v171_v49 = vpop.xlane.xlu1 %170 }
 0x199   :  { %v222_v55 = vmul.f32 %v208_v54, %v5237_v31  ;;  %v188_v50 = vmul.f32 %v5237_v31, %v171_v49 }
 0x19b   :  { %v4758_v56 = vpop.eup %4757  ;;  %v228_v57 = vadd.f32 1e-06, %v222_v55  ;;  %v194_v51 = vsub.f32 %v155_v14, %v188_v50 }
 0x19c   :  { %v234_v58 = vmul.f32 %v4758_v56, %v227_v53  ;;  %vm240_vm3 = vweird.f32 %v4758_v56 }
 0x19d   :  { %4759 = vrsqrt.f32 %v228_v57  ;;  %vm241_vm5 = vmor %vm239_vm4, %vm240_vm3  ;;  %vm249_vm7 = vweird.f32 %v228_v57  ;;  %v200_v52 = vmul.f32 %v194_v51, %v194_v51 }
 0x19e   :  { %v235_v62 = vmul.f32 %v4758_v56, %v234_v58 }
 0x19f   :  { %v212_v53 = vsel %vm141_vm1, %v200_v52, 0.0 }
 0x1a0   :  { %v236_v0 = vmul.f32 0.5, %v235_v62  ;;  %v211_v1 = vpop.xlane.xlu2 %210 }
 0x1a1   :  { %v223_v2 = vmul.f32 %v211_v1, %v5237_v31 }
 0x1a2   :  { %v237_v3 = vsub.f32 1.5, %v236_v0 }
 0x1a3   :  { %v4760_v4 = vpop.eup %4759  ;;  %v229_v5 = vadd.f32 1e-06, %v223_v2 }
 0x1a4   :  { %v238_v7 = vmul.f32 %v4758_v56, %v237_v3  ;;  %v244_v8 = vmul.f32 %v4760_v4, %v228_v57  ;;  %vm250_vm6 = vweird.f32 %v4760_v4 }
 0x1a5   :  { %4761 = vrsqrt.f32 %v229_v5  ;;  %vm251_vm8 = vmor %vm249_vm7, %vm250_vm6  ;;  %vm259_vm10 = vweird.f32 %v229_v5 }
 0x1a6   :  { %v245_v10 = vmul.f32 %v4760_v4, %v244_v8  ;;  %v242_v11 = vsel %vm241_vm5, %v4758_v56, %v238_v7  ;;  %v156_v56 = vld [vmem:[#allocation2 + $0x20] sm:$0xff] }
 0x1a7   :  { %v293_v12 = vmul.f32 %v242_v11, %v191_v34  ;;  %v172_v57 = vsel %vm141_vm1, %v156_v56, 0.0 }
 0x1a8   :  { %v246_v15 = vmul.f32 0.5, %v245_v10 }
 0x1a9   :  { %v302_v17 = vmul.f32 %v5282_v9, %v293_v12 }
 0x1aa   :  { %v247_v18 = vsub.f32 1.5, %v246_v15 }
 0x1ab   :  { %v4762_v19 = vpop.eup %4761  ;;  %v311_v20 = vadd.f32 %v5288_v13, %v302_v17 }
 0x1ac   :  { %v248_v21 = vmul.f32 %v4760_v4, %v247_v18  ;;  %v254_v22 = vmul.f32 %v4762_v19, %v229_v5  ;;  %vm260_vm9 = vweird.f32 %v4762_v19 }
 0x1ad   :  { %4398 = vmatmul.msk.f32.vlgmr.msra.gmra.mxu1 %vm141_vm1, %v311_v20  ;;  %vm261_vm11 = vmor %vm259_vm10, %vm260_vm9 }
 0x1ae   :  { %v255_v23 = vmul.f32 %v4762_v19, %v254_v22  ;;  %v252_v24 = vsel %vm251_vm8, %v4760_v4, %v248_v21 }
 0x1af   :  { %v294_v25 = vmul.f32 %v252_v24, %v5242_v39  ;;  %v86_v39 = vld [vmem:[%s7459_s0 + $0x28] sm:$0xff]  ;;  %s7447_s0 = smov 80  }
 0x1b0   :  { %v256_v26 = vmul.f32 0.5, %v255_v23  ;;  %v139_v41 = vadd.f32 %v138_v40, %v86_v39 }
 0x1b1   :  { %v303_v27 = vmul.f32 %v5282_v9, %v294_v25 }
 0x1b2   :  { %v257_v28 = vsub.f32 1.5, %v256_v26  ;;  %147 = vst.msk [vmem:[#allocation2 + $0x28] sm:$0xff] %vm141_vm1, %v139_v41  ;;  %v148_v26 = vlaneseq }
 0x1b3   :  { %v312_v29 = vadd.f32 %v5288_v13, %v303_v27 }
 0x1b4   :  { %v258_v30 = vmul.f32 %v4762_v19, %v257_v28  ;;  %v149_v27 = vand.u32 127, %v148_v26 }
 0x1b5   :  { %4399 = vmatmul.msk.f32.gmra.mxu1 %vm141_vm1, %v312_v29  ;;  %v5069_v29 = vmov -1e+30  }
 0x1b6   :  { %v262_v32 = vsel %vm261_vm11, %v4762_v19, %v258_v30  ;;  %vm150_vm0 = vcmp.lt.s32.totalorder %v149_v27, 17 }
 0x1b7   :  { %v295_v33 = vmul.f32 %v262_v32, %v5248_v44  ;;  %v5400_v30 = vsel %vm150_vm0, 0.0, %v5069_v29 }
 0x1b9   :  { %v304_v34 = vmul.f32 %v5282_v9, %v295_v33  ;;  %v157_v54 = vld [vmem:[#allocation2 + $0x28] sm:$0xff] }
 0x1ba   :  { %v175_v55 = vsel %vm141_vm1, %v157_v54, 0.0 }
 0x1bb   :  { %v313_v35 = vadd.f32 %v5288_v13, %v304_v34 }
 0x1bd   :  { %4400 = vmatmul.msk.f32.gmra.mxu1 %vm141_vm1, %v313_v35 }
 0x22a   :  { %v360_v43 = vpop.f32.mrf.mxu1 }
 0x22b   :  { %v5316_v44 = vadd.f32 %v5312_v42, %v360_v43 }
 0x22d   :  { %381 = vrot.lane.b32.xlu1 %v5316_v44, %s7449_s25 }
 0x232   :  { %v363_v45 = vpop.f32.mrf.mxu1 }
 0x233   :  { %v5321_v46 = vadd.f32 %v5312_v42, %v363_v45 }
 0x235   :  { %383 = vrot.lane.b32.xlu2 %v5321_v46, %s7449_s25 }
 0x23a   :  { %v366_v47 = vpop.f32.mrf.mxu1 }
 0x23b   :  { %v5326_v48 = vadd.f32 %v5312_v42, %v366_v47 }
 0x23d   :  { %385 = vrot.lane.b32.xlu0 %v5326_v48, %s7449_s25  ;;  %v5388_v25 = vpack.i.bf16 %v5321_v46, %v5326_v48 }
 0x257   :  { %213 = vadd.xlane.f32.xlu1 %v212_v53 }
 0x25e   :  { %176 = vadd.xlane.f32.xlu2 %v175_v55 }
 0x267   :  { %173 = vadd.xlane.f32.xlu0 %v172_v57 }
 0x270   :  { %734 = vrot.lane.b32.xlu1 %v5316_v44, %s7447_s0 }
 0x278   :  { %556 = vrot.lane.b32.xlu1 %v5326_v48, %s5064_s3 }
 0x280   :  { %920 = vrot.lane.b32.xlu1 %v5326_v48, %s7441_s28 }
 0x28f   :  { %v384_v59 = vpop.permute.xlu2 %383 }
 0x29f   :  { %v382_v60 = vpop.permute.xlu1 %381 }
 0x2af   :  { %v386_v58 = vpop.permute.xlu0 %385 }
 0x2b0   :  { %4404 = vmatpush.xpose.msk.msra.mxu2 %vm387_vm12, %v386_v58 }
 0x2b4   :  { %4405 = vmatpush.xpose.msk.msra.mxu2 %vm387_vm12, %v384_v59 }
 0x2b8   :  { %4406 = vmatpush.xpose.msk.msra.mxu2 %vm387_vm12, %v382_v60 }
 0x2bb   :  { %4407 = vmatmul.msk.f32.vlgmr.msra.gmra.mxu2 %vm387_vm12, %v5316_v44 }
 0x2c3   :  { %4408 = vmatmul.msk.f32.gmra.mxu2 %vm387_vm12, %v5321_v46 }
 0x2ca   :  { %v214_v61 = vpop.xlane.xlu1 %213 }
 0x2cb   :  { %v224_v62 = vmul.f32 %v214_v61, %v5237_v31  ;;  %4409 = vmatmul.msk.f32.gmra.mxu2 %vm387_vm12, %v5326_v48 }
 0x2cd   :  { %v230_v63 = vadd.f32 1e-06, %v224_v62 }
 0x2cf   :  { %4763 = vrsqrt.f32 %v230_v63  ;;  %vm269_vm13 = vweird.f32 %v230_v63 }
 0x2d1   :  { %v177_v0 = vpop.xlane.xlu2 %176 }
 0x2d2   :  { %v190_v1 = vmul.f32 %v5237_v31, %v177_v0 }
 0x2d4   :  { %v5351_v2 = vsub.f32 %v157_v54, %v190_v1 }
 0x2d5   :  { %v4764_v3 = vpop.eup %4763 }
 0x2d6   :  { %v264_v4 = vmul.f32 %v4764_v3, %v230_v63  ;;  %v202_v5 = vmul.f32 %v5351_v2, %v5351_v2  ;;  %vm270_vm14 = vweird.f32 %v4764_v3 }
 0x2d7   :  { %vm271_vm15 = vmor %vm269_vm13, %vm270_vm14 }
 0x2d8   :  { %v265_v6 = vmul.f32 %v4764_v3, %v264_v4  ;;  %v218_v7 = vsel %vm141_vm1, %v202_v5, 0.0 }
 0x2d9   :  { %219 = vadd.xlane.f32.xlu2 %v218_v7 }
 0x2da   :  { %v266_v8 = vmul.f32 0.5, %v265_v6  ;;  %v174_v10 = vpop.xlane.xlu0 %173 }
 0x2db   :  { %v189_v11 = vmul.f32 %v5237_v31, %v174_v10 }
 0x2dc   :  { %v267_v12 = vsub.f32 1.5, %v266_v8 }
 0x2dd   :  { %v5357_v14 = vsub.f32 %v156_v56, %v189_v11 }
 0x2de   :  { %v268_v15 = vmul.f32 %v4764_v3, %v267_v12 }
 0x2df   :  { %v201_v16 = vmul.f32 %v5357_v14, %v5357_v14 }
 0x2e0   :  { %v272_v17 = vsel %vm271_vm15, %v4764_v3, %v268_v15 }
 0x2e1   :  { %v215_v18 = vsel %vm141_vm1, %v201_v16, 0.0  ;;  %v296_v19 = vmul.f32 %v272_v17, %v194_v51 }
 0x2e2   :  { %v5362_v20 = vpop.permute.xlu1 %734  ;;  %216 = vadd.xlane.f32.xlu0 %v215_v18 }
 0x2e3   :  { %v305_v21 = vmul.f32 %v5282_v9, %v296_v19 }
 0x2e5   :  { %v314_v22 = vadd.f32 %v5288_v13, %v305_v21 }
 0x2e7   :  { %4401 = vmatmul.msk.f32.gmra.mxu1 %vm141_vm1, %v314_v22 }
 0x2ea   :  { %v5367_v23 = vpop.permute.xlu1 %556 }
 0x2f1   :  { %554 = vrot.lane.b32.xlu2 %v5321_v46, %s5064_s3 }
 0x2f2   :  { %v921_v24 = vpop.permute.xlu1 %920 }
 0x2f3   :  { %4431 = vmatpush.xpose.msk.msrb.mxu0 %vm387_vm12, %v921_v24 }
 0x2f6   :  { %454 = vrot.lane.b32.xlu0 %v5316_v44, %s7433_s29 }
 0x2f9   :  { %546 = vrot.lane.b32.xlu2 %v5316_v44, %s5067_s4 }
 0x2fe   :  { %552 = vrot.lane.b32.xlu0 %v5316_v44, %s5064_s3 }
 0x301   :  { %736 = vrot.lane.b32.xlu2 %v5321_v46, %s7447_s0 }
 0x306   :  { %548 = vrot.lane.b32.xlu0 %v5321_v46, %s5067_s4 }
 0x309   :  { %916 = vrot.lane.b32.xlu2 %v5316_v44, %s7441_s28 }
 0x30e   :  { %918 = vrot.lane.b32.xlu0 %v5321_v46, %s7441_s28 }
 0x311   :  { %4636 = vrot.lane.b32.xlu2 %v5388_v25, %s7433_s29 }
 0x316   :  { %728 = vrot.lane.b32.xlu0 %v5316_v44, %s7439_s2 }
 0x319   :  { %550 = vrot.lane.b32.xlu2 %v5326_v48, %s5067_s4 }
 0x31e   :  { %738 = vrot.lane.b32.xlu0 %v5326_v48, %s7447_s0 }
 0x321   :  { %730 = vrot.lane.b32.xlu2 %v5321_v46, %s7439_s2 }
 0x33e   :  { %v417_v28 = vpop.f32.mrf.mxu2 }
 0x33f   :  { %v5403_v32 = vadd.f32 %v417_v28, %v5400_v30 }
 0x341   :  { %v427_v35 = vsel %vm426_vm2, %v5403_v32, -inf }
 0x346   :  { %v420_v33 = vpop.f32.mrf.mxu2 }
 0x347   :  { %v5406_v34 = vadd.f32 %v420_v33, %v5400_v30 }
 0x348   :  { %428 = vmax.xlane.f32.xlu0 %v427_v35 }
 0x349   :  { %v430_v36 = vsel %vm426_vm2, %v5406_v34, -inf }
 0x34a   :  { %431 = vmax.xlane.f32.xlu1 %v430_v36 }
 0x34c   :  { %v220_v37 = vpop.xlane.xlu2 %219 }
 0x34d   :  { %v226_v38 = vmul.f32 %v220_v37, %v5237_v31 }
 0x34e   :  { %v423_v39 = vpop.f32.mrf.mxu2 }
 0x34f   :  { %v232_v40 = vadd.f32 1e-06, %v226_v38  ;;  %v5414_v41 = vadd.f32 %v423_v39, %v5400_v30 }
 0x351   :  { %4765 = vrsqrt.f32 %v232_v40  ;;  %v433_v43 = vsel %vm426_vm2, %v5414_v41, -inf  ;;  %vm289_vm7 = vweird.f32 %v232_v40 }
 0x352   :  { %434 = vmax.xlane.f32.xlu1 %v433_v43 }
 0x354   :  { %v555_v45 = vpop.permute.xlu2 %554 }
 0x355   :  { %v217_v47 = vpop.xlane.xlu0 %216 }
 0x356   :  { %v225_v49 = vmul.f32 %v217_v47, %v5237_v31 }
 0x357   :  { %v4766_v50 = vpop.eup %4765 }
 0x358   :  { %v231_v51 = vadd.f32 1e-06, %v225_v49  ;;  %v284_v52 = vmul.f32 %v4766_v50, %v232_v40  ;;  %vm290_vm4 = vweird.f32 %v4766_v50 }
 0x359   :  { %vm291_vm8 = vmor %vm289_vm7, %vm290_vm4 }
 0x35a   :  { %4767 = vrsqrt.f32 %v231_v51  ;;  %v285_v54 = vmul.f32 %v4766_v50, %v284_v52  ;;  %vm279_vm5 = vweird.f32 %v231_v51 }
 0x35c   :  { %912 = vrot.lane.b32.xlu0 %v5321_v46, %s7437_s5  ;;  %v5421_v53 = vpop.permute.xlu2 %546  ;;  %v286_v56 = vmul.f32 0.5, %v285_v54 }
 0x35e   :  { %v287_v60 = vsub.f32 1.5, %v286_v56 }
 0x360   :  { %v4768_v55 = vpop.eup %4767  ;;  %v288_v0 = vmul.f32 %v4766_v50, %v287_v60 }
 0x361   :  { %v274_v57 = vmul.f32 %v4768_v55, %v231_v51  ;;  %vm280_vm3 = vweird.f32 %v4768_v55 }
 0x362   :  { %vm281_vm6 = vmor %vm279_vm5, %vm280_vm3  ;;  %v292_v5 = vsel %vm291_vm8, %v4766_v50, %v288_v0 }
 0x363   :  { %v275_v58 = vmul.f32 %v4768_v55, %v274_v57  ;;  %v298_v10 = vmul.f32 %v292_v5, %v5351_v2 }
 0x364   :  { %732 = vrot.lane.b32.xlu0 %v5326_v48, %s7439_s2  ;;  %v737_v59 = vpop.permute.xlu2 %736  ;;  %v369_v36 = vpop.f32.mrf.mxu1 }
 0x365   :  { %v276_v61 = vmul.f32 0.5, %v275_v58  ;;  %v307_v12 = vmul.f32 %v5282_v9, %v298_v10  ;;  %v5473_v40 = vadd.f32 %v5312_v42, %v369_v36 }
 0x367   :  { %v277_v62 = vsub.f32 1.5, %v276_v61  ;;  %v316_v18 = vadd.f32 %v5288_v13, %v307_v12 }
 0x368   :  { %v455_v63 = vpop.permute.xlu0 %454 }
 0x369   :  { %v278_v1 = vmul.f32 %v4768_v55, %v277_v62 }
 0x36b   :  { %910 = vrot.lane.b32.xlu1 %v5316_v44, %s7437_s5  ;;  %v282_v46 = vsel %vm281_vm6, %v4768_v55, %v278_v1 }
 0x36c   :  { %v917_v3 = vpop.permute.xlu2 %916  ;;  %v297_v4 = vmul.f32 %v282_v46, %v5357_v14 }
 0x36e   :  { %v306_v6 = vmul.f32 %v5282_v9, %v297_v4 }
 0x370   :  { %v553_v7 = vpop.permute.xlu0 %552  ;;  %v315_v8 = vadd.f32 %v5288_v13, %v306_v6 }
 0x372   :  { %4402 = vmatmul.msk.f32.gmra.mxu1 %vm141_vm1, %v315_v8 }
 0x374   :  { %v4637_v11 = vpop.permute.xlu2 %4636 }
 0x375   :  { %v4638_v15 = vunpack.i.l.bf16 %v4637_v11  ;;  %v4639_v16 = vunpack.i.h.bf16 %v4637_v11 }
 0x377   :  { %485 = vmatpush.msra.mxu3 %v4638_v15 }
 0x378   :  { %v549_v17 = vpop.permute.xlu0 %548 }
 0x379   :  { %486 = vmatpush.msra.mxu3 %v4639_v16 }
 0x37a   :  { %4403 = vmatmul.msk.f32.gmra.mxu1 %vm141_vm1, %v316_v18 }
 0x37b   :  { %487 = vmatpush.msra.mxu3 %v455_v63 }
 0x37c   :  { %v551_v37 = vpop.permute.xlu2 %550 }
 0x37d   :  { %4413 = vmatpush.xpose.msk.msrb.mxu3 %vm387_vm12, %v5367_v23 }
 0x380   :  { %v919_v14 = vpop.permute.xlu0 %918 }
 0x381   :  { %4414 = vmatpush.xpose.msk.msrb.mxu3 %vm387_vm12, %v555_v45  ;;  %4432 = vmatpush.xpose.msk.msrb.mxu0 %vm387_vm12, %v919_v14 }
 0x384   :  { %v731_v43 = vpop.permute.xlu2 %730 }
 0x385   :  { %4415 = vmatpush.xpose.msk.msrb.mxu3 %vm387_vm12, %v553_v7  ;;  %4433 = vmatpush.xpose.msk.msrb.mxu0 %vm387_vm12, %v917_v3 }
 0x388   :  { %v729_v9 = vpop.permute.xlu0 %728 }
 0x390   :  { %v739_v2 = vpop.permute.xlu0 %738 }
 0x3bb   :  { %v429_v19 = vpop.xlane.xlu0 %428 }
 0x3bc   :  { %v436_v13 = vsub.f32 %v5403_v32, %v429_v19 }
 0x3bd   :  { %v432_v21 = vpop.xlane.xlu1 %431 }
 0x3be   :  { %v439_v22 = vmul.f32 1.442695, %v436_v13  ;;  %v437_v24 = vsub.f32 %v5406_v34, %v432_v21 }
 0x3c0   :  { %4769 = vpow2.f32 %v439_v22  ;;  %v441_v23 = vmul.f32 1.442695, %v437_v24 }
 0x3c2   :  { %4771 = vpow2.f32 %v441_v23 }
 0x3c5   :  { %v435_v26 = vpop.xlane.xlu1 %434 }
 0x3c6   :  { %v5443_v27 = vpop.eup %4769  ;;  %v438_v28 = vsub.f32 %v5414_v41, %v435_v26 }
 0x3c7   :  { %4410 = vmatmul.msk.f32.vlgmr.msra.gmra.mxu3 %vm426_vm2, %v5443_v27 }
 0x3c8   :  { %4422 = vmatpush.xpose.msk.msra.mxu3 %vm387_vm12, %v739_v2  ;;  %v443_v29 = vmul.f32 1.442695, %v438_v28  ;;  %v5450_v32 = vpop.eup %4771 }
 0x3ca   :  { %4773 = vpow2.f32 %v443_v29 }
 0x3cc   :  { %4423 = vmatpush.xpose.msk.msra.mxu3 %vm387_vm12, %v737_v59 }
 0x3ce   :  { %v913_v35 = vpop.permute.xlu0 %912 }
 0x3cf   :  { %4411 = vmatmul.msk.f32.gmra.mxu3 %vm426_vm2, %v5450_v32 }
 0x3d0   :  { %4424 = vmatpush.xpose.msk.msra.mxu3 %vm387_vm12, %v5362_v20  ;;  %v5456_v33 = vpop.eup %4773 }
 0x3d7   :  { %4412 = vmatmul.msk.f32.gmra.mxu3 %vm426_vm2, %v5456_v33 }
 0x3dd   :  { %v911_v34 = vpop.permute.xlu1 %910 }
 0x3de   :  { %4434 = vmatmul.msk.f32.vlgmr.msrb.gmra.mxu0 %vm387_vm12, %v911_v34 }
 0x3df   :  { %4416 = vmatmul.msk.f32.vlgmr.msrb.gmra.mxu3 %vm387_vm12, %v5421_v53 }
 0x3e6   :  { %4435 = vmatmul.msk.f32.gmra.mxu0 %vm387_vm12, %v913_v35 }
 0x3e7   :  { %4417 = vmatmul.msk.f32.gmra.mxu3 %vm387_vm12, %v549_v17 }
 0x3ef   :  { %v372_v38 = vpop.f32.mrf.mxu1  ;;  %4418 = vmatmul.msk.f32.gmra.mxu3 %vm387_vm12, %v551_v37 }
 0x3f0   :  { %v5467_v20 = vadd.f32 %v5312_v42, %v372_v38 }
 0x3f2   :  { %1266 = vrot.lane.b32.xlu0 %v5467_v20, %s5064_s3 }
 0x3f7   :  { %v375_v39 = vpop.f32.mrf.mxu1  ;;  %4425 = vmatmul.msk.f32.vlgmr.msra.gmra.mxu3 %vm387_vm12, %v729_v9 }
 0x3f8   :  { %v5476_v41 = vadd.f32 %v5312_v42, %v375_v39  ;;  %v733_v42 = vpop.permute.xlu0 %732 }
 0x3fa   :  { %1258 = vrot.lane.b32.xlu0 %v5473_v40, %s5067_s4  ;;  %1268 = vrot.lane.b32.xlu2 %v5476_v41, %s5064_s3  ;;  %v5533_v47 = vpack.i.bf16 %v5467_v20, %v5476_v41 }
 0x3fb   :  { %1099 = vrot.lane.b32.xlu1 %v5476_v41, %s7449_s25 }
 0x3ff   :  { %4426 = vmatmul.msk.f32.gmra.mxu3 %vm387_vm12, %v731_v43 }
 0x402   :  { %1630 = vrot.lane.b32.xlu0 %v5476_v41, %s7441_s28  ;;  %1097 = vrot.lane.b32.xlu2 %v5467_v20, %s7449_s25 }
 0x403   :  { %914 = vrot.lane.b32.xlu1 %v5326_v48, %s7437_s5  ;;  %v4645_v48 = vpack.i.bf16 %v5476_v41, %v5316_v44 }
 0x407   :  { %4427 = vmatmul.msk.f32.gmra.mxu3 %vm387_vm12, %v733_v42 }
 0x40a   :  { %1628 = vrot.lane.b32.xlu0 %v5467_v20, %s7441_s28  ;;  %1264 = vrot.lane.b32.xlu2 %v5473_v40, %s5064_s3 }
 0x40b   :  { %1095 = vrot.lane.b32.xlu1 %v5473_v40, %s7449_s25 }
 0x412   :  { %1439 = vrot.lane.b32.xlu0 %v5473_v40, %s7439_s2  ;;  %1449 = vrot.lane.b32.xlu2 %v5476_v41, %s7447_s0 }
 0x413   :  { %1260 = vrot.lane.b32.xlu1 %v5467_v20, %s5067_s4 }
 0x41a   :  { %1622 = vrot.lane.b32.xlu0 %v5467_v20, %s7437_s5  ;;  %1447 = vrot.lane.b32.xlu2 %v5467_v20, %s7447_s0 }
 0x41b   :  { %1262 = vrot.lane.b32.xlu1 %v5476_v41, %s5067_s4 }
 0x422   :  { %1626 = vrot.lane.b32.xlu2 %v5473_v40, %s7441_s28  ;;  %s7481_s28 = smov 48  }
 0x423   :  { %1445 = vrot.lane.b32.xlu1 %v5473_v40, %s7447_s0  ;;  %s7474_s0 = smov 80  }
 0x42a   :  { %1441 = vrot.lane.b32.xlu2 %v5467_v20, %s7439_s2 }
 0x42b   :  { %1620 = vrot.lane.b32.xlu1 %v5473_v40, %s7437_s5 }
 0x432   :  { %1624 = vrot.lane.b32.xlu2 %v5476_v41, %s7437_s5  ;;  %s7475_s5 = smov 72  }
 0x433   :  { %1443 = vrot.lane.b32.xlu1 %v5476_v41, %s7439_s2  ;;  %s7482_s2 = smov 8  }
 0x43b   :  { %4641 = vrot.lane.b32.xlu1 %v5388_v25, %s7429_s22 }
 0x443   :  { %4646 = vrot.lane.b32.xlu1 %v4645_v48, %s7429_s22 }
 0x44a   :  { %v5588_v9 = vpop.f32.mrf.mxu3 }
 0x44b   :  { %4656 = vrot.lane.b32.xlu1 %v4645_v48, %s7435_s23 }
 0x452   :  { %v5590_v2 = vpop.f32.mrf.mxu3 }
 0x453   :  { %805 = vrot.lane.b32.xlu1 %v5316_v44, %s7427_s1 }
 0x454   :  { %v1269_v45 = vpop.permute.xlu2 %1268 }
 0x455   :  { %4449 = vmatpush.xpose.msk.msra.mxu0 %vm387_vm12, %v1269_v45 }
 0x45a   :  { %v5596_v22 = vpop.f32.mrf.mxu3 }
 0x45b   :  { %4671 = vrot.lane.b32.xlu1 %v5533_v47, %s7433_s29  ;;  %v951_v49 = vpop.f32.mrf.mxu0 }
 0x45c   :  { %v5538_v50 = vadd.f32 %v951_v49, %v5400_v30  ;;  %v1098_v51 = vpop.permute.xlu2 %1097 }
 0x45e   :  { %v960_v52 = vsel %vm426_vm2, %v5538_v50, -inf }
 0x45f   :  { %961 = vmax.xlane.f32.xlu0 %v960_v52 }
 0x462   :  { %v587_v37 = vpop.f32.mrf.mxu3 }
 0x463   :  { %v954_v44 = vpop.f32.mrf.mxu0 }
 0x464   :  { %v5543_v53 = vadd.f32 %v954_v44, %v5400_v30  ;;  %v1267_v54 = vpop.permute.xlu0 %1266  ;;  %v1265_v55 = vpop.permute.xlu2 %1264 }
 0x465   :  { %4450 = vmatpush.xpose.msk.msra.mxu0 %vm387_vm12, %v1267_v54 }
 0x466   :  { %v963_v56 = vsel %vm426_vm2, %v5543_v53, -inf }
 0x467   :  { %964 = vmax.xlane.f32.xlu2 %v963_v56 }
 0x469   :  { %4451 = vmatpush.xpose.msk.msra.mxu0 %vm387_vm12, %v1265_v55 }
 0x46a   :  { %v590_v43 = vpop.f32.mrf.mxu3 }
 0x46c   :  { %v1259_v57 = vpop.permute.xlu0 %1258  ;;  %v1450_v58 = vpop.permute.xlu2 %1449 }
 0x46d   :  { %v1100_v59 = vpop.permute.xlu1 %1099 }
 0x46e   :  { %4440 = vmatpush.xpose.msk.msrb.mxu3 %vm387_vm12, %v1100_v59 }
 0x472   :  { %4441 = vmatpush.xpose.msk.msrb.mxu3 %vm387_vm12, %v1098_v51  ;;  %v593_v52 = vpop.f32.mrf.mxu3 }
 0x473   :  { %4651 = vrot.lane.b32.xlu0 %v5388_v25, %s7435_s23 }
 0x474   :  { %v1631_v60 = vpop.permute.xlu0 %1630  ;;  %v1448_v62 = vpop.permute.xlu2 %1447 }
 0x475   :  { %v915_v61 = vpop.permute.xlu1 %914  ;;  %4467 = vmatpush.xpose.msk.msrb.mxu0 %vm387_vm12, %v1631_v60 }
 0x476   :  { %4436 = vmatmul.msk.f32.gmra.mxu0 %vm387_vm12, %v915_v61 }
 0x47b   :  { %1166 = vrot.lane.b32.xlu0 %v5473_v40, %s7433_s29  ;;  %s7477_s29 = smov 104  }
 0x47c   :  { %v1629_v63 = vpop.permute.xlu0 %1628  ;;  %v1627_v1 = vpop.permute.xlu2 %1626 }
 0x47d   :  { %v1096_v0 = vpop.permute.xlu1 %1095  ;;  %4468 = vmatpush.xpose.msk.msrb.mxu0 %vm387_vm12, %v1629_v63 }
 0x47e   :  { %4442 = vmatpush.xpose.msk.msrb.mxu3 %vm387_vm12, %v1096_v0  ;;  %4452 = vmatmul.msk.f32.vlgmr.msra.gmra.mxu0 %vm387_vm12, %v1259_v57  ;;  %v769_v57 = vpop.f32.mrf.mxu3 }
 0x47f   :  { %4661 = vrot.lane.b32.xlu2 %v5388_v25, %s7427_s1 }
 0x481   :  { %4443 = vmatmul.msk.f32.vlgmr.msrb.gmra.mxu3 %vm387_vm12, %v5473_v40  ;;  %4469 = vmatpush.xpose.msk.msrb.mxu0 %vm387_vm12, %v1627_v1  ;;  %v5623_v1 = vadd.f32 %v587_v37, %v5400_v30 }
 0x482   :  { %4458 = vmatpush.xpose.msk.msra.mxu3 %vm387_vm12, %v1450_v58  ;;  %v4665_v58 = vpack.i.bf16 %v5473_v40, %v5467_v20 }
 0x484   :  { %v1440_v4 = vpop.permute.xlu0 %1439  ;;  %v1442_v6 = vpop.permute.xlu2 %1441 }
 0x485   :  { %v1261_v46 = vpop.permute.xlu1 %1260 }
 0x486   :  { %4459 = vmatpush.xpose.msk.msra.mxu3 %vm387_vm12, %v1448_v62  ;;  %4453 = vmatmul.msk.f32.gmra.mxu0 %vm387_vm12, %v1261_v46  ;;  %v772_v59 = vpop.f32.mrf.mxu3 }
 0x489   :  { %4444 = vmatmul.msk.f32.gmra.mxu3 %vm387_vm12, %v5467_v20 }
 0x48c   :  { %v1623_v7 = vpop.permute.xlu0 %1622  ;;  %v1625_v10 = vpop.permute.xlu2 %1624 }
 0x48d   :  { %v1263_v3 = vpop.permute.xlu1 %1262 }
 0x48e   :  { %4454 = vmatmul.msk.f32.gmra.mxu0 %vm387_vm12, %v1263_v3  ;;  %v775_v61 = vpop.f32.mrf.mxu3 }
 0x491   :  { %4445 = vmatmul.msk.f32.gmra.mxu3 %vm387_vm12, %v5476_v41 }
 0x495   :  { %v1446_v25 = vpop.permute.xlu1 %1445 }
 0x496   :  { %4460 = vmatpush.xpose.msk.msra.mxu3 %vm387_vm12, %v1446_v25 }
 0x499   :  { %4461 = vmatmul.msk.f32.vlgmr.msra.gmra.mxu3 %vm387_vm12, %v1440_v4  ;;  %v596_v4 = vsel %vm426_vm2, %v5623_v1, -inf }
 0x49d   :  { %v1621_v5 = vpop.permute.xlu1 %1620 }
 0x49e   :  { %4470 = vmatmul.msk.f32.vlgmr.msrb.gmra.mxu0 %vm387_vm12, %v1621_v5  ;;  %v5633_v5 = vadd.f32 %v593_v52, %v5400_v30 }
 0x4a1   :  { %4462 = vmatmul.msk.f32.gmra.mxu3 %vm387_vm12, %v1442_v6  ;;  %v5636_v6 = vadd.f32 %v772_v59, %v5400_v30 }
 0x4a5   :  { %v1444_v8 = vpop.permute.xlu1 %1443 }
 0x4a6   :  { %4471 = vmatmul.msk.f32.gmra.mxu0 %vm387_vm12, %v1623_v7 }
 0x4a9   :  { %4463 = vmatmul.msk.f32.gmra.mxu3 %vm387_vm12, %v1444_v8  ;;  %v602_v8 = vsel %vm426_vm2, %v5633_v5, -inf }
 0x4ad   :  { %v4642_v11 = vpop.permute.xlu1 %4641 }
 0x4ae   :  { %4472 = vmatmul.msk.f32.gmra.mxu0 %vm387_vm12, %v1625_v10  ;;  %v4643_v12 = vunpack.i.l.bf16 %v4642_v11  ;;  %v4644_v15 = vunpack.i.h.bf16 %v4642_v11  ;;  %v781_v10 = vsel %vm426_vm2, %v5636_v6, -inf  ;;  %v5643_v11 = vadd.f32 %v775_v61, %v5400_v30 }
 0x4b0   :  { %654 = vmatpush.msrb.mxu2 %v4643_v12 }
 0x4b2   :  { %655 = vmatpush.msrb.mxu2 %v4644_v15  ;;  %v784_v15 = vsel %vm426_vm2, %v5643_v11, -inf }
 0x4b5   :  { %v5580_v16 = vpop.permute.xlu1 %4646 }
 0x4b6   :  { %v4648_v17 = vunpack.i.l.bf16 %v5580_v16 }
 0x4b8   :  { %656 = vmatpush.msrb.mxu2 %v4648_v17 }
 0x4bd   :  { %v5583_v18 = vpop.permute.xlu1 %4656 }
 0x4be   :  { %v4659_v14 = vunpack.i.h.bf16 %v5583_v18  ;;  %v4658_v38 = vunpack.i.l.bf16 %v5583_v18 }
 0x4c0   :  { %4615 = vmatpush.msrb.mxu3 %v4659_v14 }
 0x4c5   :  { %v806_v13 = vpop.permute.xlu1 %805 }
 0x4cd   :  { %v4672_v26 = vpop.permute.xlu1 %4671 }
 0x4ce   :  { %v4673_v35 = vunpack.i.l.bf16 %v4672_v26  ;;  %v4674_v39 = vunpack.i.h.bf16 %v4672_v26 }
 0x4d2   :  { %v5594_v21 = vpop.xlane.xlu0 %961 }
 0x4da   :  { %v5592_v19 = vpop.xlane.xlu2 %964 }
 0x4e2   :  { %v4662_v24 = vpop.permute.xlu2 %4661 }
 0x4e3   :  { %v4663_v23 = vunpack.i.l.bf16 %v4662_v24  ;;  %v4664_v29 = vunpack.i.h.bf16 %v4662_v24 }
 0x4e5   :  { %v4652_v28 = vpop.permute.xlu0 %4651  ;;  %836 = vmatpush.msrb.mxu1 %v4663_v23  ;;  %v5656_v23 = vadd.f32 %v590_v43, %v5400_v30 }
 0x4e6   :  { %v4653_v34 = vunpack.i.l.bf16 %v4652_v28  ;;  %v4654_v36 = vunpack.i.h.bf16 %v4652_v28 }
 0x4e7   :  { %837 = vmatpush.msrb.mxu1 %v4664_v29  ;;  %v599_v28 = vsel %vm426_vm2, %v5656_v23, -inf  ;;  %v5663_v29 = vadd.f32 %v769_v57, %v5400_v30 }
 0x4e8   :  { %1018 = vmatpush.msra.mxu2 %v4653_v34 }
 0x4e9   :  { %838 = vmatpush.msrb.mxu1 %v806_v13  ;;  %v778_v34 = vsel %vm426_vm2, %v5663_v29, -inf }
 0x4ea   :  { %1019 = vmatpush.msra.mxu2 %v4654_v36 }
 0x4eb   :  { %1197 = vmatpush.msra.mxu1 %v4673_v35 }
 0x4ec   :  { %1020 = vmatpush.msra.mxu2 %v4658_v38  ;;  %v969_v38 = vsub.f32 %v5538_v50, %v5594_v21 }
 0x4ed   :  { %1198 = vmatpush.msra.mxu1 %v4674_v39  ;;  %v1167_v41 = vpop.permute.xlu0 %1166 }
 0x4ee   :  { %v972_v43 = vmul.f32 1.442695, %v969_v38 }
 0x4ef   :  { %1199 = vmatpush.msra.mxu1 %v1167_v41 }
 0x4f0   :  { %4775 = vpow2.f32 %v972_v43 }
 0x4f3   :  { %v957_v42 = vpop.f32.mrf.mxu0 }
 0x4f4   :  { %v5600_v48 = vadd.f32 %v957_v42, %v5400_v30  ;;  %v970_v42 = vsub.f32 %v5543_v53, %v5592_v19 }
 0x4f6   :  { %v966_v45 = vsel %vm426_vm2, %v5600_v48, -inf  ;;  %v974_v52 = vmul.f32 1.442695, %v970_v42 }
 0x4f7   :  { %967 = vmax.xlane.f32.xlu2 %v966_v45 }
 0x4f8   :  { %4777 = vpow2.f32 %v974_v52 }
 0x4fb   :  { %v1299_v49 = vpop.f32.mrf.mxu0 }
 0x4fc   :  { %v5605_v51 = vadd.f32 %v1299_v49, %v5400_v30 }
 0x4fe   :  { %v1308_v44 = vsel %vm426_vm2, %v5605_v51, -inf }
 0x4ff   :  { %1309 = vmax.xlane.f32.xlu0 %v1308_v44 }
 0x503   :  { %v1302_v54 = vpop.f32.mrf.mxu0 }
 0x504   :  { %v5610_v55 = vadd.f32 %v1302_v54, %v5400_v30  ;;  %v1130_v46 = vpop.f32.mrf.mxu3  ;;  %v5694_v54 = vpop.eup %4775 }
 0x505   :  { %v5673_v35 = vadd.f32 %v1130_v46, %v5400_v30  ;;  %v978_v57 = vsel %vm426_vm2, %v5694_v54, 0.0  ;;  %v445_v46 = vsel %vm426_vm2, %v5443_v27, 0.0 }
 0x506   :  { %v1311_v56 = vsel %vm426_vm2, %v5610_v55, -inf }
 0x507   :  { %1312 = vmax.xlane.f32.xlu0 %v1311_v56  ;;  %v1139_v36 = vsel %vm426_vm2, %v5673_v35, -inf }
 0x50b   :  { %v1305_v60 = vpop.f32.mrf.mxu0 }
 0x50c   :  { %v1133_v7 = vpop.f32.mrf.mxu3  ;;  %v5646_v12 = vadd.f32 %v1305_v60, %v5400_v30 }
 0x50d   :  { %v5678_v37 = vadd.f32 %v1133_v7, %v5400_v30 }
 0x50e   :  { %v1314_v13 = vsel %vm426_vm2, %v5646_v12, -inf }
 0x50f   :  { %4666 = vrot.lane.b32.xlu2 %v4665_v58, %s7429_s22  ;;  %v1142_v39 = vsel %vm426_vm2, %v5678_v37, -inf  ;;  %s7431_s22 = smov 16  }
 0x514   :  { %v1136_v17 = vpop.f32.mrf.mxu3 }
 0x515   :  { %v5653_v24 = vadd.f32 %v1136_v17, %v5400_v30 }
 0x517   :  { %v1145_v26 = vsel %vm426_vm2, %v5653_v24, -inf }
 0x51b   :  { %v1661_v62 = vpop.f32.mrf.mxu0 }
 0x51c   :  { %v5618_v63 = vadd.f32 %v1661_v62, %v5400_v30  ;;  %v448_v62 = vsel %vm426_vm2, %v5450_v32, 0.0 }
 0x51e   :  { %v1670_v0 = vsel %vm426_vm2, %v5618_v63, -inf }
 0x51f   :  { %1671 = vmax.xlane.f32.xlu0 %v1670_v0 }
 0x523   :  { %v1664_v3 = vpop.f32.mrf.mxu0 }
 0x524   :  { %v5626_v20 = vadd.f32 %v1664_v3, %v5400_v30 }
 0x526   :  { %v1673_v25 = vsel %vm426_vm2, %v5626_v20, -inf }
 0x527   :  { %1674 = vmax.xlane.f32.xlu1 %v1673_v25  ;;  %597 = vmax.xlane.f32.xlu0 %v596_v4 }
 0x52f   :  { %603 = vmax.xlane.f32.xlu1 %v602_v8  ;;  %782 = vmax.xlane.f32.xlu0 %v781_v10 }
 0x537   :  { %785 = vmax.xlane.f32.xlu1 %v784_v15 }
 0x538   :  { %1315 = vmax.xlane.f32.xlu2 %v1314_v13 }
 0x53f   :  { %1146 = vmax.xlane.f32.xlu1 %v1145_v26 }
 0x540   :  { %600 = vmax.xlane.f32.xlu2 %v599_v28 }
 0x543   :  { %4681 = vrot.lane.b32.xlu0 %v5533_v47, %s7427_s1  ;;  %v1480_v47 = vpop.f32.mrf.mxu3 }
 0x548   :  { %779 = vmax.xlane.f32.xlu2 %v778_v34 }
 0x54b   :  { %v1483_v49 = vpop.f32.mrf.mxu3 }
 0x54c   :  { %v5692_v50 = vadd.f32 %v1483_v49, %v5400_v30 }
 0x54e   :  { %v1492_v53 = vsel %vm426_vm2, %v5692_v50, -inf }
 0x553   :  { %v1486_v15 = vpop.f32.mrf.mxu3 }
 0x554   :  { %v5727_v28 = vadd.f32 %v1486_v15, %v5400_v30 }
 0x558   :  { %1516 = vrot.lane.b32.xlu1 %v5473_v40, %s7427_s1  ;;  %v1667_v40 = vpop.f32.mrf.mxu0  ;;  %s7443_s1 = smov 24  }
 0x559   :  { %v5687_v45 = vadd.f32 %v1667_v40, %v5400_v30 }
 0x55b   :  { %v1676_v44 = vsel %vm426_vm2, %v5687_v45, -inf }
 0x560   :  { %4676 = vrot.lane.b32.xlu2 %v4665_v58, %s7435_s23  ;;  %v5701_v58 = vpop.eup %4777  ;;  %s7476_s23 = smov 112  }
 0x561   :  { %v981_v61 = vsel %vm426_vm2, %v5701_v58, 0.0 }
 0x56a   :  { %v968_v56 = vpop.xlane.xlu2 %967 }
 0x56b   :  { %v971_v59 = vsub.f32 %v5600_v48, %v968_v56 }
 0x56d   :  { %1140 = vmax.xlane.f32.xlu0 %v1139_v36  ;;  %v976_v0 = vmul.f32 1.442695, %v971_v59 }
 0x572   :  { %v1310_v41 = vpop.xlane.xlu0 %1309 }
 0x573   :  { %v1317_v27 = vsub.f32 %v5605_v51, %v1310_v41  ;;  %v4649_v41 = vunpack.i.h.bf16 %v5580_v16 }
 0x575   :  { %1143 = vmax.xlane.f32.xlu0 %v1142_v39  ;;  %v1320_v26 = vmul.f32 1.442695, %v1317_v27  ;;  %v4667_v39 = vpop.permute.xlu2 %4666 }
 0x576   :  { %v4668_v49 = vunpack.i.l.bf16 %v4667_v39 }
 0x57a   :  { %v1313_v21 = vpop.xlane.xlu0 %1312 }
 0x57b   :  { %v1318_v19 = vsub.f32 %v5610_v55, %v1313_v21  ;;  %v5709_v55 = vadd.f32 %v1480_v47, %v5400_v30  ;;  %v1495_v47 = vsel %vm426_vm2, %v5727_v28, -inf }
 0x57d   :  { %1677 = vmax.xlane.f32.xlu0 %v1676_v44  ;;  %v1322_v60 = vmul.f32 1.442695, %v1318_v19  ;;  %v1489_v48 = vsel %vm426_vm2, %v5709_v55, -inf  ;;  %v4669_v44 = vunpack.i.h.bf16 %v4667_v39 }
 0x57f   :  { %4779 = vpow2.f32 %v1322_v60  ;;  %v451_v60 = vsel %vm426_vm2, %v5456_v33, 0.0 }
 0x580   :  { %4781 = vpow2.f32 %v976_v0 }
 0x582   :  { %1493 = vmax.xlane.f32.xlu1 %v1492_v53 }
 0x585   :  { %979 = vadd.xlane.f32.xlu0 %v978_v57  ;;  %v5715_v3 = vpop.eup %4779 }
 0x586   :  { %v1329_v4 = vsel %vm426_vm2, %v5715_v3, 0.0  ;;  %v5720_v7 = vpop.eup %4781 }
 0x587   :  { %v984_v10 = vsel %vm426_vm2, %v5720_v7, 0.0 }
 0x589   :  { %982 = vadd.xlane.f32.xlu2 %v981_v61 }
 0x58a   :  { %449 = vadd.xlane.f32.xlu1 %v448_v62 }
 0x58d   :  { %446 = vadd.xlane.f32.xlu0 %v445_v46 }
 0x591   :  { %1490 = vmax.xlane.f32.xlu2 %v1489_v48 }
 0x592   :  { %v1672_v25 = vpop.xlane.xlu0 %1671 }
 0x593   :  { %v1679_v32 = vsub.f32 %v5618_v63, %v1672_v25 }
 0x595   :  { %v1682_v8 = vmul.f32 1.442695, %v1679_v32  ;;  %1330 = vadd.xlane.f32.xlu0 %v1329_v4 }
 0x597   :  { %4783 = vpow2.f32 %v1682_v8 }
 0x598   :  { %4785 = vpow2.f32 %v1320_v26 }
 0x599   :  { %985 = vadd.xlane.f32.xlu2 %v984_v10 }
 0x59a   :  { %v1675_v17 = vpop.xlane.xlu1 %1674  ;;  %v598_v13 = vpop.xlane.xlu0 %597 }
 0x59b   :  { %v605_v63 = vsub.f32 %v5623_v1, %v598_v13  ;;  %v1680_v43 = vsub.f32 %v5626_v20, %v1675_v17 }
 0x59d   :  { %v5729_v34 = vpop.eup %4783  ;;  %v608_v36 = vmul.f32 1.442695, %v605_v63  ;;  %v1684_v21 = vmul.f32 1.442695, %v1680_v43 }
 0x59e   :  { %v1688_v51 = vsel %vm426_vm2, %v5729_v34, 0.0  ;;  %v5735_v40 = vpop.eup %4785 }
 0x59f   :  { %1689 = vadd.xlane.f32.xlu1 %v1688_v51  ;;  %4787 = vpow2.f32 %v608_v36  ;;  %v1326_v52 = vsel %vm426_vm2, %v5735_v40, 0.0 }
 0x5a0   :  { %4789 = vpow2.f32 %v1684_v21 }
 0x5a1   :  { %1496 = vmax.xlane.f32.xlu2 %v1495_v47 }
 0x5a2   :  { %v604_v38 = vpop.xlane.xlu1 %603 }
 0x5a3   :  { %v607_v57 = vsub.f32 %v5633_v5, %v604_v38 }
 0x5a5   :  { %v4788_v1 = vpop.eup %4787  ;;  %v612_v61 = vmul.f32 1.442695, %v607_v57 }
 0x5a6   :  { %4419 = vmatmul.msk.f32.vlgmr.msrb.gmra.mxu2 %vm426_vm2, %v4788_v1  ;;  %v614_v42 = vsel %vm426_vm2, %v4788_v1, 0.0  ;;  %v5748_v0 = vpop.eup %4789 }
 0x5a7   :  { %1366 = vmatpush.msrb.mxu2 %v4649_v41  ;;  %615 = vadd.xlane.f32.xlu1 %v614_v42  ;;  %v1691_v4 = vsel %vm426_vm2, %v5748_v0, 0.0 }
 0x5a9   :  { %1327 = vadd.xlane.f32.xlu2 %v1326_v52  ;;  %1367 = vmatpush.msrb.mxu2 %v4668_v49 }
 0x5aa   :  { %v786_v53 = vpop.xlane.xlu1 %785 }
 0x5ab   :  { %v789_v19 = vsub.f32 %v5643_v11, %v786_v53  ;;  %v1316_v16 = vpop.xlane.xlu2 %1315  ;;  %1368 = vmatpush.msrb.mxu2 %v4669_v44  ;;  %v783_v11 = vpop.xlane.xlu0 %782 }
 0x5ac   :  { %v1319_v20 = vsub.f32 %v5646_v12, %v1316_v16  ;;  %v788_v32 = vsub.f32 %v5636_v6, %v783_v11 }
 0x5ad   :  { %v794_v56 = vmul.f32 1.442695, %v789_v19 }
 0x5ae   :  { %v1324_v59 = vmul.f32 1.442695, %v1319_v20 }
 0x5af   :  { %4791 = vpow2.f32 %v794_v56 }
 0x5b0   :  { %4793 = vpow2.f32 %v1324_v59 }
 0x5b1   :  { %452 = vadd.xlane.f32.xlu2 %v451_v60  ;;  %4795 = vpow2.f32 %v612_v61 }
 0x5b2   :  { %v1147_v13 = vpop.xlane.xlu1 %1146 }
 0x5b3   :  { %v601_v62 = vpop.xlane.xlu2 %600  ;;  %v1150_v44 = vsub.f32 %v5653_v24, %v1147_v13 }
 0x5b4   :  { %v606_v46 = vsub.f32 %v5656_v23, %v601_v62  ;;  %v792_v23 = vmul.f32 1.442695, %v788_v32 }
 0x5b5   :  { %v4792_v48 = vpop.eup %4791  ;;  %v4682_v26 = vpop.permute.xlu0 %4681 }
 0x5b6   :  { %v5751_v12 = vpop.eup %4793  ;;  %v610_v25 = vmul.f32 1.442695, %v606_v46  ;;  %v802_v5 = vsel %vm426_vm2, %v4792_v48, 0.0  ;;  %v4683_v38 = vunpack.i.l.bf16 %v4682_v26  ;;  %v4684_v39 = vunpack.i.h.bf16 %v4682_v26 }
 0x5b7   :  { %803 = vadd.xlane.f32.xlu1 %v802_v5  ;;  %v1332_v33 = vsel %vm426_vm2, %v5751_v12, 0.0  ;;  %v4796_v27 = vpop.eup %4795 }
 0x5b8   :  { %4797 = vpow2.f32 %v610_v25  ;;  %1333 = vadd.xlane.f32.xlu0 %v1332_v33  ;;  %v620_v6 = vsel %vm426_vm2, %v4796_v27, 0.0 }
 0x5b9   :  { %1692 = vadd.xlane.f32.xlu2 %v1691_v4  ;;  %4799 = vpow2.f32 %v792_v23 }
 0x5bb   :  { %v780_v8 = vpop.xlane.xlu2 %779 }
 0x5bc   :  { %v787_v10 = vsub.f32 %v5663_v29, %v780_v8 }
 0x5be   :  { %v5760_v15 = vpop.eup %4797  ;;  %v790_v17 = vmul.f32 1.442695, %v787_v10 }
 0x5bf   :  { %4420 = vmatmul.msk.f32.gmra.mxu2 %vm426_vm2, %v5760_v15  ;;  %v4800_v51 = vpop.eup %4799  ;;  %v617_v62 = vsel %vm426_vm2, %v5760_v15, 0.0 }
 0x5c0   :  { %4801 = vpow2.f32 %v790_v17  ;;  %621 = vadd.xlane.f32.xlu0 %v620_v6  ;;  %v799_v1 = vsel %vm426_vm2, %v4800_v51, 0.0 }
 0x5c3   :  { %v4677_v63 = vpop.permute.xlu2 %4676 }
 0x5c4   :  { %v4678_v36 = vunpack.i.l.bf16 %v4677_v63  ;;  %v4679_v29 = vunpack.i.h.bf16 %v4677_v63 }
 0x5c6   :  { %v5765_v47 = vpop.eup %4801  ;;  %4616 = vmatpush.msrb.mxu3 %v4678_v36 }
 0x5c7   :  { %4421 = vmatmul.msk.f32.gmra.mxu2 %vm426_vm2, %v4796_v27  ;;  %4428 = vmatmul.msk.f32.vlgmr.msrb.gmra.mxu1 %vm426_vm2, %v5765_v47  ;;  %v796_v8 = vsel %vm426_vm2, %v5765_v47, 0.0 }
 0x5c8   :  { %1547 = vmatpush.msrb.mxu1 %v4683_v38  ;;  %4617 = vmatpush.msrb.mxu3 %v4679_v29 }
 0x5c9   :  { %800 = vadd.xlane.f32.xlu0 %v799_v1 }
 0x5ca   :  { %1548 = vmatpush.msrb.mxu1 %v4684_v39  ;;  %v1517_v41 = vpop.permute.xlu1 %1516 }
 0x5cc   :  { %1549 = vmatpush.msrb.mxu1 %v1517_v41 }
 0x5cf   :  { %4429 = vmatmul.msk.f32.gmra.mxu1 %vm426_vm2, %v4800_v51  ;;  %4437 = vmatmul.msk.f32.vlgmr.msra.gmra.mxu2 %vm426_vm2, %v5694_v54 }
 0x5d0   :  { %1728 = vmatpush.msra.mxu2 %v4659_v14 }
 0x5d2   :  { %1729 = vmatpush.msra.mxu2 %v4678_v36 }
 0x5d4   :  { %1730 = vmatpush.msra.mxu2 %v4679_v29 }
 0x5d7   :  { %4430 = vmatmul.msk.f32.gmra.mxu1 %vm426_vm2, %v4792_v48  ;;  %4438 = vmatmul.msk.f32.gmra.mxu2 %vm426_vm2, %v5701_v58 }
 0x5df   :  { %4439 = vmatmul.msk.f32.gmra.mxu2 %vm426_vm2, %v5720_v7 }
 0x5e0   :  { %v1141_v43 = vpop.xlane.xlu0 %1140 }
 0x5e1   :  { %v1148_v42 = vsub.f32 %v5673_v35, %v1141_v43  ;;  %v1155_v35 = vmul.f32 1.442695, %v1150_v44 }
 0x5e3   :  { %v1151_v49 = vmul.f32 1.442695, %v1148_v42 }
 0x5e5   :  { %4803 = vpow2.f32 %v1151_v49 }
 0x5e7   :  { %4455 = vmatmul.msk.f32.vlgmr.msrb.gmra.mxu2 %vm426_vm2, %v5735_v40 }
 0x5e8   :  { %v1144_v18 = vpop.xlane.xlu0 %1143 }
 0x5e9   :  { %v1149_v14 = vsub.f32 %v5678_v37, %v1144_v18 }
 0x5eb   :  { %v5785_v54 = vpop.eup %4803  ;;  %v1153_v52 = vmul.f32 1.442695, %v1149_v14 }
 0x5ec   :  { %4446 = vmatmul.msk.f32.vlgmr.msra.gmra.mxu1 %vm426_vm2, %v5785_v54 }
 0x5ed   :  { %4805 = vpow2.f32 %v1153_v52 }
 0x5ee   :  { %4807 = vpow2.f32 %v1155_v35 }
 0x5ef   :  { %4456 = vmatmul.msk.f32.gmra.mxu2 %vm426_vm2, %v5715_v3 }
 0x5f0   :  { %v1678_v58 = vpop.xlane.xlu0 %1677 }
 0x5f1   :  { %v1681_v7 = vsub.f32 %v5687_v45, %v1678_v58 }
 0x5f3   :  { %v5793_v40 = vpop.eup %4805  ;;  %v1686_v21 = vmul.f32 1.442695, %v1681_v7 }
 0x5f4   :  { %4447 = vmatmul.msk.f32.gmra.mxu1 %vm426_vm2, %v5793_v40  ;;  %v5802_v19 = vpop.eup %4807 }
 0x5f5   :  { %4809 = vpow2.f32 %v1686_v21  ;;  %v1494_v24 = vpop.xlane.xlu1 %1493 }
 0x5f6   :  { %v1499_v37 = vsub.f32 %v5692_v50, %v1494_v24 }
 0x5f7   :  { %4457 = vmatmul.msk.f32.gmra.mxu2 %vm426_vm2, %v5751_v12 }
 0x5f8   :  { %v1503_v53 = vmul.f32 1.442695, %v1499_v37  ;;  %v5800_v3 = vpop.xlane.xlu0 %979 }
 0x5fa   :  { %4811 = vpow2.f32 %v1503_v53 }
 0x5fb   :  { %v4810_v45 = vpop.eup %4809 }
 0x5fc   :  { %v5804_v16 = vpop.xlane.xlu2 %982  ;;  %4448 = vmatmul.msk.f32.gmra.mxu1 %vm426_vm2, %v5802_v19  ;;  %4475 = vmatmul.msk.f32.vlgmr.msrb.gmra.mxu3 %vm426_vm2, %v4810_v45  ;;  %v1694_v20 = vsel %vm426_vm2, %v4810_v45, 0.0 }
 0x5fd   :  { %v450_v50 = vpop.xlane.xlu1 %449  ;;  %1695 = vadd.xlane.f32.xlu2 %v1694_v20 }
 0x5fe   :  { %4813 = vrcp.f32 %v450_v50  ;;  %v523_v32 = vand.u32 2147483648, %v450_v50  ;;  %v521_v4 = vand.u32 2147483647, %v450_v50  ;;  %vm517_vm10 = vweird.f32 %v450_v50 }
 0x5ff   :  { %4473 = vmatmul.msk.f32.vlgmr.msra.gmra.mxu2 %vm426_vm2, %v5729_v34 }
 0x600   :  { %v4812_v56 = vpop.eup %4811  ;;  %v447_v57 = vpop.xlane.xlu0 %446  ;;  %vm522_vm15 = vcmp.eq.f32.partialorder %v521_v4, 8.507059e+37 }
 0x601   :  { %4815 = vrcp.f32 %v447_v57  ;;  %v1510_v59 = vsel %vm426_vm2, %v4812_v56, 0.0  ;;  %v509_v23 = vand.u32 2147483648, %v447_v57  ;;  %v507_v15 = vand.u32 2147483647, %v447_v57 }
 0x602   :  { %1511 = vadd.xlane.f32.xlu1 %v1510_v59  ;;  %vm503_vm14 = vweird.f32 %v447_v57 }
 0x603   :  { %v510_v26 = vor.u32 1.1754944e-38, %v509_v23  ;;  %vm508_vm3 = vcmp.eq.f32.partialorder %v507_v15, 8.507059e+37 }
 0x604   :  { %v4814_v60 = vpop.eup %4813  ;;  %v1491_v61 = vpop.xlane.xlu2 %1490 }
 0x605   :  { %v513_v11 = vmul.f32 %v4814_v60, %v450_v50  ;;  %v1498_v46 = vsub.f32 %v5709_v55, %v1491_v61  ;;  %618 = vadd.xlane.f32.xlu2 %v617_v62  ;;  %vm518_vm9 = vweird.f32 %v4814_v60 }
 0x606   :  { %vm519_vm13 = vmor %vm517_vm10, %vm518_vm9 }
 0x607   :  { %v4816_v48 = vpop.eup %4815  ;;  %v514_v12 = vsub.f32 1.0, %v513_v11  ;;  %v1501_v25 = vmul.f32 1.442695, %v1498_v46  ;;  %4474 = vmatmul.msk.f32.gmra.mxu2 %vm426_vm2, %v5748_v0  ;;  %v524_v0 = vor.u32 1.1754944e-38, %v523_v32 }
 0x608   :  { %v499_v34 = vmul.f32 %v4816_v48, %v447_v57  ;;  %vm504_vm11 = vweird.f32 %v4816_v48 }
 0x609   :  { %v515_v5 = vmul.f32 %v4814_v60, %v514_v12  ;;  %4817 = vpow2.f32 %v1501_v25  ;;  %vm505_vm0 = vmor %vm503_vm14, %vm504_vm11  ;;  %vm1036_vm14 = vweird.f32 %v5800_v3 }
 0x60a   :  { %v500_v33 = vsub.f32 1.0, %v499_v34 }
 0x60b   :  { %v516_v27 = vadd.f32 %v4814_v60, %v515_v5 }
 0x60c   :  { %v501_v55 = vmul.f32 %v4816_v48, %v500_v33  ;;  %v5820_v10 = vpop.xlane.xlu2 %985 }
 0x60d   :  { %797 = vadd.xlane.f32.xlu2 %v796_v8  ;;  %v520_v6 = vsel %vm519_vm13, %v4814_v60, %v516_v27 }
 0x60e   :  { %v502_v17 = vadd.f32 %v4816_v48, %v501_v55  ;;  %v525_v63 = vsel %vm522_vm15, %v524_v0, %v520_v6  ;;  %v1040_v55 = vand.u32 2147483647, %v5800_v3 }
 0x60f   :  { %v4818_v13 = vpop.eup %4817  ;;  %v541_v47 = vmul.f32 %v525_v63, %v5590_v2 }
 0x610   :  { %4464 = vmatmul.msk.f32.vlgmr.msrb.gmra.mxu1 %vm426_vm2, %v4818_v13  ;;  %v1507_v36 = vsel %vm426_vm2, %v4818_v13, 0.0  ;;  %v506_v51 = vsel %vm505_vm0, %v4816_v48, %v502_v17  ;;  %vm1041_vm0 = vcmp.eq.f32.partialorder %v1040_v55, 8.507059e+37 }
 0x611   :  { %1508 = vadd.xlane.f32.xlu0 %v1507_v36  ;;  %v511_v38 = vsel %vm508_vm3, %v510_v26, %v506_v51  ;;  %544 = vst.msk [vmem:[#allocation3 + $0x8] sm:$0xff] %vm387_vm12, %v541_v47  ;;  %v1056_v36 = vand.u32 2147483648, %v5804_v16  ;;  %v1054_v51 = vand.u32 2147483647, %v5804_v16 }
 0x612   :  { %v5825_v29 = vpop.xlane.xlu1 %1689  ;;  %v540_v39 = vmul.f32 %v511_v38, %v5588_v9 }
 0x613   :  { %v1057_v47 = vor.u32 1.1754944e-38, %v1056_v36 }
 0x614   :  { %v1497_v1 = vpop.xlane.xlu2 %1496  ;;  %543 = vst.msk [vmem:[#allocation3] sm:$0xff] %vm387_vm12, %v540_v39 }
 0x615   :  { %v1500_v41 = vsub.f32 %v5727_v28, %v1497_v1 }
 0x617   :  { %v1505_v43 = vmul.f32 1.442695, %v1500_v41  ;;  %v5854_v41 = vpop.xlane.xlu0 %1330 }
 0x618   :  { %4465 = vmatmul.msk.f32.gmra.mxu1 %vm426_vm2, %v4812_v56 }
 0x619   :  { %4819 = vpow2.f32 %v1505_v43 }
 0x61a   :  { %v616_v42 = vpop.xlane.xlu1 %615 }
 0x61b   :  { %4821 = vrcp.f32 %v616_v42  ;;  %v678_v28 = vand.u32 2147483648, %v616_v42  ;;  %v676_v58 = vand.u32 2147483647, %v616_v42  ;;  %vm672_vm5 = vweird.f32 %v616_v42 }
 0x61c   :  { %v5832_v2 = vpop.xlane.xlu2 %1327 }
 0x61d   :  { %v679_v21 = vor.u32 1.1754944e-38, %v678_v28  ;;  %vm677_vm7 = vcmp.eq.f32.partialorder %v676_v58, 8.507059e+37 }
 0x61f   :  { %v4820_v49 = vpop.eup %4819 }
 0x620   :  { %4466 = vmatmul.msk.f32.gmra.mxu1 %vm426_vm2, %v4820_v49  ;;  %v1513_v9 = vsel %vm426_vm2, %v4820_v49, 0.0 }
 0x621   :  { %1514 = vadd.xlane.f32.xlu1 %v1513_v9  ;;  %v4822_v18 = vpop.eup %4821 }
 0x622   :  { %v668_v14 = vmul.f32 %v4822_v18, %v616_v42  ;;  %vm673_vm4 = vweird.f32 %v4822_v18 }
 0x623   :  { %vm674_vm6 = vmor %vm672_vm5, %vm673_vm4  ;;  %vm1050_vm4 = vweird.f32 %v5804_v16 }
 0x624   :  { %v453_v52 = vpop.xlane.xlu2 %452  ;;  %v669_v44 = vsub.f32 1.0, %v668_v14 }
 0x625   :  { %4823 = vrcp.f32 %v453_v52  ;;  %v537_v59 = vand.u32 2147483648, %v453_v52  ;;  %v535_v61 = vand.u32 2147483647, %v453_v52  ;;  %vm531_vm9 = vweird.f32 %v453_v52 }
 0x626   :  { %v670_v35 = vmul.f32 %v4822_v18, %v669_v44  ;;  %4825 = vrcp.f32 %v5800_v3 }
 0x627   :  { %v538_v62 = vor.u32 1.1754944e-38, %v537_v59  ;;  %vm536_vm11 = vcmp.eq.f32.partialorder %v535_v61, 8.507059e+37  ;;  %4827 = vrcp.f32 %v5804_v16 }
 0x628   :  { %v671_v7 = vadd.f32 %v4822_v18, %v670_v35 }
 0x629   :  { %v658_v45 = vpop.f32.mrf.mxu2 }
 0x62a   :  { %v675_v37 = vsel %vm674_vm6, %v4822_v18, %v671_v7  ;;  %vm1055_vm6 = vcmp.eq.f32.partialorder %v1054_v51, 8.507059e+37  ;;  %v5874_v28 = vpop.xlane.xlu1 %803 }
 0x62b   :  { %v4824_v24 = vpop.eup %4823  ;;  %v680_v20 = vsel %vm677_vm7, %v679_v21, %v675_v37  ;;  %v5859_v42 = vpop.xlane.xlu0 %1333 }
 0x62c   :  { %v527_v53 = vmul.f32 %v4824_v24, %v453_v52  ;;  %v709_v50 = vmul.f32 %v680_v20, %v658_v45  ;;  %vm532_vm8 = vweird.f32 %v4824_v24  ;;  %v4826_v12 = vpop.eup %4825  ;;  %v5861_v49 = vpop.xlane.xlu2 %1692 }
 0x62d   :  { %vm533_vm10 = vmor %vm531_vm9, %vm532_vm8  ;;  %v1032_v25 = vmul.f32 %v4826_v12, %v5800_v3  ;;  %v4828_v32 = vpop.eup %4827  ;;  %vm1037_vm13 = vweird.f32 %v4826_v12 }
 0x62e   :  { %v528_v56 = vsub.f32 1.0, %v527_v53  ;;  %715 = vrot.lane.b32.xlu0 %v709_v50, %s7445_s24  ;;  %v1046_v33 = vmul.f32 %v4828_v32, %v5804_v16  ;;  %vm1038_vm15 = vmor %vm1036_vm14, %vm1037_vm13  ;;  %vm1051_vm3 = vweird.f32 %v4828_v32 }
 0x62f   :  { %v1033_v5 = vsub.f32 1.0, %v1032_v25  ;;  %vm1052_vm5 = vmor %vm1050_vm4, %vm1051_vm3 }
 0x630   :  { %v529_v57 = vmul.f32 %v4824_v24, %v528_v56  ;;  %v1047_v8 = vsub.f32 1.0, %v1046_v33 }
 0x631   :  { %v1034_v4 = vmul.f32 %v4826_v12, %v1033_v5 }
 0x632   :  { %v530_v60 = vadd.f32 %v4824_v24, %v529_v57  ;;  %v1048_v0 = vmul.f32 %v4828_v32, %v1047_v8 }
 0x633   :  { %v1035_v27 = vadd.f32 %v4826_v12, %v1034_v4  ;;  %v5865_v16 = vpop.xlane.xlu0 %621 }
 0x634   :  { %v534_v11 = vsel %vm533_vm10, %v4824_v24, %v530_v60  ;;  %v1049_v63 = vadd.f32 %v4828_v32, %v1048_v0  ;;  %4829 = vrcp.f32 %v5865_v16  ;;  %vm700_vm13 = vweird.f32 %v5865_v16 }
 0x635   :  { %v539_v46 = vsel %vm536_vm11, %v538_v62, %v534_v11  ;;  %v1039_v15 = vsel %vm1038_vm15, %v4826_v12, %v1035_v27  ;;  %v1157_v12 = vsel %vm426_vm2, %v5785_v54, 0.0 }
 0x636   :  { %v542_v48 = vmul.f32 %v539_v46, %v5596_v22  ;;  %v1042_v22 = vand.u32 2147483648, %v5800_v3  ;;  %v1053_v3 = vsel %vm1052_vm5, %v4828_v32, %v1049_v63  ;;  %v706_v63 = vand.u32 2147483648, %v5865_v16 }
 0x637   :  { %v1058_v39 = vsel %vm1055_vm6, %v1057_v47, %v1053_v3 }
 0x638   :  { %545 = vst.msk [vmem:[#allocation3 + $0x10] sm:$0xff] %vm387_vm12, %v542_v48  ;;  %v1043_v17 = vor.u32 1.1754944e-38, %v1042_v22 }
 0x63a   :  { %v1044_v13 = vsel %vm1041_vm0, %v1043_v17, %v1039_v15  ;;  %v5877_v35 = vpop.eup %4829 }
 0x63b   :  { %v696_v7 = vmul.f32 %v5877_v35, %v5865_v16  ;;  %vm701_vm11 = vweird.f32 %v5877_v35 }
 0x63c   :  { %v5872_v52 = vpop.xlane.xlu0 %800  ;;  %vm5926_vm15 = vmor %vm700_vm13, %vm701_vm11  ;;  %vm882_vm11 = vweird.f32 %v5874_v28 }
 0x63d   :  { %v697_v50 = vsub.f32 1.0, %v696_v7 }
 0x63f   :  { %v698_v5 = vmul.f32 %v5877_v35, %v697_v50 }
 0x641   :  { %v699_v17 = vadd.f32 %v5877_v35, %v698_v5 }
 0x642   :  { %v5842_v34 = vpop.f32.mrf.mxu2 }
 0x644   :  { %v5857_v43 = vpop.f32.mrf.mxu1 }
 0x64a   :  { %v5845_v23 = vpop.f32.mrf.mxu2 }
 0x64c   :  { %v5863_v9 = vpop.f32.mrf.mxu1 }
 0x652   :  { %v1022_v6 = vpop.f32.mrf.mxu2 }
 0x653   :  { %v1073_v26 = vmul.f32 %v1044_v13, %v1022_v6 }
 0x654   :  { %v5869_v14 = vpop.f32.mrf.mxu1 }
 0x655   :  { %1079 = vrot.lane.b32.xlu2 %v1073_v26, %s7443_s1  ;;  %v704_v26 = vand.u32 2147483647, %v5865_v16 }
 0x657   :  { %vm705_vm4 = vcmp.eq.f32.partialorder %v704_v26, 8.507059e+37 }
 0x65a   :  { %v1025_v38 = vpop.f32.mrf.mxu2 }
 0x65b   :  { %v1074_v1 = vmul.f32 %v1058_v39, %v1025_v38 }
 0x65d   :  { %1081 = vrot.lane.b32.xlu2 %v1074_v1, %s7443_s1 }
 0x669   :  { %v5880_v58 = vpop.f32.mrf.mxu1 }
 0x670   :  { %v5867_v18 = vpop.xlane.xlu2 %1695 }
 0x671   :  { %v5903_v48 = vpop.f32.mrf.mxu1 }
 0x675   :  { %v5897_v60 = vpop.xlane.xlu1 %1511 }
 0x678   :  { %v619_v44 = vpop.xlane.xlu2 %618 }
 0x679   :  { %4831 = vrcp.f32 %v619_v44  ;;  %v692_v57 = vand.u32 2147483648, %v619_v44  ;;  %v690_v62 = vand.u32 2147483647, %v619_v44  ;;  %vm686_vm8 = vweird.f32 %v619_v44  ;;  %v5940_v50 = vpop.f32.mrf.mxu1 }
 0x67a   :  { %4833 = vrcp.f32 %v5832_v2 }
 0x67b   :  { %4835 = vrcp.f32 %v5872_v52  ;;  %v693_v4 = vor.u32 1.1754944e-38, %v692_v57  ;;  %vm691_vm10 = vcmp.eq.f32.partialorder %v690_v62, 8.507059e+37 }
 0x67c   :  { %4837 = vrcp.f32 %v5874_v28 }
 0x67d   :  { %4839 = vrcp.f32 %v5820_v10 }
 0x67f   :  { %v4832_v21 = vpop.eup %4831 }
 0x680   :  { %v5885_v24 = vpop.eup %4833  ;;  %v682_v37 = vmul.f32 %v4832_v21, %v619_v44  ;;  %v5888_v53 = vpop.xlane.xlu2 %797  ;;  %vm687_vm7 = vweird.f32 %v4832_v21  ;;  %v703_v44 = vsel %vm5926_vm15, %v5877_v35, %v699_v17  ;;  %vm1384_vm15 = vweird.f32 %v5832_v2 }
 0x681   :  { %v5890_v45 = vpop.eup %4835  ;;  %4841 = vrcp.f32 %v5888_v53  ;;  %v1380_v11 = vmul.f32 %v5885_v24, %v5832_v2  ;;  %vm688_vm9 = vmor %vm686_vm8, %vm687_vm7  ;;  %v860_v36 = vand.u32 2147483648, %v5888_v53  ;;  %v858_v47 = vand.u32 2147483647, %v5888_v53 }
 0x682   :  { %v5893_v20 = vpop.eup %4837  ;;  %v683_v56 = vsub.f32 1.0, %v682_v37  ;;  %v864_v59 = vmul.f32 %v5890_v45, %v5872_v52  ;;  %4843 = vrcp.f32 %v5897_v60  ;;  %vm854_vm3 = vweird.f32 %v5888_v53  ;;  %v5938_v37 = vpop.f32.mrf.mxu2 }
 0x683   :  { %v878_v46 = vmul.f32 %v5893_v20, %v5874_v28  ;;  %v5907_v25 = vpop.eup %4839  ;;  %v1381_v55 = vsub.f32 1.0, %v1380_v11  ;;  %vm883_vm0 = vweird.f32 %v5893_v20  ;;  %vm869_vm5 = vweird.f32 %v5890_v45 }
 0x684   :  { %v684_v61 = vmul.f32 %v4832_v21, %v683_v56  ;;  %v865_v8 = vsub.f32 1.0, %v864_v59  ;;  %v1060_v54 = vmul.f32 %v5907_v25, %v5820_v10  ;;  %v861_v56 = vor.u32 1.1754944e-38, %v860_v36  ;;  %vm5972_vm13 = vmor %vm882_vm11, %vm883_vm0  ;;  %v5997_v36 = vpop.xlane.xlu0 %1508 }
 0x685   :  { %v879_v15 = vsub.f32 1.0, %v878_v46  ;;  %v1382_v16 = vmul.f32 %v5885_v24, %v1381_v55  ;;  %vm859_vm7 = vcmp.eq.f32.partialorder %v858_v47, 8.507059e+37  ;;  %vm868_vm8 = vweird.f32 %v5872_v52 }
 0x686   :  { %1158 = vadd.xlane.f32.xlu2 %v1157_v12  ;;  %v685_v32 = vadd.f32 %v4832_v21, %v684_v61  ;;  %v866_v51 = vmul.f32 %v5890_v45, %v865_v8  ;;  %v1061_v39 = vsub.f32 1.0, %v1060_v54  ;;  %v872_v12 = vand.u32 2147483647, %v5872_v52 }
 0x687   :  { %v4842_v33 = vpop.eup %4841  ;;  %v880_v1 = vmul.f32 %v5893_v20, %v879_v15  ;;  %v1390_v54 = vand.u32 2147483648, %v5832_v2  ;;  %v1388_v55 = vand.u32 2147483647, %v5832_v2  ;;  %vm724_vm11 = vcmask 130112  }
 0x688   :  { %v850_v27 = vmul.f32 %v4842_v33, %v5888_v53  ;;  %v689_v22 = vsel %vm688_vm9, %v4832_v21, %v685_v32  ;;  %vm855_vm14 = vweird.f32 %v4842_v33  ;;  %v5924_v38 = vpop.eup %4843  ;;  %v707_v21 = vor.u32 1.1754944e-38, %v706_v63  ;;  %vm5954_vm9 = vmor %vm868_vm8, %vm869_vm5 }
 0x689   :  { %v694_v0 = vsel %vm691_vm10, %v693_v4, %v689_v22  ;;  %vm856_vm6 = vmor %vm854_vm3, %vm855_vm14  ;;  %v867_v57 = vadd.f32 %v5890_v45, %v866_v51  ;;  %v1575_v35 = vmul.f32 %v5924_v38, %v5897_v60  ;;  %v874_v53 = vand.u32 2147483648, %v5872_v52 }
 0x68a   :  { %v851_v6 = vsub.f32 1.0, %v850_v27  ;;  %v710_v13 = vmul.f32 %v694_v0, %v5842_v34  ;;  %v708_v61 = vsel %vm705_vm4, %v707_v21, %v703_v44  ;;  %v881_v62 = vadd.f32 %v5893_v20, %v880_v1  ;;  %v1370_v2 = vpop.f32.mrf.mxu2 }
 0x68b   :  { %v711_v46 = vmul.f32 %v708_v61, %v5845_v23  ;;  %v1383_v4 = vadd.f32 %v5885_v24, %v1382_v16  ;;  %vm1385_vm10 = vweird.f32 %v5885_v24  ;;  %v871_v23 = vsel %vm5954_vm9, %v5890_v45, %v867_v57 }
 0x68c   :  { %717 = vrot.lane.b32.xlu0 %v710_v13, %s7445_s24  ;;  %v852_v3 = vmul.f32 %v4842_v33, %v851_v6  ;;  %v1576_v52 = vsub.f32 1.0, %v1575_v35  ;;  %v875_v27 = vor.u32 1.1754944e-38, %v874_v53  ;;  %v1062_v45 = vmul.f32 %v5907_v25, %v1061_v39  ;;  %vm5986_vm0 = vmor %vm1384_vm15, %vm1385_vm10 }
 0x68d   :  { %vm873_vm14 = vcmp.eq.f32.partialorder %v872_v12, 8.507059e+37  ;;  %v5990_v6 = vpop.f32.mrf.mxu1  ;;  %v1387_v13 = vsel %vm5986_vm0, %v5885_v24, %v1383_v4  ;;  %vm1065_vm4 = vweird.f32 %v5907_v25  ;;  %v1391_v63 = vor.u32 1.1754944e-38, %v1390_v54 }
 0x68e   :  { %v853_v7 = vadd.f32 %v4842_v33, %v852_v3  ;;  %v876_v15 = vsel %vm873_vm14, %v875_v27, %v871_v23  ;;  %v1063_v47 = vadd.f32 %v5907_v25, %v1062_v45  ;;  %vm1389_vm5 = vcmp.eq.f32.partialorder %v1388_v55, 8.507059e+37 }
 0x68f   :  { %v892_v51 = vmul.f32 %v876_v15, %v5863_v9  ;;  %v1068_v24 = vand.u32 2147483647, %v5820_v10  ;;  %v1070_v34 = vand.u32 2147483648, %v5820_v10  ;;  %v1392_v1 = vsel %vm1389_vm5, %v1391_v63, %v1387_v13 }
 0x690   :  { %v857_v59 = vsel %vm856_vm6, %v4842_v33, %v853_v7  ;;  %v888_v33 = vand.u32 2147483648, %v5874_v28  ;;  %vm1064_vm6 = vweird.f32 %v5820_v10  ;;  %v1421_v16 = vmul.f32 %v1392_v1, %v1370_v2 }
 0x691   :  { %v862_v11 = vsel %vm859_vm7, %v861_v56, %v857_v59  ;;  %vm1580_vm7 = vweird.f32 %v5924_v38  ;;  %vm1066_vm8 = vmor %vm1064_vm6, %vm1065_vm4  ;;  %v1585_v9 = vand.u32 2147483648, %v5897_v60  ;;  %vm1579_vm9 = vweird.f32 %v5897_v60 }
 0x692   :  { %v891_v5 = vmul.f32 %v862_v11, %v5857_v43  ;;  %v886_v43 = vand.u32 2147483647, %v5874_v28  ;;  %v885_v28 = vsel %vm5972_vm13, %v5893_v20, %v881_v62  ;;  %v889_v0 = vor.u32 1.1754944e-38, %v888_v33  ;;  %vm1581_vm10 = vmor %vm1579_vm9, %vm1580_vm7  ;;  %v1373_v27 = vpop.f32.mrf.mxu2 }
 0x693   :  { %v1577_v20 = vmul.f32 %v5924_v38, %v1576_v52  ;;  %v1583_v21 = vand.u32 2147483647, %v5897_v60  ;;  %v1071_v56 = vor.u32 1.1754944e-38, %v1070_v34  ;;  %vm1069_vm13 = vcmp.eq.f32.partialorder %v1068_v24, 8.507059e+37 }
 0x694   :  { %v5966_v8 = vpop.xlane.xlu1 %1514  ;;  %897 = vrot.lane.b32.xlu1 %v891_v5, %s7431_s22  ;;  %719 = vrot.lane.b32.xlu0 %v711_v46, %s7445_s24  ;;  %vm887_vm3 = vcmp.eq.f32.partialorder %v886_v43, 8.507059e+37  ;;  %v1586_v53 = vor.u32 1.1754944e-38, %v1585_v9  ;;  %v1160_v52 = vsel %vm426_vm2, %v5793_v40, 0.0  ;;  %v1571_v40 = vand.u32 2147483648, %v5997_v36 }
 0x695   :  { %4845 = vrcp.f32 %v5966_v8  ;;  %v890_v26 = vsel %vm887_vm3, %v889_v0, %v885_v28  ;;  %v1578_v7 = vadd.f32 %v5924_v38, %v1577_v20  ;;  %v1554_v61 = vpop.f32.mrf.mxu1  ;;  %vm1584_vm14 = vcmp.eq.f32.partialorder %v1583_v21, 8.507059e+37 }
 0x696   :  { %v893_v3 = vmul.f32 %v890_v26, %v5869_v14  ;;  %v1067_v14 = vsel %vm1066_vm8, %v5907_v25, %v1063_v47  ;;  %v1599_v46 = vand.u32 2147483648, %v5966_v8  ;;  %vm1593_vm0 = vweird.f32 %v5966_v8 }
 0x697   :  { %v1582_v57 = vsel %vm1581_vm10, %v5924_v38, %v1578_v7  ;;  %v1072_v59 = vsel %vm1069_vm13, %v1071_v56, %v1067_v14  ;;  %v1597_v38 = vand.u32 2147483647, %v5966_v8  ;;  %4847 = vrcp.f32 %v5997_v36 }
 0x698   :  { %v1075_v25 = vmul.f32 %v1072_v59, %v5938_v37  ;;  %v1587_v60 = vsel %vm1584_vm14, %v1586_v53, %v1582_v57  ;;  %v1600_v37 = vor.u32 1.1754944e-38, %v1599_v46  ;;  %4849 = vrcp.f32 %v5854_v41 }
 0x699   :  { %v1603_v12 = vmul.f32 %v1587_v60, %v1554_v61  ;;  %vm1598_vm4 = vcmp.eq.f32.partialorder %v1597_v38, 8.507059e+37  ;;  %4851 = vrcp.f32 %v5825_v29  ;;  %v1163_v28 = vsel %vm426_vm2, %v5802_v19, 0.0 }
 0x69a   :  { %4853 = vrcp.f32 %v5861_v49  ;;  %vm1565_vm6 = vweird.f32 %v5997_v36  ;;  %v1569_v17 = vand.u32 2147483647, %v5997_v36  ;;  %v6047_v19 = vpop.f32.mrf.mxu2  ;;  %v1572_v2 = vor.u32 1.1754944e-38, %v1571_v40 }
 0x69b   :  { %v4846_v39 = vpop.eup %4845  ;;  %4855 = vrcp.f32 %v5859_v42  ;;  %vm1398_vm10 = vweird.f32 %v5854_v41  ;;  %v1402_v14 = vand.u32 2147483647, %v5854_v41  ;;  %v1752_v61 = vand.u32 2147483648, %v5825_v29 }
 0x69c   :  { %v1589_v44 = vmul.f32 %v4846_v39, %v5966_v8  ;;  %901 = vrot.lane.b32.xlu0 %v893_v3, %s7431_s22  ;;  %899 = vrot.lane.b32.xlu1 %v892_v51, %s7431_s22  ;;  %vm1594_vm15 = vweird.f32 %v4846_v39  ;;  %4857 = vrcp.f32 %v5867_v18  ;;  %vm1570_vm8 = vcmp.eq.f32.partialorder %v1569_v17, 8.507059e+37  ;;  %v1810_v17 = vld [vmem:[%s7406_s7 + $0x18] sm:$0xff] }
 0x69d   :  { %vm1595_vm3 = vmor %vm1593_vm0, %vm1594_vm15  ;;  %v1557_v33 = vpop.f32.mrf.mxu1  ;;  %v4848_v23 = vpop.eup %4847  ;;  %vm1403_vm15 = vcmp.eq.f32.partialorder %v1402_v14, 8.507059e+37  ;;  %vm1746_vm0 = vweird.f32 %v5825_v29  ;;  %v1766_v46 = vand.u32 2147483648, %v5861_v49  ;;  %v1753_v38 = vor.u32 1.1754944e-38, %v1752_v61  ;;  %1845 = vmatpush.msra.mxu3 %v1810_v17 }
 0x69e   :  { %v1590_v10 = vsub.f32 1.0, %v1589_v44  ;;  %1427 = vrot.lane.b32.xlu2 %v1421_v16, %s7445_s24  ;;  %v1561_v43 = vmul.f32 %v4848_v23, %v5997_v36  ;;  %v4850_v22 = vpop.eup %4849  ;;  %vm1566_vm5 = vweird.f32 %v4848_v23  ;;  %v1404_v44 = vand.u32 2147483648, %v5854_v41 }
 0x69f   :  { %v1394_v54 = vmul.f32 %v4850_v22, %v5854_v41  ;;  %v6036_v55 = vpop.eup %4851  ;;  %vm1567_vm7 = vmor %vm1565_vm6, %vm1566_vm5  ;;  %vm1399_vm9 = vweird.f32 %v4850_v22  ;;  %v1750_v41 = vand.u32 2147483647, %v5825_v29  ;;  %vm1760_vm5 = vweird.f32 %v5861_v49 }
 0x6a0   :  { %v1591_v35 = vmul.f32 %v4846_v39, %v1590_v10  ;;  %v716_v62 = vpop.permute.xlu0 %715  ;;  %v1562_v8 = vsub.f32 1.0, %v1561_v43  ;;  %v6042_v13 = vpop.eup %4853  ;;  %v1742_v20 = vmul.f32 %v6036_v55, %v5825_v29  ;;  %vm1400_vm13 = vmor %vm1398_vm10, %vm1399_vm9  ;;  %v1405_v57 = vor.u32 1.1754944e-38, %v1404_v44 }
 0x6a1   :  { %725 = vst.msk [vmem:[#allocation3] sm:$0xff] %vm724_vm11, %v716_v62  ;;  %v1395_v0 = vsub.f32 1.0, %v1394_v54  ;;  %v1756_v63 = vmul.f32 %v6042_v13, %v5861_v49  ;;  %v6051_v36 = vpop.eup %4855  ;;  %vm1747_vm14 = vweird.f32 %v6036_v55  ;;  %vm1751_vm6 = vcmp.eq.f32.partialorder %v1750_v41, 8.507059e+37 }
 0x6a2   :  { %v1592_v11 = vadd.f32 %v4846_v39, %v1591_v35  ;;  %v1563_v45 = vmul.f32 %v4848_v23, %v1562_v8  ;;  %v1743_v3 = vsub.f32 1.0, %v1742_v20  ;;  %v1408_v16 = vmul.f32 %v6051_v36, %v5859_v42  ;;  %v1732_v10 = vpop.f32.mrf.mxu2  ;;  %v1809_v20 = vld [vmem:[%s7406_s7 + $0x10] sm:$0xff] }
 0x6a3   :  { %v1396_v51 = vmul.f32 %v4850_v22, %v1395_v0  ;;  %v1757_v24 = vsub.f32 1.0, %v1756_v63  ;;  %v1767_v43 = vor.u32 1.1754944e-38, %v1766_v46  ;;  %v1416_v8 = vand.u32 2147483647, %v5859_v42  ;;  %1846 = vmatpush.msra.mxu3 %v1809_v20 }
 0x6a4   :  { %1083 = vrot.lane.b32.xlu1 %v1075_v25, %s7443_s1  ;;  %v1596_v5 = vsel %vm1595_vm3, %v4846_v39, %v1592_v11  ;;  %v1564_v15 = vadd.f32 %v4848_v23, %v1563_v45  ;;  %v6053_v39 = vpop.eup %4857  ;;  %v1744_v7 = vmul.f32 %v6036_v55, %v1743_v3  ;;  %v1409_v56 = vsub.f32 1.0, %v1408_v16  ;;  %vm1748_vm3 = vmor %vm1746_vm0, %vm1747_vm14 }
 0x6a5   :  { %v1601_v32 = vsel %vm1598_vm4, %v1600_v37, %v1596_v5  ;;  %v1397_v34 = vadd.f32 %v4850_v22, %v1396_v51  ;;  %v1770_v9 = vmul.f32 %v6053_v39, %v5867_v18  ;;  %vm1761_vm4 = vweird.f32 %v6042_v13 }
 0x6a6   :  { %1610 = vrot.lane.b32.xlu2 %v1603_v12, %s7431_s22  ;;  %v1604_v4 = vmul.f32 %v1601_v32, %v1557_v33  ;;  %v1568_v26 = vsel %vm1567_vm7, %v4848_v23, %v1564_v15  ;;  %v1745_v35 = vadd.f32 %v6036_v55, %v1744_v7  ;;  %v1410_v11 = vmul.f32 %v6051_v36, %v1409_v56  ;;  %vm6080_vm7 = vmor %vm1760_vm5, %vm1761_vm4 }
 0x6a7   :  { %v1573_v47 = vsel %vm1570_vm8, %v1572_v2, %v1568_v26  ;;  %v1401_v21 = vsel %vm1400_vm13, %v4850_v22, %v1397_v34  ;;  %v1771_v59 = vsub.f32 1.0, %v1770_v9  ;;  %v1764_v5 = vand.u32 2147483647, %v5861_v49  ;;  %v1808_v26 = vld [vmem:[%s7406_s7 + $0x8] sm:$0xff]  ;;  %v1738_v2 = vpop.f32.mrf.mxu3 }
 0x6a8   :  { %v1602_v1 = vmul.f32 %v1573_v47, %v5990_v6  ;;  %v1758_v6 = vmul.f32 %v6042_v13, %v1757_v24  ;;  %v1406_v53 = vsel %vm1403_vm15, %v1405_v57, %v1401_v21  ;;  %v1749_v60 = vsel %vm1748_vm3, %v6036_v55, %v1745_v35  ;;  %1847 = vmatpush.msra.mxu3 %v1808_v26  ;;  %v4738_v26 = vld [vmem:[%s7407_s8] ss:$0 sm:$0xff] }
 0x6a9   :  { %v1422_v62 = vmul.f32 %v1406_v53, %v1373_v27  ;;  %v1772_v12 = vmul.f32 %v6053_v39, %v1771_v59  ;;  %v1754_v37 = vsel %vm1751_vm6, %v1753_v38, %v1749_v60  ;;  %v1411_v33 = vadd.f32 %v6051_v36, %v1410_v11 }
 0x6aa   :  { %v1759_v25 = vadd.f32 %v6042_v13, %v1758_v6  ;;  %vm1413_vm8 = vweird.f32 %v6051_v36  ;;  %v1735_v23 = vpop.f32.mrf.mxu2  ;;  %v1418_v49 = vand.u32 2147483648, %v5859_v42  ;;  %vm1775_vm9 = vweird.f32 %v6053_v39 }
 0x6ab   :  { %vm1765_vm10 = vcmp.eq.f32.partialorder %v1764_v5, 8.507059e+37  ;;  %vm1412_vm13 = vweird.f32 %v5859_v42  ;;  %v1780_v27 = vand.u32 2147483648, %v5867_v18  ;;  %vm1774_vm15 = vweird.f32 %v5867_v18 }
 0x6ac   :  { %v1763_v32 = vsel %vm6080_vm7, %v6042_v13, %v1759_v25  ;;  %vm1414_vm14 = vmor %vm1412_vm13, %vm1413_vm8  ;;  %v1778_v54 = vand.u32 2147483647, %v5867_v18  ;;  %v1419_v15 = vor.u32 1.1754944e-38, %v1418_v49  ;;  %vm1417_vm3 = vcmp.eq.f32.partialorder %v1416_v8, 8.507059e+37 }
 0x6ad   :  { %v1768_v22 = vsel %vm1765_vm10, %v1767_v43, %v1763_v32  ;;  %v1415_v55 = vsel %vm1414_vm14, %v6051_v36, %v1411_v33  ;;  %vm1776_vm0 = vmor %vm1774_vm15, %vm1775_vm9  ;;  %v1781_v42 = vor.u32 1.1754944e-38, %v1780_v27  ;;  %vm906_vm5 = vcmask 195712  }
 0x6ae   :  { %1612 = vrot.lane.b32.xlu2 %v1604_v4, %s7431_s22  ;;  %v1783_v4 = vmul.f32 %v1754_v37, %v1732_v10  ;;  %v1420_v0 = vsel %vm1417_vm3, %v1419_v15, %v1415_v55  ;;  %vm1779_vm4 = vcmp.eq.f32.partialorder %v1778_v54, 8.507059e+37  ;;  %vm1088_vm7 = vcmask 261312  }
 0x6af   :  { %v1080_v45 = vpop.permute.xlu2 %1079  ;;  %v1423_v13 = vmul.f32 %v1420_v0, %v6047_v19  ;;  %v1807_v19 = vld [vmem:[%s7406_s7] sm:$0xff] }
 0x6b0   :  { %1848 = vmatpush.msra.mxu3 %v1807_v19 }
 0x6b7   :  { %v1082_v51 = vpop.permute.xlu2 %1081 }
 0x6c6   :  { %1161 = vadd.xlane.f32.xlu0 %v1160_v52  ;;  %v1773_v52 = vadd.f32 %v6053_v39, %v1772_v12 }
 0x6c8   :  { %v1777_v40 = vsel %vm1776_vm0, %v6053_v39, %v1773_v52 }
 0x6c9   :  { %v1782_v18 = vsel %vm1779_vm4, %v1781_v42, %v1777_v40 }
 0x6ca   :  { %v1785_v63 = vmul.f32 %v1782_v18, %v1738_v2 }
 0x6ce   :  { %1164 = vadd.xlane.f32.xlu1 %v1163_v28  ;;  %v1784_v28 = vmul.f32 %v1768_v22, %v1735_v23 }
 0x6da   :  { %1608 = vrot.lane.b32.xlu0 %v1602_v1, %s7431_s22  ;;  %s7480_s22 = smov 56  }
 0x6e2   :  { %1429 = vrot.lane.b32.xlu0 %v1422_v62, %s7445_s24 }
 0x6e7   :  { %1789 = vrot.lane.b32.xlu1 %v1783_v4, %s7443_s1 }
 0x6ea   :  { %1791 = vrot.lane.b32.xlu0 %v1784_v28, %s7443_s1 }
 0x6ef   :  { %1431 = vrot.lane.b32.xlu1 %v1423_v13, %s7445_s24 }
 0x6f2   :  { %1793 = vrot.lane.b32.xlu0 %v1785_v63, %s7443_s1  ;;  %s7490_s1 = smov 24  }
 0x6f9   :  { %v1159_v3 = vpop.xlane.xlu2 %1158 }
 0x6fa   :  { %4859 = vrcp.f32 %v1159_v3  ;;  %v1221_v34 = vand.u32 2147483648, %v1159_v3  ;;  %v1219_v16 = vand.u32 2147483647, %v1159_v3  ;;  %vm1215_vm8 = vweird.f32 %v1159_v3 }
 0x6fc   :  { %v1222_v14 = vor.u32 1.1754944e-38, %v1221_v34  ;;  %vm1220_vm10 = vcmp.eq.f32.partialorder %v1219_v16, 8.507059e+37 }
 0x6fe   :  { %v718_v47 = vpop.permute.xlu0 %717 }
 0x6ff   :  { %726 = vst.msk [vmem:[#allocation3 + $0x8] sm:$0xff] %vm724_vm11, %v718_v47 }
 0x700   :  { %v4860_v36 = vpop.eup %4859 }
 0x701   :  { %v1211_v39 = vmul.f32 %v4860_v36, %v1159_v3  ;;  %vm1216_vm6 = vweird.f32 %v4860_v36  ;;  %v1428_v56 = vpop.permute.xlu2 %1427 }
 0x702   :  { %vm1217_vm9 = vmor %vm1215_vm8, %vm1216_vm6 }
 0x703   :  { %v1212_v24 = vsub.f32 1.0, %v1211_v39  ;;  %v5024_v39 = vld [vmem:[#allocation2 + $0x8] sm:$0xff] }
 0x705   :  { %v1213_v1 = vmul.f32 %v4860_v36, %v1212_v24 }
 0x706   :  { %v898_v44 = vpop.permute.xlu1 %897  ;;  %v720_v7 = vpop.permute.xlu0 %719 }
 0x707   :  { %v1214_v9 = vadd.f32 %v4860_v36, %v1213_v1  ;;  %907 = vst.msk [vmem:[#allocation3] sm:$0xff] %vm906_vm5, %v898_v44  ;;  %v5025_v44 = vld [vmem:[#allocation2 + $0x10] sm:$0xff] }
 0x708   :  { %1089 = vst.msk [vmem:[#allocation3] sm:$0xff] %vm1088_vm7, %v1080_v45 }
 0x709   :  { %v1218_v10 = vsel %vm1217_vm9, %v4860_v36, %v1214_v9  ;;  %727 = vst.msk [vmem:[#allocation3 + $0x10] sm:$0xff] %vm724_vm11, %v720_v7 }
 0x70a   :  { %v1223_v21 = vsel %vm1220_vm10, %v1222_v14, %v1218_v10 }
 0x70b   :  { %v1252_v6 = vmul.f32 %v1223_v21, %v5880_v58  ;;  %v5026_v21 = vld [vmem:[#allocation2 + $0x18] sm:$0xff] }
 0x70d   :  { %1255 = vst.msk [vmem:[#allocation3 + $0x18] sm:$0xff] %vm387_vm12, %v1252_v6 }
 0x70e   :  { %1436 = vst.msk [vmem:[#allocation3 + $0x18] sm:$0xff] %vm724_vm11, %v1428_v56  ;;  %v900_v57 = vpop.permute.xlu1 %899  ;;  %v902_v35 = vpop.permute.xlu0 %901 }
 0x70f   :  { %908 = vst.msk [vmem:[#allocation3 + $0x8] sm:$0xff] %vm906_vm5, %v900_v57  ;;  %v1801_v59 = vld [vmem:[#allocation3] sm:$0xff] }
 0x710   :  { %1090 = vst.msk [vmem:[#allocation3 + $0x8] sm:$0xff] %vm1088_vm7, %v1082_v51  ;;  %4476 = vmatmul.msk.f32.vlgmr.msra.gmra.mxu3 %vm141_vm1, %v1801_v59  ;;  %v5023_v51 = vld [vmem:[#allocation2] sm:$0xff] }
 0x711   :  { %909 = vst.msk [vmem:[#allocation3 + $0x10] sm:$0xff] %vm906_vm5, %v902_v35 }
 0x716   :  { %v1084_v61 = vpop.permute.xlu1 %1083 }
 0x717   :  { %1091 = vst.msk [vmem:[#allocation3 + $0x10] sm:$0xff] %vm1088_vm7, %v1084_v61  ;;  %v1802_v58 = vld [vmem:[#allocation3 + $0x8] sm:$0xff] }
 0x718   :  { %4477 = vmatmul.msk.f32.gmra.mxu3 %vm141_vm1, %v1802_v58 }
 0x71e   :  { %v1803_v53 = vld [vmem:[#allocation3 + $0x10] sm:$0xff] }
 0x720   :  { %4478 = vmatmul.msk.f32.gmra.mxu3 %vm141_vm1, %v1803_v53 }
 0x739   :  { %v1162_v41 = vpop.xlane.xlu0 %1161 }
 0x73a   :  { %4861 = vrcp.f32 %v1162_v41  ;;  %v1235_v46 = vand.u32 2147483648, %v1162_v41  ;;  %v1233_v38 = vand.u32 2147483647, %v1162_v41  ;;  %vm1229_vm14 = vweird.f32 %v1162_v41 }
 0x73c   :  { %v1236_v37 = vor.u32 1.1754944e-38, %v1235_v46  ;;  %vm1234_vm0 = vcmp.eq.f32.partialorder %v1233_v38, 8.507059e+37 }
 0x740   :  { %v4862_v62 = vpop.eup %4861 }
 0x741   :  { %v1225_v25 = vmul.f32 %v4862_v62, %v1162_v41  ;;  %v1165_v11 = vpop.xlane.xlu1 %1164  ;;  %vm1230_vm13 = vweird.f32 %v4862_v62 }
 0x742   :  { %4863 = vrcp.f32 %v1165_v11  ;;  %vm1231_vm15 = vmor %vm1229_vm14, %vm1230_vm13  ;;  %v1249_v49 = vand.u32 2147483648, %v1165_v11  ;;  %v1247_v27 = vand.u32 2147483647, %v1165_v11  ;;  %vm1243_vm4 = vweird.f32 %v1165_v11 }
 0x743   :  { %v1226_v60 = vsub.f32 1.0, %v1225_v25 }
 0x744   :  { %v1250_v45 = vor.u32 1.1754944e-38, %v1249_v49  ;;  %vm1248_vm8 = vcmp.eq.f32.partialorder %v1247_v27, 8.507059e+37 }
 0x745   :  { %v1227_v12 = vmul.f32 %v4862_v62, %v1226_v60 }
 0x747   :  { %v1228_v5 = vadd.f32 %v4862_v62, %v1227_v12 }
 0x748   :  { %v4864_v29 = vpop.eup %4863 }
 0x749   :  { %v1239_v32 = vmul.f32 %v4864_v29, %v1165_v11  ;;  %v1232_v33 = vsel %vm1231_vm15, %v4862_v62, %v1228_v5  ;;  %vm1244_vm3 = vweird.f32 %v4864_v29  ;;  %v5027_v11 = vld [vmem:[#allocation2 + $0x20] sm:$0xff] }
 0x74a   :  { %v1237_v4 = vsel %vm1234_vm0, %v1236_v37, %v1232_v33  ;;  %vm1245_vm6 = vmor %vm1243_vm4, %vm1244_vm3 }
 0x74b   :  { %v1240_v23 = vsub.f32 1.0, %v1239_v32  ;;  %v1253_v43 = vmul.f32 %v1237_v4, %v5903_v48  ;;  %v1611_v48 = vpop.permute.xlu2 %1610  ;;  %v5028_v4 = vld [vmem:[#allocation2 + $0x28] sm:$0xff] }
 0x74c   :  { %v1609_v52 = vpop.permute.xlu0 %1608 }
 0x74d   :  { %v1241_v8 = vmul.f32 %v4864_v29, %v1240_v23  ;;  %1617 = vst.msk [vmem:[#allocation3 + $0x18] sm:$0xff] %vm906_vm5, %v1609_v52 }
 0x74e   :  { %1256 = vst.msk [vmem:[#allocation3 + $0x20] sm:$0xff] %vm387_vm12, %v1253_v43 }
 0x74f   :  { %v1242_v22 = vadd.f32 %v4864_v29, %v1241_v8 }
 0x751   :  { %v1246_v54 = vsel %vm1245_vm6, %v4864_v29, %v1242_v22 }
 0x752   :  { %v1251_v28 = vsel %vm1248_vm8, %v1250_v45, %v1246_v54 }
 0x753   :  { %v1254_v55 = vmul.f32 %v1251_v28, %v5940_v50  ;;  %v1613_v13 = vpop.permute.xlu2 %1612 }
 0x754   :  { %v1430_v15 = vpop.permute.xlu0 %1429 }
 0x755   :  { %1437 = vst.msk [vmem:[#allocation3 + $0x20] sm:$0xff] %vm724_vm11, %v1430_v15  ;;  %v2028_v15 = vld [vmem:[%s7410_s11 + $0x10] sm:$0xff] }
 0x756   :  { %1618 = vst.msk [vmem:[#allocation3 + $0x20] sm:$0xff] %vm906_vm5, %v1611_v48  ;;  %v2027_v48 = vld [vmem:[%s7410_s11 + $0x8] sm:$0xff] }
 0x757   :  { %1257 = vst.msk [vmem:[#allocation3 + $0x28] sm:$0xff] %vm387_vm12, %v1254_v55  ;;  %v2029_v55 = vld [vmem:[%s7410_s11 + $0x18] sm:$0xff] }
 0x758   :  { %2064 = vmatpush.msra.mxu1 %v2029_v55 }
 0x759   :  { %v1790_v40 = vpop.permute.xlu1 %1789 }
 0x75a   :  { %1798 = vst.msk [vmem:[#allocation3 + $0x18] sm:$0xff] %vm1088_vm7, %v1790_v40  ;;  %2065 = vmatpush.msra.mxu1 %v2028_v15  ;;  %v2026_v40 = vld [vmem:[%s7410_s11] sm:$0xff] }
 0x75c   :  { %v1792_v42 = vpop.permute.xlu0 %1791  ;;  %2066 = vmatpush.msra.mxu1 %v2027_v48 }
 0x75d   :  { %1799 = vst.msk [vmem:[#allocation3 + $0x20] sm:$0xff] %vm1088_vm7, %v1792_v42 }
 0x75e   :  { %2067 = vmatpush.msra.mxu1 %v2026_v40 }
 0x761   :  { %v1432_v0 = vpop.permute.xlu1 %1431  ;;  %v1804_v17 = vld [vmem:[#allocation3 + $0x18] sm:$0xff] }
 0x762   :  { %1438 = vst.msk [vmem:[#allocation3 + $0x28] sm:$0xff] %vm724_vm11, %v1432_v0  ;;  %4479 = vmatmul.msk.f32.gmra.mxu3 %vm141_vm1, %v1804_v17 }
 0x763   :  { %1619 = vst.msk [vmem:[#allocation3 + $0x28] sm:$0xff] %vm906_vm5, %v1613_v13 }
 0x764   :  { %v1794_v50 = vpop.permute.xlu0 %1793  ;;  %v1805_v18 = vld [vmem:[#allocation3 + $0x20] sm:$0xff] }
 0x765   :  { %1800 = vst.msk [vmem:[#allocation3 + $0x28] sm:$0xff] %vm1088_vm7, %v1794_v50 }
 0x76a   :  { %4480 = vmatmul.msk.f32.gmra.mxu3 %vm141_vm1, %v1805_v18 }
 0x76c   :  { %v1806_v20 = vld [vmem:[#allocation3 + $0x28] sm:$0xff] }
 0x772   :  { %4481 = vmatmul.msk.f32.gmra.mxu3 %vm141_vm1, %v1806_v20 }
 0x793   :  { %v1850_v2 = vpop.f32.mrf.mxu3 }
 0x794   :  { %v1851_v63 = vadd.f32 %v4738_v26, %v1850_v2 }
 0x796   :  { %v6148_v19 = vadd.f32 %v5023_v51, %v1851_v63 }
 0x798   :  { %v1876_v3 = vsel %vm141_vm1, %v6148_v19, 0.0 }
 0x799   :  { %1877 = vadd.xlane.f32.xlu1 %v1876_v3 }
 0x79b   :  { %v1853_v47 = vpop.f32.mrf.mxu3 }
 0x79c   :  { %v1854_v36 = vadd.f32 %v4738_v26, %v1853_v47 }
 0x79e   :  { %v6152_v24 = vadd.f32 %v5024_v39, %v1854_v36 }
 0x7a0   :  { %v1879_v34 = vsel %vm141_vm1, %v6152_v24, 0.0 }
 0x7a1   :  { %1880 = vadd.xlane.f32.xlu2 %v1879_v34 }
 0x7a3   :  { %v1856_v1 = vpop.f32.mrf.mxu3 }
 0x7a4   :  { %v1857_v16 = vadd.f32 %v4738_v26, %v1856_v1 }
 0x7a6   :  { %v6156_v7 = vadd.f32 %v5025_v44, %v1857_v16 }
 0x7a8   :  { %v1882_v9 = vsel %vm141_vm1, %v6156_v7, 0.0 }
 0x7a9   :  { %1883 = vadd.xlane.f32.xlu0 %v1882_v9 }
 0x7e5   :  { %v1859_v14 = vpop.f32.mrf.mxu3 }
 0x7e6   :  { %v1860_v10 = vadd.f32 %v4738_v26, %v1859_v14 }
 0x7e8   :  { %v6160_v6 = vadd.f32 %v5026_v21, %v1860_v10 }
 0x7ea   :  { %v1885_v56 = vsel %vm141_vm1, %v6160_v6, 0.0 }
 0x7eb   :  { %1886 = vadd.xlane.f32.xlu2 %v1885_v56 }
 0x7ed   :  { %v1862_v59 = vpop.f32.mrf.mxu3 }
 0x7ee   :  { %v1863_v53 = vadd.f32 %v4738_v26, %v1862_v59 }
 0x7f0   :  { %v6172_v60 = vadd.f32 %v5027_v11, %v1863_v53 }
 0x7f2   :  { %v1888_v29 = vsel %vm141_vm1, %v6172_v60, 0.0 }
 0x7f5   :  { %v1865_v12 = vpop.f32.mrf.mxu3 }
 0x7f6   :  { %v1866_v5 = vadd.f32 %v4738_v26, %v1865_v12 }
 0x7f8   :  { %v6183_v23 = vadd.f32 %v5028_v4, %v1866_v5 }
 0x7fa   :  { %v1891_v8 = vsel %vm141_vm1, %v6183_v23, 0.0 }
 0x80c   :  { %v1878_v57 = vpop.xlane.xlu1 %1877 }
 0x80d   :  { %v1894_v35 = vmul.f32 %v1878_v57, %v5237_v31 }
 0x80f   :  { %v6166_v61 = vsub.f32 %v6148_v19, %v1894_v35  ;;  %v6229_v35 = vld [vmem:[%s7408_s9] ss:$0 sm:$0xff] }
 0x811   :  { %v1906_v58 = vmul.f32 %v6166_v61, %v6166_v61 }
 0x813   :  { %v1912_v41 = vsel %vm141_vm1, %v1906_v58, 0.0 }
 0x814   :  { %1913 = vadd.xlane.f32.xlu1 %v1912_v41  ;;  %v1881_v62 = vpop.xlane.xlu2 %1880 }
 0x815   :  { %v1895_v25 = vmul.f32 %v1881_v62, %v5237_v31 }
 0x817   :  { %v6175_v46 = vsub.f32 %v6152_v24, %v1895_v25  ;;  %v6238_v25 = vld [vmem:[%s7409_s10] ss:$0 sm:$0xff] }
 0x819   :  { %v1907_v38 = vmul.f32 %v6175_v46, %v6175_v46 }
 0x81b   :  { %v1915_v37 = vsel %vm141_vm1, %v1907_v38, 0.0 }
 0x81c   :  { %v1884_v32 = vpop.xlane.xlu0 %1883  ;;  %1889 = vadd.xlane.f32.xlu1 %v1888_v29  ;;  %1916 = vadd.xlane.f32.xlu0 %v1915_v37 }
 0x81d   :  { %v1896_v33 = vmul.f32 %v1884_v32, %v5237_v31 }
 0x81f   :  { %v6186_v43 = vsub.f32 %v6156_v7, %v1896_v33 }
 0x821   :  { %v1908_v49 = vmul.f32 %v6186_v43, %v6186_v43 }
 0x823   :  { %v1918_v52 = vsel %vm141_vm1, %v1908_v49, 0.0 }
 0x824   :  { %1919 = vadd.xlane.f32.xlu2 %v1918_v52  ;;  %1892 = vadd.xlane.f32.xlu0 %v1891_v8 }
 0x85e   :  { %v1887_v27 = vpop.xlane.xlu2 %1886 }
 0x85f   :  { %v1897_v22 = vmul.f32 %v1887_v27, %v5237_v31 }
 0x861   :  { %v6195_v45 = vsub.f32 %v6160_v6, %v1897_v22 }
 0x863   :  { %v1909_v54 = vmul.f32 %v6195_v45, %v6195_v45 }
 0x865   :  { %v1921_v28 = vsel %vm141_vm1, %v1909_v54, 0.0 }
 0x866   :  { %1922 = vadd.xlane.f32.xlu1 %v1921_v28 }
 0x887   :  { %v1914_v42 = vpop.xlane.xlu1 %1913 }
 0x888   :  { %v1930_v0 = vmul.f32 %v1914_v42, %v5237_v31 }
 0x88a   :  { %v1936_v17 = vadd.f32 1e-06, %v1930_v0 }
 0x88c   :  { %4865 = vrsqrt.f32 %v1936_v17  ;;  %vm1948_vm10 = vweird.f32 %v1936_v17 }
 0x88f   :  { %v1890_v13 = vpop.xlane.xlu1 %1889  ;;  %v1917_v50 = vpop.xlane.xlu0 %1916 }
 0x890   :  { %v1898_v18 = vmul.f32 %v1890_v13, %v5237_v31  ;;  %v1931_v20 = vmul.f32 %v1917_v50, %v5237_v31 }
 0x892   :  { %v4866_v26 = vpop.eup %4865  ;;  %v6216_v2 = vsub.f32 %v6172_v60, %v1898_v18  ;;  %v1937_v63 = vadd.f32 1e-06, %v1931_v20 }
 0x893   :  { %v1943_v51 = vmul.f32 %v4866_v26, %v1936_v17  ;;  %vm1949_vm9 = vweird.f32 %v4866_v26 }
 0x894   :  { %4867 = vrsqrt.f32 %v1937_v63  ;;  %v1910_v3 = vmul.f32 %v6216_v2, %v6216_v2  ;;  %vm1950_vm13 = vmor %vm1948_vm10, %vm1949_vm9  ;;  %vm1958_vm15 = vweird.f32 %v1937_v63 }
 0x895   :  { %v1944_v47 = vmul.f32 %v4866_v26, %v1943_v51  ;;  %v2156_v51 = vld [vmem:[%s7412_s13 + $0x78] sm:$0xff] }
 0x896   :  { %v1924_v36 = vsel %vm141_vm1, %v1910_v3, 0.0  ;;  %2161 = vmatpush.msra.mxu0 %v2156_v51  ;;  %v2155_v3 = vld [vmem:[%s7412_s13 + $0x70] sm:$0xff] }
 0x897   :  { %v1945_v39 = vmul.f32 0.5, %v1944_v47  ;;  %1925 = vadd.xlane.f32.xlu2 %v1924_v36  ;;  %v1893_v34 = vpop.xlane.xlu0 %1892  ;;  %v1920_v1 = vpop.xlane.xlu2 %1919  ;;  %v2153_v47 = vld [vmem:[%s7412_s13 + $0x60] sm:$0xff]  ;;  %v2152_v36 = vld [vmem:[%s7412_s13 + $0x58] sm:$0xff] }
 0x898   :  { %v1899_v16 = vmul.f32 %v1893_v34, %v5237_v31  ;;  %v1932_v44 = vmul.f32 %v1920_v1, %v5237_v31  ;;  %2162 = vmatpush.msra.mxu0 %v2155_v3  ;;  %v2150_v34 = vld [vmem:[%s7412_s13 + $0x48] sm:$0xff]  ;;  %v2149_v1 = vld [vmem:[%s7412_s13 + $0x40] sm:$0xff] }
 0x899   :  { %v1946_v9 = vsub.f32 1.5, %v1945_v39  ;;  %v2151_v39 = vld [vmem:[%s7412_s13 + $0x50] sm:$0xff] }
 0x89a   :  { %v4868_v14 = vpop.eup %4867  ;;  %v6224_v10 = vsub.f32 %v6183_v23, %v1899_v16  ;;  %v1938_v21 = vadd.f32 1e-06, %v1932_v44 }
 0x89b   :  { %v1947_v56 = vmul.f32 %v4866_v26, %v1946_v9  ;;  %v1953_v57 = vmul.f32 %v4868_v14, %v1937_v63  ;;  %vm1959_vm14 = vweird.f32 %v4868_v14  ;;  %v2148_v9 = vld [vmem:[%s7412_s13 + $0x38] sm:$0xff] }
 0x89c   :  { %4869 = vrsqrt.f32 %v1938_v21  ;;  %v1911_v59 = vmul.f32 %v6224_v10, %v6224_v10  ;;  %vm1960_vm0 = vmor %vm1958_vm15, %vm1959_vm14  ;;  %vm1968_vm4 = vweird.f32 %v1938_v21 }
 0x89d   :  { %v1951_v58 = vsel %vm1950_vm13, %v4866_v26, %v1947_v56  ;;  %v1954_v53 = vmul.f32 %v4868_v14, %v1953_v57  ;;  %v2146_v56 = vld [vmem:[%s7412_s13 + $0x28] sm:$0xff]  ;;  %v2145_v57 = vld [vmem:[%s7412_s13 + $0x20] sm:$0xff] }
 0x89e   :  { %v2002_v41 = vmul.f32 %v1951_v58, %v6166_v61  ;;  %v1927_v62 = vsel %vm141_vm1, %v1911_v59, 0.0 }
 0x89f   :  { %v1955_v11 = vmul.f32 0.5, %v1954_v53  ;;  %1928 = vadd.xlane.f32.xlu0 %v1927_v62  ;;  %v2144_v53 = vld [vmem:[%s7412_s13 + $0x18] sm:$0xff] }
 0x8a0   :  { %v2011_v12 = vmul.f32 %v6229_v35, %v2002_v41 }
 0x8a1   :  { %v1956_v38 = vsub.f32 1.5, %v1955_v11  ;;  %v2143_v11 = vld [vmem:[%s7412_s13 + $0x10] sm:$0xff] }
 0x8a2   :  { %v4870_v5 = vpop.eup %4869  ;;  %v2020_v29 = vadd.f32 %v6238_v25, %v2011_v12 }
 0x8a3   :  { %v1957_v37 = vmul.f32 %v4868_v14, %v1956_v38  ;;  %v1963_v32 = vmul.f32 %v4870_v5, %v1938_v21  ;;  %vm1969_vm3 = vweird.f32 %v4870_v5  ;;  %v2147_v21 = vld [vmem:[%s7412_s13 + $0x30] sm:$0xff]  ;;  %v2142_v38 = vld [vmem:[%s7412_s13 + $0x8] sm:$0xff] }
 0x8a4   :  { %4482 = vmatmul.msk.f32.vlgmr.msra.gmra.mxu1 %vm141_vm1, %v2020_v29  ;;  %vm1970_vm6 = vmor %vm1968_vm4, %vm1969_vm3  ;;  %v2141_v29 = vld [vmem:[%s7412_s13] sm:$0xff] }
 0x8a5   :  { %v1964_v61 = vmul.f32 %v4870_v5, %v1963_v32  ;;  %v1961_v33 = vsel %vm1960_vm0, %v4868_v14, %v1957_v37 }
 0x8a6   :  { %v2003_v4 = vmul.f32 %v1961_v33, %v6175_v46 }
 0x8a7   :  { %v1965_v49 = vmul.f32 0.5, %v1964_v61 }
 0x8a8   :  { %v2012_v52 = vmul.f32 %v6229_v35, %v2003_v4 }
 0x8a9   :  { %v1966_v8 = vsub.f32 1.5, %v1965_v49  ;;  %v6309_v49 = vld [vmem:[%s7411_s12] ss:$0 sm:$0xff] }
 0x8aa   :  { %v2021_v27 = vadd.f32 %v6238_v25, %v2012_v52 }
 0x8ab   :  { %v1967_v22 = vmul.f32 %v4870_v5, %v1966_v8 }
 0x8ac   :  { %4483 = vmatmul.msk.f32.gmra.mxu1 %vm141_vm1, %v2021_v27 }
 0x8ad   :  { %v1971_v54 = vsel %vm1970_vm6, %v4870_v5, %v1967_v22 }
 0x8ae   :  { %v2004_v28 = vmul.f32 %v1971_v54, %v6186_v43 }
 0x8b0   :  { %v2013_v55 = vmul.f32 %v6229_v35, %v2004_v28 }
 0x8b2   :  { %v2022_v15 = vadd.f32 %v6238_v25, %v2013_v55 }
 0x8b4   :  { %4484 = vmatmul.msk.f32.gmra.mxu1 %vm141_vm1, %v2022_v15 }
 0x8d9   :  { %v1923_v46 = vpop.xlane.xlu1 %1922 }
 0x8da   :  { %v1933_v48 = vmul.f32 %v1923_v46, %v5237_v31 }
 0x8dc   :  { %v1939_v40 = vadd.f32 1e-06, %v1933_v48 }
 0x8de   :  { %4871 = vrsqrt.f32 %v1939_v40  ;;  %vm1978_vm9 = vweird.f32 %v1939_v40 }
 0x8e4   :  { %v4872_v42 = vpop.eup %4871 }
 0x8e5   :  { %v1973_v0 = vmul.f32 %v4872_v42, %v1939_v40  ;;  %vm1979_vm8 = vweird.f32 %v4872_v42 }
 0x8e6   :  { %vm1980_vm10 = vmor %vm1978_vm9, %vm1979_vm8 }
 0x8e7   :  { %v1974_v17 = vmul.f32 %v4872_v42, %v1973_v0 }
 0x8e9   :  { %v1975_v13 = vmul.f32 0.5, %v1974_v17 }
 0x8eb   :  { %v1976_v50 = vsub.f32 1.5, %v1975_v13 }
 0x8ed   :  { %v1977_v18 = vmul.f32 %v4872_v42, %v1976_v50 }
 0x8ef   :  { %v1981_v43 = vsel %vm1980_vm10, %v4872_v42, %v1977_v18 }
 0x8f0   :  { %v2005_v20 = vmul.f32 %v1981_v43, %v6195_v45  ;;  %v2154_v45 = vld [vmem:[%s7412_s13 + $0x68] sm:$0xff] }
 0x8f1   :  { %2163 = vmatpush.msra.mxu0 %v2154_v45 }
 0x8f2   :  { %v2014_v26 = vmul.f32 %v6229_v35, %v2005_v20 }
 0x8f3   :  { %2164 = vmatpush.msra.mxu0 %v2153_v47 }
 0x8f4   :  { %v2023_v63 = vadd.f32 %v6238_v25, %v2014_v26 }
 0x8f5   :  { %2165 = vmatpush.msra.mxu0 %v2152_v36 }
 0x8f6   :  { %4485 = vmatmul.msk.f32.gmra.mxu1 %vm141_vm1, %v2023_v63 }
 0x8f7   :  { %2166 = vmatpush.msra.mxu0 %v2151_v39 }
 0x8f9   :  { %2167 = vmatpush.msra.mxu0 %v2150_v34 }
 0x8fb   :  { %2168 = vmatpush.msra.mxu0 %v2149_v1 }
 0x8fd   :  { %2169 = vmatpush.msra.mxu0 %v2148_v9 }
 0x8ff   :  { %2170 = vmatpush.msra.mxu0 %v2147_v21 }
 0x901   :  { %2171 = vmatpush.msra.mxu0 %v2146_v56 }
 0x903   :  { %2172 = vmatpush.msra.mxu0 %v2145_v57 }
 0x905   :  { %2173 = vmatpush.msra.mxu0 %v2144_v53 }
 0x907   :  { %2174 = vmatpush.msra.mxu0 %v2143_v11 }
 0x909   :  { %2175 = vmatpush.msra.mxu0 %v2142_v38 }
 0x90a   :  { %v1926_v16 = vpop.xlane.xlu2 %1925 }
 0x90b   :  { %v1934_v44 = vmul.f32 %v1926_v16, %v5237_v31  ;;  %2176 = vmatpush.msra.mxu0 %v2141_v29 }
 0x90d   :  { %v1940_v14 = vadd.f32 1e-06, %v1934_v44 }
 0x90f   :  { %4873 = vrsqrt.f32 %v1940_v14  ;;  %vm1988_vm14 = vweird.f32 %v1940_v14 }
 0x912   :  { %v1929_v59 = vpop.xlane.xlu0 %1928 }
 0x913   :  { %v1935_v58 = vmul.f32 %v1929_v59, %v5237_v31 }
 0x915   :  { %v4874_v41 = vpop.eup %4873  ;;  %v1941_v62 = vadd.f32 1e-06, %v1935_v58 }
 0x916   :  { %v1983_v12 = vmul.f32 %v4874_v41, %v1940_v14  ;;  %vm1989_vm13 = vweird.f32 %v4874_v41 }
 0x917   :  { %4875 = vrsqrt.f32 %v1941_v62  ;;  %vm1990_vm15 = vmor %vm1988_vm14, %vm1989_vm13  ;;  %vm1998_vm3 = vweird.f32 %v1941_v62 }
 0x918   :  { %v1984_v5 = vmul.f32 %v4874_v41, %v1983_v12 }
 0x91a   :  { %v1985_v37 = vmul.f32 0.5, %v1984_v5 }
 0x91c   :  { %v1986_v32 = vsub.f32 1.5, %v1985_v37 }
 0x91d   :  { %v4876_v61 = vpop.eup %4875 }
 0x91e   :  { %v1987_v33 = vmul.f32 %v4874_v41, %v1986_v32  ;;  %v1993_v4 = vmul.f32 %v4876_v61, %v1941_v62  ;;  %vm1999_vm0 = vweird.f32 %v4876_v61 }
 0x91f   :  { %vm2000_vm4 = vmor %vm1998_vm3, %vm1999_vm0 }
 0x920   :  { %v1991_v52 = vsel %vm1990_vm15, %v4874_v41, %v1987_v33  ;;  %v1994_v8 = vmul.f32 %v4876_v61, %v1993_v4 }
 0x921   :  { %v2069_v27 = vpop.f32.mrf.mxu1  ;;  %v2006_v22 = vmul.f32 %v1991_v52, %v6216_v2 }
 0x922   :  { %v1995_v54 = vmul.f32 0.5, %v1994_v8  ;;  %v2070_v28 = vadd.f32 %v6309_v49, %v2069_v27 }
 0x923   :  { %v2015_v55 = vmul.f32 %v6229_v35, %v2006_v22 }
 0x924   :  { %v1996_v15 = vsub.f32 1.5, %v1995_v54  ;;  %v2093_v46 = vmul.f32 0.044715, %v2070_v28  ;;  %v2087_v1 = vmul.f32 0.5, %v2070_v28 }
 0x925   :  { %v2024_v48 = vadd.f32 %v6238_v25, %v2015_v55 }
 0x926   :  { %v1997_v40 = vmul.f32 %v4876_v61, %v1996_v15  ;;  %v2099_v42 = vmul.f32 %v2093_v46, %v2070_v28 }
 0x927   :  { %4486 = vmatmul.msk.f32.gmra.mxu1 %vm141_vm1, %v2024_v48 }
 0x928   :  { %v2105_v0 = vmul.f32 %v2099_v42, %v2070_v28  ;;  %v2001_v17 = vsel %vm2000_vm4, %v4876_v61, %v1997_v40 }
 0x929   :  { %v2072_v13 = vpop.f32.mrf.mxu1  ;;  %v2007_v2 = vmul.f32 %v2001_v17, %v6224_v10 }
 0x92a   :  { %v2073_v50 = vadd.f32 %v6309_v49, %v2072_v13  ;;  %v2111_v18 = vadd.f32 %v2105_v0, %v2070_v28  ;;  %v4742_v0 = vld [vmem:[%s7413_s14] ss:$0 sm:$0xff] }
 0x92b   :  { %v2016_v43 = vmul.f32 %v6229_v35, %v2007_v2 }
 0x92c   :  { %v2117_v20 = vmul.f32 0.7978846, %v2111_v18  ;;  %v2094_v26 = vmul.f32 0.044715, %v2073_v50  ;;  %v2088_v56 = vmul.f32 0.5, %v2073_v50 }
 0x92d   :  { %v2025_v63 = vadd.f32 %v6238_v25, %v2016_v43 }
 0x92e   :  { %4877 = vtanh.f32 %v2117_v20  ;;  %v2100_v51 = vmul.f32 %v2094_v26, %v2073_v50 }
 0x92f   :  { %4487 = vmatmul.msk.f32.gmra.mxu1 %vm141_vm1, %v2025_v63 }
 0x930   :  { %v2106_v3 = vmul.f32 %v2100_v51, %v2073_v50 }
 0x931   :  { %v2075_v45 = vpop.f32.mrf.mxu1 }
 0x932   :  { %v2076_v47 = vadd.f32 %v6309_v49, %v2075_v45  ;;  %v2112_v36 = vadd.f32 %v2106_v3, %v2073_v50 }
 0x934   :  { %v4878_v39 = vpop.eup %4877  ;;  %v2118_v10 = vmul.f32 0.7978846, %v2112_v36  ;;  %v2095_v34 = vmul.f32 0.044715, %v2076_v47  ;;  %v2089_v53 = vmul.f32 0.5, %v2076_v47 }
 0x935   :  { %v2129_v16 = vadd.f32 1.0, %v4878_v39 }
 0x936   :  { %4879 = vtanh.f32 %v2118_v10  ;;  %v2101_v35 = vmul.f32 %v2095_v34, %v2076_v47 }
 0x937   :  { %v2135_v44 = vmul.f32 %v2129_v16, %v2087_v1 }
 0x938   :  { %v2107_v9 = vmul.f32 %v2101_v35, %v2076_v47 }
 0x939   :  { %2177 = vmatmul.f32.vlgmr.msra.gmra.mxu0 %v2135_v44 }
 0x93a   :  { %v2113_v25 = vadd.f32 %v2107_v9, %v2076_v47 }
 0x93c   :  { %v4880_v14 = vpop.eup %4879  ;;  %v2119_v21 = vmul.f32 0.7978846, %v2113_v25 }
 0x93d   :  { %v2130_v57 = vadd.f32 1.0, %v4880_v14 }
 0x93e   :  { %4881 = vtanh.f32 %v2119_v21 }
 0x93f   :  { %v2136_v59 = vmul.f32 %v2130_v57, %v2088_v56 }
 0x941   :  { %2180 = vmatmul.f32.gmra.mxu0 %v2136_v59 }
 0x944   :  { %v4882_v58 = vpop.eup %4881 }
 0x945   :  { %v2131_v41 = vadd.f32 1.0, %v4882_v58 }
 0x947   :  { %v2137_v62 = vmul.f32 %v2131_v41, %v2089_v53 }
 0x949   :  { %2183 = vmatmul.f32.gmra.mxu0 %v2137_v62 }
 0x973   :  { %v2078_v11 = vpop.f32.mrf.mxu1 }
 0x974   :  { %v2079_v12 = vadd.f32 %v6309_v49, %v2078_v11 }
 0x976   :  { %v2096_v38 = vmul.f32 0.044715, %v2079_v12  ;;  %v2090_v33 = vmul.f32 0.5, %v2079_v12 }
 0x978   :  { %v2102_v5 = vmul.f32 %v2096_v38, %v2079_v12 }
 0x97a   :  { %v2108_v29 = vmul.f32 %v2102_v5, %v2079_v12 }
 0x97c   :  { %v2114_v37 = vadd.f32 %v2108_v29, %v2079_v12 }
 0x97e   :  { %v2120_v32 = vmul.f32 0.7978846, %v2114_v37 }
 0x980   :  { %4883 = vtanh.f32 %v2120_v32 }
 0x986   :  { %v4884_v61 = vpop.eup %4883 }
 0x987   :  { %v2132_v4 = vadd.f32 1.0, %v4884_v61 }
 0x989   :  { %v2138_v52 = vmul.f32 %v2132_v4, %v2090_v33 }
 0x98b   :  { %2186 = vmatmul.f32.gmra.mxu0 %v2138_v52 }
 0x9a4   :  { %v2081_v8 = vpop.f32.mrf.mxu1 }
 0x9a5   :  { %v2082_v27 = vadd.f32 %v6309_v49, %v2081_v8 }
 0x9a7   :  { %v2097_v22 = vmul.f32 0.044715, %v2082_v27  ;;  %v2091_v20 = vmul.f32 0.5, %v2082_v27 }
 0x9a9   :  { %v2103_v54 = vmul.f32 %v2097_v22, %v2082_v27 }
 0x9ab   :  { %v2109_v28 = vmul.f32 %v2103_v54, %v2082_v27 }
 0x9ac   :  { %v2084_v55 = vpop.f32.mrf.mxu1 }
 0x9ad   :  { %v2085_v15 = vadd.f32 %v6309_v49, %v2084_v55  ;;  %v2115_v46 = vadd.f32 %v2109_v28, %v2082_v27 }
 0x9af   :  { %v2121_v48 = vmul.f32 0.7978846, %v2115_v46  ;;  %v2098_v40 = vmul.f32 0.044715, %v2085_v15  ;;  %v2092_v47 = vmul.f32 0.5, %v2085_v15 }
 0x9b1   :  { %4885 = vtanh.f32 %v2121_v48  ;;  %v2104_v42 = vmul.f32 %v2098_v40, %v2085_v15 }
 0x9b3   :  { %v2110_v17 = vmul.f32 %v2104_v42, %v2085_v15 }
 0x9b5   :  { %v2116_v13 = vadd.f32 %v2110_v17, %v2085_v15  ;;  %v4492_v17 = vld [vmem:[%s7460_s27 + $0x30] sm:$0xff] }
 0x9b6   :  { %v2178_v2 = vpop.f32.mrf.mxu0 }
 0x9b7   :  { %v4886_v50 = vpop.eup %4885  ;;  %v2179_v18 = vadd.f32 %v4742_v0, %v2178_v2  ;;  %v2122_v43 = vmul.f32 0.7978846, %v2116_v13  ;;  %v4491_v13 = vld [vmem:[%s7460_s27 + $0x28] sm:$0xff]  ;;  %v4490_v2 = vld [vmem:[%s7460_s27 + $0x20] sm:$0xff] }
 0x9b8   :  { %v2133_v26 = vadd.f32 1.0, %v4886_v50 }
 0x9b9   :  { %v2196_v63 = vadd.f32 %v2179_v18, %v6148_v19  ;;  %4887 = vtanh.f32 %v2122_v43 }
 0x9ba   :  { %v2139_v49 = vmul.f32 %v2133_v26, %v2091_v20 }
 0x9bb   :  { %2202 = vst.msk [vmem:[#allocation2] sm:$0xff] %vm141_vm1, %v2196_v63 }
 0x9bc   :  { %2189 = vmatmul.f32.gmra.mxu0 %v2139_v49 }
 0x9be   :  { %v2181_v51 = vpop.f32.mrf.mxu0 }
 0x9bf   :  { %v4888_v3 = vpop.eup %4887  ;;  %v2182_v45 = vadd.f32 %v4742_v0, %v2181_v51 }
 0x9c0   :  { %v2134_v36 = vadd.f32 1.0, %v4888_v3 }
 0x9c1   :  { %v2197_v39 = vadd.f32 %v2182_v45, %v6152_v24 }
 0x9c2   :  { %v2208_v10 = vld [vmem:[#allocation2] sm:$0xff]  ;;  %v2140_v34 = vmul.f32 %v2134_v36, %v2092_v47 }
 0x9c3   :  { %2203 = vst.msk [vmem:[#allocation2 + $0x8] sm:$0xff] %vm141_vm1, %v2197_v39  ;;  %v2218_v1 = vsel %vm141_vm1, %v2208_v10, 0.0 }
 0x9c4   :  { %2219 = vadd.xlane.f32.xlu1 %v2218_v1  ;;  %2192 = vmatmul.f32.gmra.mxu0 %v2140_v34 }
 0x9c6   :  { %v2184_v19 = vpop.f32.mrf.mxu0 }
 0x9c7   :  { %v2185_v16 = vadd.f32 %v4742_v0, %v2184_v19 }
 0x9c9   :  { %v2198_v35 = vadd.f32 %v2185_v16, %v6156_v7 }
 0x9ca   :  { %v2209_v44 = vld [vmem:[#allocation2 + $0x8] sm:$0xff] }
 0x9cb   :  { %2204 = vst.msk [vmem:[#allocation2 + $0x10] sm:$0xff] %vm141_vm1, %v2198_v35  ;;  %v2221_v9 = vsel %vm141_vm1, %v2209_v44, 0.0 }
 0x9cc   :  { %2222 = vadd.xlane.f32.xlu2 %v2221_v9 }
 0x9d2   :  { %v2210_v25 = vld [vmem:[#allocation2 + $0x10] sm:$0xff] }
 0x9d3   :  { %v2224_v24 = vsel %vm141_vm1, %v2210_v25, 0.0 }
 0x9d4   :  { %2225 = vadd.xlane.f32.xlu0 %v2224_v24 }
 0xa08   :  { %v2187_v14 = vpop.f32.mrf.mxu0 }
 0xa09   :  { %v2188_v21 = vadd.f32 %v4742_v0, %v2187_v14 }
 0xa0b   :  { %v2199_v56 = vadd.f32 %v2188_v21, %v6160_v6 }
 0xa0d   :  { %2205 = vst.msk [vmem:[#allocation2 + $0x18] sm:$0xff] %vm141_vm1, %v2199_v56  ;;  %v6397_v56 = vld [vmem:[%s7461_s26 + $0x1] ss:$0 sm:$0xff] }
 0xa14   :  { %v2211_v57 = vld [vmem:[#allocation2 + $0x18] sm:$0xff] }
 0xa15   :  { %v2227_v59 = vsel %vm141_vm1, %v2211_v57, 0.0 }
 0xa16   :  { %2228 = vadd.xlane.f32.xlu2 %v2227_v59 }
 0xa37   :  { %v2220_v7 = vpop.xlane.xlu1 %2219 }
 0xa38   :  { %v2236_v58 = vmul.f32 %v2220_v7, %v5237_v31 }
 0xa39   :  { %v2190_v53 = vpop.f32.mrf.mxu0 }
 0xa3a   :  { %v6341_v41 = vsub.f32 %v2208_v10, %v2236_v58  ;;  %v2191_v62 = vadd.f32 %v4742_v0, %v2190_v53 }
 0xa3c   :  { %v2200_v11 = vadd.f32 %v2191_v62, %v6172_v60  ;;  %v2248_v12 = vmul.f32 %v6341_v41, %v6341_v41  ;;  %v6406_v62 = vld [vmem:[%s7462_s30 + $0x1] ss:$0 sm:$0xff] }
 0xa3e   :  { %2206 = vst.msk [vmem:[#allocation2 + $0x20] sm:$0xff] %vm141_vm1, %v2200_v11  ;;  %v2254_v6 = vsel %vm141_vm1, %v2248_v12, 0.0 }
 0xa3f   :  { %2255 = vadd.xlane.f32.xlu1 %v2254_v6  ;;  %v2223_v38 = vpop.xlane.xlu2 %2222 }
 0xa40   :  { %v2237_v5 = vmul.f32 %v2223_v38, %v5237_v31 }
 0xa41   :  { %v2193_v29 = vpop.f32.mrf.mxu0 }
 0xa42   :  { %v6349_v37 = vsub.f32 %v2209_v44, %v2237_v5  ;;  %v2194_v32 = vadd.f32 %v4742_v0, %v2193_v29  ;;  %v4493_v0 = vld [vmem:[%s7460_s27 + $0x38] sm:$0xff]  ;;  %s7489_s27 = smov 16  }
 0xa43   :  { %2408 = vmatpush.msrb.mxu2 %v4493_v0 }
 0xa44   :  { %v2201_v61 = vadd.f32 %v2194_v32, %v6183_v23  ;;  %v2249_v60 = vmul.f32 %v6349_v37, %v6349_v37 }
 0xa45   :  { %v2212_v33 = vld [vmem:[#allocation2 + $0x20] sm:$0xff]  ;;  %2409 = vmatpush.msrb.mxu2 %v4492_v17 }
 0xa46   :  { %2207 = vst.msk [vmem:[#allocation2 + $0x28] sm:$0xff] %vm141_vm1, %v2201_v61  ;;  %v2230_v4 = vsel %vm141_vm1, %v2212_v33, 0.0  ;;  %v2257_v52 = vsel %vm141_vm1, %v2249_v60, 0.0 }
 0xa47   :  { %v2226_v8 = vpop.xlane.xlu0 %2225  ;;  %2231 = vadd.xlane.f32.xlu1 %v2230_v4  ;;  %2258 = vadd.xlane.f32.xlu0 %v2257_v52 }
 0xa48   :  { %v2238_v27 = vmul.f32 %v2226_v8, %v5237_v31  ;;  %2410 = vmatpush.msrb.mxu2 %v4491_v13 }
 0xa4a   :  { %v6358_v22 = vsub.f32 %v2210_v25, %v2238_v27  ;;  %2411 = vmatpush.msrb.mxu2 %v4490_v2 }
 0xa4c   :  { %v2250_v23 = vmul.f32 %v6358_v22, %v6358_v22 }
 0xa4d   :  { %v2213_v54 = vld [vmem:[#allocation2 + $0x28] sm:$0xff] }
 0xa4e   :  { %v2260_v28 = vsel %vm141_vm1, %v2250_v23, 0.0  ;;  %v2233_v55 = vsel %vm141_vm1, %v2213_v54, 0.0 }
 0xa4f   :  { %2261 = vadd.xlane.f32.xlu2 %v2260_v28  ;;  %2234 = vadd.xlane.f32.xlu0 %v2233_v55 }
 0xa89   :  { %v2229_v15 = vpop.xlane.xlu2 %2228 }
 0xa8a   :  { %v2239_v46 = vmul.f32 %v2229_v15, %v5237_v31 }
 0xa8c   :  { %v6365_v48 = vsub.f32 %v2211_v57, %v2239_v46 }
 0xa8e   :  { %v2251_v40 = vmul.f32 %v6365_v48, %v6365_v48 }
 0xa90   :  { %v2263_v42 = vsel %vm141_vm1, %v2251_v40, 0.0 }
 0xa91   :  { %2264 = vadd.xlane.f32.xlu1 %v2263_v42 }
 0xab2   :  { %v2256_v50 = vpop.xlane.xlu1 %2255 }
 0xab3   :  { %v2272_v18 = vmul.f32 %v2256_v50, %v5237_v31 }
 0xab5   :  { %v2278_v43 = vadd.f32 1e-06, %v2272_v18 }
 0xab7   :  { %4889 = vrsqrt.f32 %v2278_v43  ;;  %vm2290_vm8 = vweird.f32 %v2278_v43 }
 0xaba   :  { %v2232_v20 = vpop.xlane.xlu1 %2231  ;;  %v2259_v26 = vpop.xlane.xlu0 %2258 }
 0xabb   :  { %v2240_v63 = vmul.f32 %v2232_v20, %v5237_v31  ;;  %v2273_v49 = vmul.f32 %v2259_v26, %v5237_v31 }
 0xabd   :  { %v4890_v51 = vpop.eup %4889  ;;  %v6385_v3 = vsub.f32 %v2212_v33, %v2240_v63  ;;  %v2279_v45 = vadd.f32 1e-06, %v2273_v49 }
 0xabe   :  { %v2285_v47 = vmul.f32 %v4890_v51, %v2278_v43  ;;  %vm2291_vm6 = vweird.f32 %v4890_v51 }
 0xabf   :  { %4891 = vrsqrt.f32 %v2279_v45  ;;  %v2252_v36 = vmul.f32 %v6385_v3, %v6385_v3  ;;  %vm2292_vm9 = vmor %vm2290_vm8, %vm2291_vm6  ;;  %vm2300_vm13 = vweird.f32 %v2279_v45 }
 0xac0   :  { %v2286_v39 = vmul.f32 %v4890_v51, %v2285_v47 }
 0xac1   :  { %v2266_v10 = vsel %vm141_vm1, %v2252_v36, 0.0 }
 0xac2   :  { %v2287_v34 = vmul.f32 0.5, %v2286_v39  ;;  %2267 = vadd.xlane.f32.xlu2 %v2266_v10  ;;  %v2235_v1 = vpop.xlane.xlu0 %2234  ;;  %v2262_v19 = vpop.xlane.xlu2 %2261 }
 0xac3   :  { %v2241_v16 = vmul.f32 %v2235_v1, %v5237_v31  ;;  %v2274_v35 = vmul.f32 %v2262_v19, %v5237_v31 }
 0xac4   :  { %v2288_v44 = vsub.f32 1.5, %v2287_v34 }
 0xac5   :  { %v4892_v9 = vpop.eup %4891  ;;  %v6392_v25 = vsub.f32 %v2213_v54, %v2241_v16  ;;  %v2280_v24 = vadd.f32 1e-06, %v2274_v35 }
 0xac6   :  { %v2289_v14 = vmul.f32 %v4890_v51, %v2288_v44  ;;  %v2295_v21 = vmul.f32 %v4892_v9, %v2279_v45  ;;  %vm2301_vm10 = vweird.f32 %v4892_v9 }
 0xac7   :  { %4893 = vrsqrt.f32 %v2280_v24  ;;  %v2253_v57 = vmul.f32 %v6392_v25, %v6392_v25  ;;  %vm2302_vm14 = vmor %vm2300_vm13, %vm2301_vm10  ;;  %vm2310_vm0 = vweird.f32 %v2280_v24 }
 0xac8   :  { %v2293_v59 = vsel %vm2292_vm9, %v4890_v51, %v2289_v14  ;;  %v2296_v7 = vmul.f32 %v4892_v9, %v2295_v21  ;;  %v6431_v21 = vld [vmem:[%s7405_s6 + $0x1] ss:$0 sm:$0xff]  ;;  %s7473_s6 = smov 96  }
 0xac9   :  { %v2344_v58 = vmul.f32 %v2293_v59, %v6341_v41  ;;  %v2269_v53 = vsel %vm141_vm1, %v2253_v57, 0.0 }
 0xaca   :  { %v2297_v11 = vmul.f32 0.5, %v2296_v7  ;;  %2270 = vadd.xlane.f32.xlu0 %v2269_v53 }
 0xacb   :  { %v2353_v12 = vmul.f32 %v6397_v56, %v2344_v58 }
 0xacc   :  { %v2298_v6 = vsub.f32 1.5, %v2297_v11 }
 0xacd   :  { %v4894_v38 = vpop.eup %4893  ;;  %v2362_v5 = vadd.f32 %v6406_v62, %v2353_v12 }
 0xace   :  { %v2299_v29 = vmul.f32 %v4892_v9, %v2298_v6  ;;  %v2305_v32 = vmul.f32 %v4894_v38, %v2280_v24  ;;  %vm2311_vm15 = vweird.f32 %v4894_v38 }
 0xacf   :  { %4495 = vmatmul.msk.f32.vlgmr.msrb.gmra.mxu2 %vm141_vm1, %v2362_v5  ;;  %vm2312_vm3 = vmor %vm2310_vm0, %vm2311_vm15 }
 0xad0   :  { %v2306_v41 = vmul.f32 %v4894_v38, %v2305_v32  ;;  %v2303_v61 = vsel %vm2302_vm14, %v4892_v9, %v2299_v29 }
 0xad1   :  { %v2345_v60 = vmul.f32 %v2303_v61, %v6349_v37 }
 0xad2   :  { %v2307_v33 = vmul.f32 0.5, %v2306_v41 }
 0xad3   :  { %v2354_v4 = vmul.f32 %v6397_v56, %v2345_v60 }
 0xad4   :  { %v2308_v52 = vsub.f32 1.5, %v2307_v33 }
 0xad5   :  { %v2363_v8 = vadd.f32 %v6406_v62, %v2354_v4 }
 0xad6   :  { %v2309_v27 = vmul.f32 %v4894_v38, %v2308_v52 }
 0xad7   :  { %4496 = vmatmul.msk.f32.gmra.mxu2 %vm141_vm1, %v2363_v8 }
 0xad8   :  { %v2313_v23 = vsel %vm2312_vm3, %v4894_v38, %v2309_v27 }
 0xad9   :  { %v2346_v54 = vmul.f32 %v2313_v23, %v6358_v22 }
 0xadb   :  { %v2355_v28 = vmul.f32 %v6397_v56, %v2346_v54 }
 0xadd   :  { %v2364_v55 = vadd.f32 %v6406_v62, %v2355_v28 }
 0xadf   :  { %4497 = vmatmul.msk.f32.gmra.mxu2 %vm141_vm1, %v2364_v55 }
 0xb04   :  { %v2265_v37 = vpop.xlane.xlu1 %2264 }
 0xb05   :  { %v2275_v15 = vmul.f32 %v2265_v37, %v5237_v31 }
 0xb07   :  { %v2281_v46 = vadd.f32 1e-06, %v2275_v15 }
 0xb09   :  { %4895 = vrsqrt.f32 %v2281_v46  ;;  %vm2320_vm6 = vweird.f32 %v2281_v46 }
 0xb0f   :  { %v4896_v40 = vpop.eup %4895 }
 0xb10   :  { %v2315_v42 = vmul.f32 %v4896_v40, %v2281_v46  ;;  %vm2321_vm4 = vweird.f32 %v4896_v40 }
 0xb11   :  { %vm2322_vm8 = vmor %vm2320_vm6, %vm2321_vm4 }
 0xb12   :  { %v2316_v0 = vmul.f32 %v4896_v40, %v2315_v42 }
 0xb14   :  { %v2317_v17 = vmul.f32 0.5, %v2316_v0 }
 0xb16   :  { %v2318_v13 = vsub.f32 1.5, %v2317_v17 }
 0xb18   :  { %v2319_v2 = vmul.f32 %v4896_v40, %v2318_v13 }
 0xb1a   :  { %v2323_v22 = vsel %vm2322_vm8, %v4896_v40, %v2319_v2 }
 0xb1b   :  { %v2347_v50 = vmul.f32 %v2323_v22, %v6365_v48 }
 0xb1d   :  { %v2356_v18 = vmul.f32 %v6397_v56, %v2347_v50 }
 0xb1f   :  { %v2365_v43 = vadd.f32 %v6406_v62, %v2356_v18 }
 0xb21   :  { %4498 = vmatmul.msk.f32.gmra.mxu2 %vm141_vm1, %v2365_v43 }
 0xb35   :  { %v2268_v20 = vpop.xlane.xlu2 %2267 }
 0xb36   :  { %v2276_v26 = vmul.f32 %v2268_v20, %v5237_v31 }
 0xb38   :  { %v2282_v63 = vadd.f32 1e-06, %v2276_v26 }
 0xb3a   :  { %4897 = vrsqrt.f32 %v2282_v63  ;;  %vm2330_vm10 = vweird.f32 %v2282_v63 }
 0xb3d   :  { %v2271_v49 = vpop.xlane.xlu0 %2270 }
 0xb3e   :  { %v2277_v51 = vmul.f32 %v2271_v49, %v5237_v31 }
 0xb40   :  { %v4898_v45 = vpop.eup %4897  ;;  %v2283_v47 = vadd.f32 1e-06, %v2277_v51 }
 0xb41   :  { %v2325_v36 = vmul.f32 %v4898_v45, %v2282_v63  ;;  %vm2331_vm9 = vweird.f32 %v4898_v45 }
 0xb42   :  { %4899 = vrsqrt.f32 %v2283_v47  ;;  %vm2332_vm13 = vmor %vm2330_vm10, %vm2331_vm9  ;;  %vm2340_vm15 = vweird.f32 %v2283_v47 }
 0xb43   :  { %v2326_v39 = vmul.f32 %v4898_v45, %v2325_v36 }
 0xb45   :  { %v2327_v48 = vmul.f32 0.5, %v2326_v39 }
 0xb47   :  { %v2328_v10 = vsub.f32 1.5, %v2327_v48 }
 0xb48   :  { %v4900_v34 = vpop.eup %4899 }
 0xb49   :  { %v2329_v1 = vmul.f32 %v4898_v45, %v2328_v10  ;;  %v2335_v19 = vmul.f32 %v4900_v34, %v2283_v47  ;;  %vm2341_vm14 = vweird.f32 %v4900_v34 }
 0xb4a   :  { %vm2342_vm0 = vmor %vm2340_vm15, %vm2341_vm14 }
 0xb4b   :  { %v2333_v16 = vsel %vm2332_vm13, %v4898_v45, %v2329_v1  ;;  %v2336_v35 = vmul.f32 %v4900_v34, %v2335_v19 }
 0xb4c   :  { %v2348_v44 = vmul.f32 %v2333_v16, %v6385_v3 }
 0xb4d   :  { %v2337_v9 = vmul.f32 0.5, %v2336_v35 }
 0xb4e   :  { %v2357_v24 = vmul.f32 %v6397_v56, %v2348_v44 }
 0xb4f   :  { %v2338_v14 = vsub.f32 1.5, %v2337_v9 }
 0xb50   :  { %v2366_v57 = vadd.f32 %v6406_v62, %v2357_v24 }
 0xb51   :  { %v2339_v59 = vmul.f32 %v4900_v34, %v2338_v14 }
 0xb52   :  { %v2413_v7 = vpop.f32.mrf.mxu2  ;;  %4499 = vmatmul.msk.f32.gmra.mxu2 %vm141_vm1, %v2366_v57 }
 0xb53   :  { %v6436_v3 = vadd.f32 %v6431_v21, %v2413_v7  ;;  %v2343_v58 = vsel %vm2342_vm0, %v4900_v34, %v2339_v59 }
 0xb54   :  { %v2349_v53 = vmul.f32 %v2343_v58, %v6392_v25 }
 0xb55   :  { %2597 = vrot.lane.b32.xlu2 %v6436_v3, %s5067_s4  ;;  %2603 = vrot.lane.b32.xlu0 %v6436_v3, %s5064_s3 }
 0xb56   :  { %2434 = vrot.lane.b32.xlu1 %v6436_v3, %s7473_s6  ;;  %v2358_v11 = vmul.f32 %v6397_v56, %v2349_v53 }
 0xb58   :  { %v2367_v12 = vadd.f32 %v6406_v62, %v2358_v11 }
 0xb5a   :  { %v2416_v6 = vpop.f32.mrf.mxu2  ;;  %4500 = vmatmul.msk.f32.gmra.mxu2 %vm141_vm1, %v2367_v12 }
 0xb5b   :  { %v6449_v38 = vadd.f32 %v6431_v21, %v2416_v6 }
 0xb5d   :  { %2605 = vrot.lane.b32.xlu2 %v6449_v38, %s5064_s3  ;;  %2436 = vrot.lane.b32.xlu0 %v6449_v38, %s7473_s6 }
 0xb62   :  { %v2419_v25 = vpop.f32.mrf.mxu2 }
 0xb63   :  { %v6456_v5 = vadd.f32 %v6431_v21, %v2419_v25 }
 0xb65   :  { %2786 = vrot.lane.b32.xlu0 %v6449_v38, %s7474_s0  ;;  %2607 = vrot.lane.b32.xlu2 %v6456_v5, %s5064_s3  ;;  %v4690_v50 = vpack.i.bf16 %v6449_v38, %v6456_v5 }
 0xb66   :  { %2438 = vrot.lane.b32.xlu1 %v6456_v5, %s7473_s6 }
 0xb6d   :  { %2788 = vrot.lane.b32.xlu0 %v6456_v5, %s7474_s0  ;;  %2967 = vrot.lane.b32.xlu2 %v6449_v38, %s7475_s5 }
 0xb6e   :  { %2599 = vrot.lane.b32.xlu1 %v6449_v38, %s5067_s4 }
 0xb75   :  { %2965 = vrot.lane.b32.xlu0 %v6436_v3, %s7475_s5  ;;  %2778 = vrot.lane.b32.xlu2 %v6436_v3, %s7476_s23 }
 0xb76   :  { %2784 = vrot.lane.b32.xlu1 %v6436_v3, %s7474_s0 }
 0xb7d   :  { %2780 = vrot.lane.b32.xlu0 %v6449_v38, %s7476_s23  ;;  %2969 = vrot.lane.b32.xlu2 %v6456_v5, %s7475_s5 }
 0xb7e   :  { %2959 = vrot.lane.b32.xlu1 %v6436_v3, %s7477_s29 }
 0xb85   :  { %2961 = vrot.lane.b32.xlu2 %v6449_v38, %s7477_s29 }
 0xb86   :  { %2601 = vrot.lane.b32.xlu1 %v6456_v5, %s5067_s4 }
 0xb8d   :  { %2782 = vrot.lane.b32.xlu2 %v6456_v5, %s7476_s23 }
 0xb8e   :  { %2963 = vrot.lane.b32.xlu1 %v6456_v5, %s7477_s29 }
 0xba4   :  { %v2422_v61 = vpop.f32.mrf.mxu2 }
 0xba5   :  { %v6506_v55 = vadd.f32 %v6431_v21, %v2422_v61 }
 0xbaf   :  { %v2598_v56 = vpop.permute.xlu2 %2597 }
 0xbb7   :  { %v2606_v62 = vpop.permute.xlu2 %2605 }
 0xbbf   :  { %v2608_v29 = vpop.permute.xlu2 %2607 }
 0xbc0   :  { %4510 = vmatpush.xpose.msk.msra.mxu2 %vm387_vm12, %v2608_v29 }
 0xbc4   :  { %4511 = vmatpush.xpose.msk.msra.mxu2 %vm387_vm12, %v2606_v62 }
 0xbc7   :  { %v2604_v32 = vpop.permute.xlu0 %2603  ;;  %v2968_v41 = vpop.permute.xlu2 %2967 }
 0xbc8   :  { %4512 = vmatpush.xpose.msk.msra.mxu2 %vm387_vm12, %v2604_v32  ;;  %v2435_v4 = vpop.permute.xlu1 %2434 }
 0xbcb   :  { %4513 = vmatmul.msk.f32.vlgmr.msra.gmra.mxu2 %vm387_vm12, %v2598_v56 }
 0xbcf   :  { %v2437_v60 = vpop.permute.xlu0 %2436  ;;  %v2779_v33 = vpop.permute.xlu2 %2778 }
 0xbd5   :  { %v2425_v52 = vpop.f32.mrf.mxu2 }
 0xbd6   :  { %v6495_v8 = vadd.f32 %v6431_v21, %v2425_v52 }
 0xbd7   :  { %v2787_v27 = vpop.permute.xlu0 %2786  ;;  %v2970_v23 = vpop.permute.xlu2 %2969 }
 0xbd8   :  { %v2439_v54 = vpop.permute.xlu1 %2438  ;;  %3314 = vrot.lane.b32.xlu2 %v6495_v8, %s5064_s3  ;;  %3145 = vrot.lane.b32.xlu0 %v6495_v8, %s7473_s6 }
 0xbd9   :  { %4501 = vmatpush.xpose.msk.msrb.mxu3 %vm387_vm12, %v2439_v54  ;;  %4528 = vmatpush.xpose.msk.msrb.mxu2 %vm387_vm12, %v2970_v23 }
 0xbdd   :  { %4502 = vmatpush.xpose.msk.msrb.mxu3 %vm387_vm12, %v2437_v60  ;;  %4529 = vmatpush.xpose.msk.msrb.mxu2 %vm387_vm12, %v2968_v41  ;;  %v2428_v28 = vpop.f32.mrf.mxu2 }
 0xbde   :  { %v6509_v37 = vadd.f32 %v6431_v21, %v2428_v28 }
 0xbdf   :  { %v2789_v15 = vpop.permute.xlu0 %2788  ;;  %v2962_v13 = vpop.permute.xlu2 %2961 }
 0xbe0   :  { %v2600_v46 = vpop.permute.xlu1 %2599  ;;  %3147 = vrot.lane.b32.xlu1 %v6509_v37, %s7473_s6  ;;  %3306 = vrot.lane.b32.xlu2 %v6506_v55, %s5067_s4  ;;  %v4705_v22 = vpack.i.bf16 %v6509_v37, %v6436_v3 }
 0xbe1   :  { %4503 = vmatpush.xpose.msk.msrb.mxu3 %vm387_vm12, %v2435_v4  ;;  %3316 = vrot.lane.b32.xlu0 %v6509_v37, %s5064_s3 }
 0xbe2   :  { %4514 = vmatmul.msk.f32.gmra.mxu2 %vm387_vm12, %v2600_v46 }
 0xbe4   :  { %4504 = vmatmul.msk.f32.vlgmr.msrb.gmra.mxu3 %vm387_vm12, %v6436_v3 }
 0xbe5   :  { %4519 = vmatpush.xpose.msk.msra.mxu3 %vm387_vm12, %v2789_v15 }
 0xbe7   :  { %v2966_v40 = vpop.permute.xlu0 %2965  ;;  %v2783_v18 = vpop.permute.xlu2 %2782 }
 0xbe8   :  { %v2785_v42 = vpop.permute.xlu1 %2784  ;;  %3143 = vrot.lane.b32.xlu1 %v6506_v55, %s7473_s6  ;;  %3676 = vrot.lane.b32.xlu2 %v6495_v8, %s7475_s5 }
 0xbe9   :  { %4520 = vmatpush.xpose.msk.msra.mxu3 %vm387_vm12, %v2787_v27  ;;  %3312 = vrot.lane.b32.xlu0 %v6506_v55, %s5064_s3  ;;  %s7478_s3 = smov 40  }
 0xbea   :  { %4530 = vmatpush.xpose.msk.msrb.mxu2 %vm387_vm12, %v2966_v40 }
 0xbec   :  { %4505 = vmatmul.msk.f32.gmra.mxu3 %vm387_vm12, %v6449_v38 }
 0xbed   :  { %4521 = vmatpush.xpose.msk.msra.mxu3 %vm387_vm12, %v2785_v42 }
 0xbef   :  { %v2781_v2 = vpop.permute.xlu0 %2780 }
 0xbf0   :  { %v2960_v0 = vpop.permute.xlu1 %2959  ;;  %3308 = vrot.lane.b32.xlu1 %v6495_v8, %s5067_s4  ;;  %3678 = vrot.lane.b32.xlu2 %v6509_v37, %s7475_s5 }
 0xbf1   :  { %3497 = vrot.lane.b32.xlu0 %v6509_v37, %s7474_s0 }
 0xbf4   :  { %4506 = vmatmul.msk.f32.gmra.mxu3 %vm387_vm12, %v6456_v5 }
 0xbf8   :  { %v2602_v17 = vpop.permute.xlu1 %2601  ;;  %3493 = vrot.lane.b32.xlu1 %v6506_v55, %s7474_s0  ;;  %3487 = vrot.lane.b32.xlu2 %v6506_v55, %s7476_s23 }
 0xbf9   :  { %3495 = vrot.lane.b32.xlu0 %v6495_v8, %s7474_s0  ;;  %4515 = vmatmul.msk.f32.gmra.mxu2 %vm387_vm12, %v2602_v17 }
 0xbfc   :  { %4522 = vmatmul.msk.f32.vlgmr.msra.gmra.mxu3 %vm387_vm12, %v2779_v33 }
 0xc00   :  { %3310 = vrot.lane.b32.xlu1 %v6509_v37, %s5067_s4  ;;  %3036 = vrot.lane.b32.xlu2 %v6436_v3, %s7478_s3  ;;  %s7479_s4 = smov 64   ;;  %v2964_v43 = vpop.permute.xlu1 %2963 }
 0xc01   :  { %3674 = vrot.lane.b32.xlu0 %v6506_v55, %s7475_s5  ;;  %4531 = vmatmul.msk.f32.vlgmr.msrb.gmra.mxu2 %vm387_vm12, %v2960_v0 }
 0xc04   :  { %4523 = vmatmul.msk.f32.gmra.mxu3 %vm387_vm12, %v2781_v2 }
 0xc08   :  { %3668 = vrot.lane.b32.xlu1 %v6506_v55, %s7477_s29  ;;  %4706 = vrot.lane.b32.xlu2 %v4705_v22, %s7479_s4 }
 0xc09   :  { %4691 = vrot.lane.b32.xlu0 %v4690_v50, %s7480_s22  ;;  %4532 = vmatmul.msk.f32.gmra.mxu2 %vm387_vm12, %v2962_v13 }
 0xc0c   :  { %4524 = vmatmul.msk.f32.gmra.mxu3 %vm387_vm12, %v2783_v18 }
 0xc10   :  { %4686 = vrot.lane.b32.xlu1 %v4690_v50, %s7479_s4 }
 0xc11   :  { %4696 = vrot.lane.b32.xlu0 %v4690_v50, %s7481_s28  ;;  %4533 = vmatmul.msk.f32.gmra.mxu2 %vm387_vm12, %v2964_v43 }
 0xc18   :  { %4701 = vrot.lane.b32.xlu1 %v4690_v50, %s7478_s3 }
 0xc19   :  { %2855 = vrot.lane.b32.xlu0 %v6436_v3, %s7481_s28 }
 0xc20   :  { %4711 = vrot.lane.b32.xlu1 %v4705_v22, %s7480_s22 }
 0xc32   :  { %v3315_v20 = vpop.permute.xlu2 %3314 }
 0xc3a   :  { %v3307_v26 = vpop.permute.xlu2 %3306 }
 0xc42   :  { %v3677_v47 = vpop.permute.xlu2 %3676 }
 0xc4a   :  { %v3146_v63 = vpop.permute.xlu0 %3145  ;;  %v3679_v34 = vpop.permute.xlu2 %3678 }
 0xc4e   :  { %v2638_v49 = vpop.f32.mrf.mxu2 }
 0xc4f   :  { %v6575_v51 = vadd.f32 %v2638_v49, %v5400_v30 }
 0xc51   :  { %v2647_v45 = vsel %vm426_vm2, %v6575_v51, -inf }
 0xc52   :  { %v3148_v36 = vpop.permute.xlu1 %3147  ;;  %2648 = vmax.xlane.f32.xlu2 %v2647_v45  ;;  %v3488_v7 = vpop.permute.xlu2 %3487 }
 0xc53   :  { %v3317_v39 = vpop.permute.xlu0 %3316  ;;  %4537 = vmatpush.xpose.msk.msrb.mxu3 %vm387_vm12, %v3148_v36 }
 0xc54   :  { %4546 = vmatpush.xpose.msk.msra.mxu2 %vm387_vm12, %v3317_v39 }
 0xc57   :  { %4538 = vmatpush.xpose.msk.msrb.mxu3 %vm387_vm12, %v3146_v63  ;;  %v4720_v63 = vpack.i.bf16 %v6506_v55, %v6495_v8 }
 0xc58   :  { %4547 = vmatpush.xpose.msk.msra.mxu2 %vm387_vm12, %v3315_v20 }
 0xc5a   :  { %v3144_v48 = vpop.permute.xlu1 %3143  ;;  %v3037_v38 = vpop.permute.xlu2 %3036 }
 0xc5b   :  { %v3313_v10 = vpop.permute.xlu0 %3312  ;;  %4539 = vmatpush.xpose.msk.msrb.mxu3 %vm387_vm12, %v3144_v48 }
 0xc5c   :  { %4548 = vmatpush.xpose.msk.msra.mxu2 %vm387_vm12, %v3313_v10 }
 0xc5e   :  { %4540 = vmatmul.msk.f32.vlgmr.msrb.gmra.mxu3 %vm387_vm12, %v6506_v55 }
 0xc5f   :  { %4549 = vmatmul.msk.f32.vlgmr.msra.gmra.mxu2 %vm387_vm12, %v3307_v26 }
 0xc60   :  { %4564 = vmatpush.xpose.msk.msrb.mxu2 %vm387_vm12, %v3679_v34 }
 0xc62   :  { %v3309_v1 = vpop.permute.xlu1 %3308  ;;  %v6632_v54 = vpop.permute.xlu2 %4706 }
 0xc63   :  { %v3498_v19 = vpop.permute.xlu0 %3497  ;;  %v4708_v40 = vunpack.i.l.bf16 %v6632_v54 }
 0xc64   :  { %4565 = vmatpush.xpose.msk.msrb.mxu2 %vm387_vm12, %v3677_v47  ;;  %4555 = vmatpush.xpose.msk.msra.mxu3 %vm387_vm12, %v3498_v19  ;;  %v6651_v47 = vpack.i.bf16 %v6495_v8, %v6509_v37 }
 0xc65   :  { %v2641_v16 = vpop.f32.mrf.mxu2 }
 0xc66   :  { %v6592_v35 = vadd.f32 %v2641_v16, %v5400_v30  ;;  %4541 = vmatmul.msk.f32.gmra.mxu3 %vm387_vm12, %v6495_v8 }
 0xc67   :  { %v2469_v44 = vpop.f32.mrf.mxu3  ;;  %4550 = vmatmul.msk.f32.gmra.mxu2 %vm387_vm12, %v3309_v1 }
 0xc68   :  { %v6598_v9 = vadd.f32 %v2469_v44, %v5400_v30  ;;  %v2650_v24 = vsel %vm426_vm2, %v6592_v35, -inf }
 0xc69   :  { %2651 = vmax.xlane.f32.xlu2 %v2650_v24 }
 0xc6a   :  { %v3494_v14 = vpop.permute.xlu1 %3493  ;;  %v2478_v21 = vsel %vm426_vm2, %v6598_v9, -inf }
 0xc6b   :  { %2479 = vmax.xlane.f32.xlu0 %v2478_v21  ;;  %v3496_v57 = vpop.permute.xlu0 %3495 }
 0xc6c   :  { %4556 = vmatpush.xpose.msk.msra.mxu3 %vm387_vm12, %v3496_v57 }
 0xc6e   :  { %4542 = vmatmul.msk.f32.gmra.mxu3 %vm387_vm12, %v6509_v37 }
 0xc6f   :  { %v2472_v59 = vpop.f32.mrf.mxu3 }
 0xc70   :  { %v6608_v3 = vadd.f32 %v2472_v59, %v5400_v30  ;;  %4557 = vmatpush.xpose.msk.msra.mxu3 %vm387_vm12, %v3494_v14 }
 0xc72   :  { %v2481_v58 = vsel %vm426_vm2, %v6608_v3, -inf  ;;  %v3311_v53 = vpop.permute.xlu1 %3310 }
 0xc73   :  { %2482 = vmax.xlane.f32.xlu1 %v2481_v58  ;;  %v3675_v11 = vpop.permute.xlu0 %3674  ;;  %4551 = vmatmul.msk.f32.gmra.mxu2 %vm387_vm12, %v3311_v53 }
 0xc74   :  { %4566 = vmatpush.xpose.msk.msrb.mxu2 %vm387_vm12, %v3675_v11 }
 0xc76   :  { %4558 = vmatmul.msk.f32.vlgmr.msra.gmra.mxu3 %vm387_vm12, %v3488_v7 }
 0xc77   :  { %v2475_v12 = vpop.f32.mrf.mxu3 }
 0xc78   :  { %v6617_v6 = vadd.f32 %v2475_v12, %v5400_v30 }
 0xc7a   :  { %v3669_v25 = vpop.permute.xlu1 %3668  ;;  %v2484_v5 = vsel %vm426_vm2, %v6617_v6, -inf }
 0xc7b   :  { %2485 = vmax.xlane.f32.xlu0 %v2484_v5  ;;  %v4692_v56 = vpop.permute.xlu0 %4691  ;;  %4567 = vmatmul.msk.f32.vlgmr.msrb.gmra.mxu2 %vm387_vm12, %v3669_v25 }
 0xc7c   :  { %v4693_v62 = vunpack.i.l.bf16 %v4692_v56  ;;  %v2644_v29 = vpop.f32.mrf.mxu2  ;;  %v4694_v41 = vunpack.i.h.bf16 %v4692_v56 }
 0xc7d   :  { %v6623_v32 = vadd.f32 %v2644_v29, %v5400_v30 }
 0xc7e   :  { %2705 = vmatpush.msrb.mxu0 %v4693_v62 }
 0xc7f   :  { %v2819_v61 = vpop.f32.mrf.mxu3  ;;  %v2653_v60 = vsel %vm426_vm2, %v6623_v32, -inf }
 0xc80   :  { %v6628_v33 = vadd.f32 %v2819_v61, %v5400_v30  ;;  %2706 = vmatpush.msrb.mxu0 %v4694_v41  ;;  %2654 = vmax.xlane.f32.xlu2 %v2653_v60  ;;  %v4709_v61 = vunpack.i.h.bf16 %v6632_v54 }
 0xc82   :  { %v4687_v4 = vpop.permute.xlu1 %4686  ;;  %v2828_v52 = vsel %vm426_vm2, %v6628_v33, -inf }
 0xc83   :  { %v4688_v27 = vunpack.i.l.bf16 %v4687_v4  ;;  %v4697_v23 = vpop.permute.xlu0 %4696  ;;  %2829 = vmax.xlane.f32.xlu1 %v2828_v52  ;;  %v4689_v15 = vunpack.i.h.bf16 %v4687_v4 }
 0xc84   :  { %v3000_v28 = vpop.f32.mrf.mxu2  ;;  %v4698_v0 = vunpack.i.l.bf16 %v4697_v23  ;;  %v4699_v17 = vunpack.i.h.bf16 %v4697_v23 }
 0xc85   :  { %v6635_v46 = vadd.f32 %v3000_v28, %v5400_v30  ;;  %2536 = vmatpush.msrb.mxu1 %v4688_v27 }
 0xc87   :  { %2537 = vmatpush.msrb.mxu1 %v4689_v15  ;;  %v3009_v42 = vsel %vm426_vm2, %v6635_v46, -inf  ;;  %v2822_v36 = vpop.f32.mrf.mxu3 }
 0xc88   :  { %3010 = vmax.xlane.f32.xlu0 %v3009_v42  ;;  %v6659_v10 = vadd.f32 %v2822_v36, %v5400_v30 }
 0xc89   :  { %2538 = vmatpush.msrb.mxu1 %v4708_v40 }
 0xc8a   :  { %v4702_v13 = vpop.permute.xlu1 %4701  ;;  %v2831_v44 = vsel %vm426_vm2, %v6659_v10, -inf }
 0xc8b   :  { %2886 = vmatpush.msra.mxu1 %v4698_v0  ;;  %v2856_v22 = vpop.permute.xlu0 %2855  ;;  %v4703_v43 = vunpack.i.l.bf16 %v4702_v13  ;;  %v4704_v49 = vunpack.i.h.bf16 %v4702_v13 }
 0xc8c   :  { %v3003_v2 = vpop.f32.mrf.mxu2 }
 0xc8d   :  { %2887 = vmatpush.msra.mxu1 %v4699_v17  ;;  %v6667_v24 = vadd.f32 %v3003_v2, %v5400_v30 }
 0xc8f   :  { %2888 = vmatpush.msra.mxu1 %v2856_v22  ;;  %v2825_v39 = vpop.f32.mrf.mxu3  ;;  %v3012_v57 = vsel %vm426_vm2, %v6667_v24, -inf }
 0xc90   :  { %v6656_v48 = vadd.f32 %v2825_v39, %v5400_v30 }
 0xc92   :  { %v4712_v50 = vpop.permute.xlu1 %4711  ;;  %v2834_v34 = vsel %vm426_vm2, %v6656_v48, -inf }
 0xc93   :  { %v4713_v18 = vunpack.i.l.bf16 %v4712_v50  ;;  %v4714_v21 = vunpack.i.h.bf16 %v4712_v50 }
 0xc94   :  { %v3006_v20 = vpop.f32.mrf.mxu2 }
 0xc95   :  { %v6641_v26 = vadd.f32 %v3006_v20, %v5400_v30  ;;  %2707 = vmatpush.msrb.mxu0 %v4713_v18 }
 0xc97   :  { %3067 = vmatpush.msra.mxu0 %v4703_v43  ;;  %v3015_v45 = vsel %vm426_vm2, %v6641_v26, -inf }
 0xc98   :  { %4721 = vrot.lane.b32.xlu2 %v4720_v63, %s7480_s22  ;;  %3016 = vmax.xlane.f32.xlu1 %v3015_v45  ;;  %s4383_s22 = sshll.u32 %s7420_s21, 4  ;;  %s4384_s22 = int_to_ptr.hbm [resolvable:$true] %s4383_s22 }
 0xc99   :  { %3068 = vmatpush.msra.mxu0 %v4704_v49 }
 0xc9b   :  { %3069 = vmatpush.msra.mxu0 %v3037_v38 }
 0xc9c   :  { %4716 = vrot.lane.b32.xlu0 %v4720_v63, %s7479_s4 }
 0xca0   :  { %4726 = vrot.lane.b32.xlu2 %v6651_v47, %s7481_s28 }
 0xcc5   :  { %v2649_v1 = vpop.xlane.xlu2 %2648 }
 0xcc6   :  { %2835 = vmax.xlane.f32.xlu0 %v2834_v34  ;;  %v2656_v19 = vsub.f32 %v6575_v51, %v2649_v1 }
 0xcc8   :  { %v2659_v16 = vmul.f32 1.442695, %v2656_v19 }
 0xcc9   :  { %2832 = vmax.xlane.f32.xlu2 %v2831_v44 }
 0xcca   :  { %4901 = vpow2.f32 %v2659_v16 }
 0xcd0   :  { %v6669_v14 = vpop.eup %4901 }
 0xcd1   :  { %3013 = vmax.xlane.f32.xlu2 %v3012_v57  ;;  %4516 = vmatmul.msk.f32.vlgmr.msrb.gmra.mxu0 %vm426_vm2, %v6669_v14 }
 0xcd2   :  { %3414 = vmatpush.msrb.mxu0 %v4714_v21 }
 0xcdc   :  { %v2652_v51 = vpop.xlane.xlu2 %2651 }
 0xcdd   :  { %v2657_v59 = vsub.f32 %v6592_v35, %v2652_v51 }
 0xcde   :  { %v2480_v7 = vpop.xlane.xlu0 %2479 }
 0xcdf   :  { %v2661_v58 = vmul.f32 1.442695, %v2657_v59  ;;  %v2487_v53 = vsub.f32 %v6598_v9, %v2480_v7 }
 0xce1   :  { %4903 = vpow2.f32 %v2661_v58  ;;  %v2490_v11 = vmul.f32 1.442695, %v2487_v53  ;;  %v3178_v12 = vpop.f32.mrf.mxu3 }
 0xce2   :  { %v6678_v38 = vadd.f32 %v3178_v12, %v5400_v30  ;;  %v3347_v25 = vpop.f32.mrf.mxu2 }
 0xce3   :  { %4905 = vpow2.f32 %v2490_v11  ;;  %v6681_v5 = vadd.f32 %v3347_v25, %v5400_v30 }
 0xce4   :  { %v3187_v56 = vsel %vm426_vm2, %v6678_v38, -inf }
 0xce5   :  { %3188 = vmax.xlane.f32.xlu2 %v3187_v56  ;;  %v3356_v35 = vsel %vm426_vm2, %v6681_v5, -inf  ;;  %v2665_v56 = vsel %vm426_vm2, %v6669_v14, 0.0 }
 0xce6   :  { %v2483_v62 = vpop.xlane.xlu1 %2482  ;;  %3357 = vmax.xlane.f32.xlu0 %v3356_v35 }
 0xce7   :  { %v6687_v9 = vpop.eup %4903  ;;  %v2488_v29 = vsub.f32 %v6608_v3, %v2483_v62 }
 0xce8   :  { %4517 = vmatmul.msk.f32.gmra.mxu0 %vm426_vm2, %v6687_v9 }
 0xce9   :  { %v6692_v41 = vpop.eup %4905  ;;  %v2492_v60 = vmul.f32 1.442695, %v2488_v29  ;;  %v3181_v4 = vpop.f32.mrf.mxu3 }
 0xcea   :  { %4507 = vmatmul.msk.f32.vlgmr.msrb.gmra.mxu1 %vm426_vm2, %v6692_v41  ;;  %v6698_v52 = vadd.f32 %v3181_v4, %v5400_v30  ;;  %v3350_v27 = vpop.f32.mrf.mxu2 }
 0xceb   :  { %4907 = vpow2.f32 %v2492_v60  ;;  %3245 = vmatpush.msrb.mxu1 %v4709_v61  ;;  %v6704_v54 = vadd.f32 %v3350_v27, %v5400_v30 }
 0xcec   :  { %v3190_v3 = vsel %vm426_vm2, %v6698_v52, -inf }
 0xced   :  { %3191 = vmax.xlane.f32.xlu1 %v3190_v3  ;;  %v3359_v13 = vsel %vm426_vm2, %v6704_v54, -inf }
 0xcee   :  { %v2486_v23 = vpop.xlane.xlu0 %2485 }
 0xcef   :  { %v2489_v28 = vsub.f32 %v6617_v6, %v2486_v23 }
 0xcf1   :  { %v6706_v15 = vpop.eup %4907  ;;  %v2494_v40 = vmul.f32 1.442695, %v2489_v28  ;;  %v3184_v42 = vpop.f32.mrf.mxu3 }
 0xcf2   :  { %4508 = vmatmul.msk.f32.gmra.mxu1 %vm426_vm2, %v6706_v15  ;;  %v6718_v43 = vadd.f32 %v3184_v42, %v5400_v30  ;;  %v2499_v35 = vsel %vm426_vm2, %v6706_v15, 0.0 }
 0xcf3   :  { %4909 = vpow2.f32 %v2494_v40  ;;  %v2655_v0 = vpop.xlane.xlu2 %2654 }
 0xcf4   :  { %v2658_v17 = vsub.f32 %v6623_v32, %v2655_v0  ;;  %v3193_v39 = vsel %vm426_vm2, %v6718_v43, -inf }
 0xcf5   :  { %3360 = vmax.xlane.f32.xlu1 %v3359_v13 }
 0xcf6   :  { %v2663_v2 = vmul.f32 1.442695, %v2658_v17  ;;  %v2830_v6 = vpop.xlane.xlu1 %2829  ;;  %v3353_v22 = vpop.f32.mrf.mxu2 }
 0xcf7   :  { %v2837_v50 = vsub.f32 %v6628_v33, %v2830_v6  ;;  %v6715_v18 = vadd.f32 %v3353_v22, %v5400_v30 }
 0xcf8   :  { %4911 = vpow2.f32 %v2663_v2 }
 0xcf9   :  { %v6720_v20 = vpop.eup %4909  ;;  %v2840_v63 = vmul.f32 1.442695, %v2837_v50  ;;  %v3362_v32 = vsel %vm426_vm2, %v6715_v18, -inf  ;;  %v3528_v34 = vpop.f32.mrf.mxu3 }
 0xcfa   :  { %4509 = vmatmul.msk.f32.gmra.mxu1 %vm426_vm2, %v6720_v20  ;;  %3363 = vmax.xlane.f32.xlu0 %v3362_v32  ;;  %v6733_v44 = vadd.f32 %v3528_v34, %v5400_v30 }
 0xcfb   :  { %4913 = vpow2.f32 %v2840_v63  ;;  %v3011_v49 = vpop.xlane.xlu0 %3010  ;;  %v4722_v33 = vpop.permute.xlu2 %4721 }
 0xcfc   :  { %v3018_v45 = vsub.f32 %v6635_v46, %v3011_v49  ;;  %v4723_v36 = vunpack.i.l.bf16 %v4722_v33  ;;  %v4724_v16 = vunpack.i.h.bf16 %v4722_v33  ;;  %v3537_v21 = vsel %vm426_vm2, %v6733_v44, -inf }
 0xcfd   :  { %3564 = vrot.lane.b32.xlu2 %v6506_v55, %s7481_s28  ;;  %3194 = vmax.xlane.f32.xlu1 %v3193_v39 }
 0xcfe   :  { %v4912_v1 = vpop.eup %4911  ;;  %v3021_v19 = vmul.f32 1.442695, %v3018_v45  ;;  %3415 = vmatpush.msrb.mxu0 %v4723_v36  ;;  %v3709_v57 = vpop.f32.mrf.mxu2 }
 0xcff   :  { %4518 = vmatmul.msk.f32.gmra.mxu0 %vm426_vm2, %v4912_v1  ;;  %v6745_v59 = vadd.f32 %v3709_v57, %v5400_v30  ;;  %v2671_v42 = vsel %vm426_vm2, %v4912_v1, 0.0 }
 0xd00   :  { %4915 = vpow2.f32 %v3021_v19  ;;  %3416 = vmatpush.msrb.mxu0 %v4724_v16 }
 0xd01   :  { %v4914_v46 = vpop.eup %4913  ;;  %v3718_v7 = vsel %vm426_vm2, %v6745_v59, -inf }
 0xd02   :  { %4525 = vmatmul.msk.f32.vlgmr.msra.gmra.mxu1 %vm426_vm2, %v4914_v46  ;;  %v2846_v17 = vsel %vm426_vm2, %v4914_v46, 0.0 }
 0xd03   :  { %v4727_v53 = vpop.permute.xlu2 %4726 }
 0xd04   :  { %v4728_v12 = vunpack.i.l.bf16 %v4727_v53  ;;  %v4729_v25 = vunpack.i.h.bf16 %v4727_v53 }
 0xd05   :  { %3745 = vrot.lane.b32.xlu2 %v6506_v55, %s7478_s3  ;;  %3538 = vmax.xlane.f32.xlu1 %v3537_v21 }
 0xd06   :  { %v6740_v51 = vpop.eup %4915 }
 0xd07   :  { %4534 = vmatmul.msk.f32.vlgmr.msra.gmra.mxu0 %vm426_vm2, %v6740_v51  ;;  %v3027_v33 = vsel %vm426_vm2, %v6740_v51, 0.0 }
 0xd0b   :  { %v3017_v15 = vpop.xlane.xlu1 %3016 }
 0xd0d   :  { %3719 = vmax.xlane.f32.xlu1 %v3718_v7 }
 0xd0e   :  { %v4717_v58 = vpop.permute.xlu0 %4716  ;;  %3489 = vrot.lane.b32.xlu0 %v6495_v8, %s7476_s23 }
 0xd0f   :  { %v4718_v11 = vunpack.i.l.bf16 %v4717_v58  ;;  %v4719_v55 = vunpack.i.h.bf16 %v4717_v58 }
 0xd11   :  { %3246 = vmatpush.msrb.mxu1 %v4718_v11 }
 0xd13   :  { %3247 = vmatpush.msrb.mxu1 %v4719_v55 }
 0xd15   :  { %3595 = vmatpush.msra.mxu1 %v4728_v12 }
 0xd16   :  { %3491 = vrot.lane.b32.xlu0 %v6509_v37, %s7476_s23 }
 0xd17   :  { %3596 = vmatpush.msra.mxu1 %v4729_v25 }
 0xd26   :  { %4731 = vrot.lane.b32.xlu1 %v6651_v47, %s7478_s3  ;;  %v2668_v47 = vsel %vm426_vm2, %v6687_v9, 0.0 }
 0xd2e   :  { %2666 = vadd.xlane.f32.xlu2 %v2665_v56 }
 0xd36   :  { %2500 = vadd.xlane.f32.xlu2 %v2499_v35 }
 0xd39   :  { %v2836_v62 = vpop.xlane.xlu0 %2835 }
 0xd3a   :  { %v2839_v29 = vsub.f32 %v6656_v48, %v2836_v62 }
 0xd3c   :  { %v2844_v61 = vmul.f32 1.442695, %v2839_v29  ;;  %v2833_v60 = vpop.xlane.xlu2 %2832 }
 0xd3d   :  { %v2838_v4 = vsub.f32 %v6659_v10, %v2833_v60  ;;  %v3020_v10 = vsub.f32 %v6641_v26, %v3017_v15  ;;  %v2502_v26 = vsel %vm426_vm2, %v6720_v20, 0.0 }
 0xd3e   :  { %4917 = vpow2.f32 %v2844_v61 }
 0xd3f   :  { %v2842_v3 = vmul.f32 1.442695, %v2838_v4  ;;  %v3025_v9 = vmul.f32 1.442695, %v3020_v10 }
 0xd40   :  { %2669 = vadd.xlane.f32.xlu0 %v2668_v47 }
 0xd41   :  { %4919 = vpow2.f32 %v2842_v3 }
 0xd44   :  { %v4918_v14 = vpop.eup %4917  ;;  %v3014_v27 = vpop.xlane.xlu2 %3013 }
 0xd45   :  { %v3019_v23 = vsub.f32 %v6667_v24, %v3014_v27  ;;  %v2852_v28 = vsel %vm426_vm2, %v4918_v14, 0.0  ;;  %v2496_v24 = vsel %vm426_vm2, %v6692_v41, 0.0 }
 0xd46   :  { %2853 = vadd.xlane.f32.xlu2 %v2852_v28 }
 0xd47   :  { %v4920_v48 = vpop.eup %4919  ;;  %v3023_v40 = vmul.f32 1.442695, %v3019_v23 }
 0xd48   :  { %4526 = vmatmul.msk.f32.gmra.mxu1 %vm426_vm2, %v4920_v48  ;;  %2672 = vadd.xlane.f32.xlu0 %v2671_v42  ;;  %v2849_v2 = vsel %vm426_vm2, %v4920_v48, 0.0 }
 0xd49   :  { %4921 = vpow2.f32 %v3023_v40 }
 0xd4a   :  { %4923 = vpow2.f32 %v3025_v9 }
 0xd4f   :  { %v4922_v0 = vpop.eup %4921 }
 0xd50   :  { %4527 = vmatmul.msk.f32.gmra.mxu1 %vm426_vm2, %v4918_v14  ;;  %4535 = vmatmul.msk.f32.gmra.mxu0 %vm426_vm2, %v4922_v0  ;;  %v4924_v13 = vpop.eup %4923  ;;  %v3030_v20 = vsel %vm426_vm2, %v4922_v0, 0.0 }
 0xd51   :  { %2497 = vadd.xlane.f32.xlu1 %v2496_v24  ;;  %2847 = vadd.xlane.f32.xlu0 %v2846_v17  ;;  %v3033_v19 = vsel %vm426_vm2, %v4924_v13, 0.0 }
 0xd58   :  { %4536 = vmatmul.msk.f32.gmra.mxu0 %vm426_vm2, %v4924_v13  ;;  %v3189_v6 = vpop.xlane.xlu2 %3188 }
 0xd59   :  { %v3358_v22 = vpop.xlane.xlu0 %3357  ;;  %2503 = vadd.xlane.f32.xlu1 %v2502_v26  ;;  %2850 = vadd.xlane.f32.xlu0 %v2849_v2  ;;  %v3196_v50 = vsub.f32 %v6678_v38, %v3189_v6  ;;  %v2709_v2 = vpop.f32.mrf.mxu0 }
 0xd5a   :  { %v3365_v41 = vsub.f32 %v6681_v5, %v3358_v22 }
 0xd5b   :  { %v3199_v63 = vmul.f32 1.442695, %v3196_v50 }
 0xd5c   :  { %v3368_v32 = vmul.f32 1.442695, %v3365_v41 }
 0xd5d   :  { %4925 = vpow2.f32 %v3199_v63 }
 0xd5e   :  { %4927 = vpow2.f32 %v3368_v32 }
 0xd60   :  { %v3192_v49 = vpop.xlane.xlu1 %3191  ;;  %v3565_v45 = vpop.permute.xlu2 %3564 }
 0xd61   :  { %v3197_v36 = vsub.f32 %v6698_v52, %v3192_v49  ;;  %3028 = vadd.xlane.f32.xlu1 %v3027_v33  ;;  %3031 = vadd.xlane.f32.xlu0 %v3030_v20 }
 0xd62   :  { %3597 = vmatpush.msra.mxu1 %v3565_v45 }
 0xd63   :  { %v6783_v39 = vpop.eup %4925  ;;  %v3201_v38 = vmul.f32 1.442695, %v3197_v36 }
 0xd64   :  { %v4928_v5 = vpop.eup %4927  ;;  %4543 = vmatmul.msk.f32.vlgmr.msrb.gmra.mxu1 %vm426_vm2, %v6783_v39 }
 0xd65   :  { %4929 = vpow2.f32 %v3201_v38  ;;  %4552 = vmatmul.msk.f32.vlgmr.msrb.gmra.mxu0 %vm426_vm2, %v4928_v5  ;;  %v3374_v1 = vsel %vm426_vm2, %v4928_v5, 0.0 }
 0xd67   :  { %v6817_v24 = vpop.f32.mrf.mxu1 }
 0xd68   :  { %v3361_v34 = vpop.xlane.xlu1 %3360  ;;  %v3746_v47 = vpop.permute.xlu2 %3745 }
 0xd69   :  { %v3366_v52 = vsub.f32 %v6704_v54, %v3361_v34  ;;  %3375 = vadd.xlane.f32.xlu1 %v3374_v1  ;;  %3034 = vadd.xlane.f32.xlu0 %v3033_v19 }
 0xd6b   :  { %v6791_v16 = vpop.eup %4929  ;;  %v3370_v46 = vmul.f32 1.442695, %v3366_v52 }
 0xd6c   :  { %4544 = vmatmul.msk.f32.gmra.mxu1 %vm426_vm2, %v6791_v16 }
 0xd6d   :  { %4931 = vpow2.f32 %v3370_v46  ;;  %v3364_v21 = vpop.xlane.xlu0 %3363 }
 0xd6e   :  { %v3367_v57 = vsub.f32 %v6715_v18, %v3364_v21 }
 0xd6f   :  { %v2543_v38 = vpop.f32.mrf.mxu1 }
 0xd70   :  { %v3372_v51 = vmul.f32 1.442695, %v3367_v57  ;;  %v3195_v7 = vpop.xlane.xlu1 %3194 }
 0xd71   :  { %v3198_v58 = vsub.f32 %v6718_v43, %v3195_v7 }
 0xd72   :  { %4933 = vpow2.f32 %v3372_v51 }
 0xd73   :  { %v6797_v53 = vpop.eup %4931  ;;  %v3203_v11 = vmul.f32 1.442695, %v3198_v58 }
 0xd74   :  { %4553 = vmatmul.msk.f32.gmra.mxu0 %vm426_vm2, %v6797_v53 }
 0xd75   :  { %4935 = vpow2.f32 %v3203_v11 }
 0xd78   :  { %v3539_v54 = vpop.xlane.xlu1 %3538  ;;  %v6802_v12 = vpop.eup %4933 }
 0xd79   :  { %v3546_v55 = vsub.f32 %v6733_v44, %v3539_v54 }
 0xd7b   :  { %v6804_v25 = vpop.eup %4935  ;;  %v3549_v18 = vmul.f32 1.442695, %v3546_v55 }
 0xd7c   :  { %4545 = vmatmul.msk.f32.gmra.mxu1 %vm426_vm2, %v6804_v25  ;;  %4554 = vmatmul.msk.f32.gmra.mxu0 %vm426_vm2, %v6802_v12 }
 0xd7d   :  { %4937 = vpow2.f32 %v3549_v18 }
 0xd80   :  { %v3490_v43 = vpop.permute.xlu0 %3489  ;;  %v3720_v56 = vpop.xlane.xlu1 %3719 }
 0xd81   :  { %v3727_v35 = vsub.f32 %v6745_v59, %v3720_v56  ;;  %4559 = vmatmul.msk.f32.gmra.mxu3 %vm387_vm12, %v3490_v43 }
 0xd83   :  { %v4938_v62 = vpop.eup %4937  ;;  %v3730_v44 = vmul.f32 1.442695, %v3727_v35  ;;  %v2712_v35 = vpop.f32.mrf.mxu0 }
 0xd84   :  { %4561 = vmatmul.msk.f32.vlgmr.msra.gmra.mxu1 %vm426_vm2, %v4938_v62  ;;  %v3555_v29 = vsel %vm426_vm2, %v4938_v62, 0.0 }
 0xd85   :  { %4939 = vpow2.f32 %v3730_v44  ;;  %3556 = vadd.xlane.f32.xlu2 %v3555_v29  ;;  %v6824_v29 = vpop.f32.mrf.mxu1 }
 0xd88   :  { %v3492_v61 = vpop.permute.xlu0 %3491 }
 0xd89   :  { %4560 = vmatmul.msk.f32.gmra.mxu3 %vm387_vm12, %v3492_v61 }
 0xd8b   :  { %v4940_v60 = vpop.eup %4939 }
 0xd8c   :  { %v3736_v4 = vsel %vm426_vm2, %v4940_v60, 0.0 }
 0xd8d   :  { %3737 = vadd.xlane.f32.xlu0 %v3736_v4 }
 0xd98   :  { %v4732_v3 = vpop.permute.xlu1 %4731 }
 0xd99   :  { %v4733_v59 = vunpack.i.l.bf16 %v4732_v3  ;;  %v4734_v14 = vunpack.i.h.bf16 %v4732_v3 }
 0xd9b   :  { %3776 = vmatpush.msra.mxu0 %v4733_v59 }
 0xd9d   :  { %3777 = vmatpush.msra.mxu0 %v4734_v14 }
 0xd9f   :  { %3778 = vmatpush.msra.mxu0 %v3746_v47 }
 0xda0   :  { %4570 = vmatmul.msk.f32.vlgmr.msra.gmra.mxu0 %vm426_vm2, %v4940_v60 }
 0xda1   :  { %v2667_v27 = vpop.xlane.xlu2 %2666 }
 0xda2   :  { %4941 = vrcp.f32 %v2667_v27  ;;  %v2729_v40 = vand.u32 2147483648, %v2667_v27  ;;  %v2727_v10 = vand.u32 2147483647, %v2667_v27  ;;  %vm2723_vm4 = vweird.f32 %v2667_v27 }
 0xda4   :  { %v2730_v17 = vor.u32 1.1754944e-38, %v2729_v40  ;;  %vm2728_vm8 = vcmp.eq.f32.partialorder %v2727_v10, 8.507059e+37 }
 0xda8   :  { %v4942_v23 = vpop.eup %4941 }
 0xda9   :  { %v2719_v28 = vmul.f32 %v4942_v23, %v2667_v27  ;;  %v2501_v15 = vpop.xlane.xlu2 %2500  ;;  %vm2724_vm3 = vweird.f32 %v4942_v23 }
 0xdaa   :  { %4943 = vrcp.f32 %v2501_v15  ;;  %vm2725_vm6 = vmor %vm2723_vm4, %vm2724_vm3  ;;  %v2574_v63 = vand.u32 2147483648, %v2501_v15  ;;  %v2572_v49 = vand.u32 2147483647, %v2501_v15  ;;  %vm2568_vm10 = vweird.f32 %v2501_v15 }
 0xdab   :  { %v2720_v48 = vsub.f32 1.0, %v2719_v28 }
 0xdac   :  { %v2575_v20 = vor.u32 1.1754944e-38, %v2574_v63  ;;  %vm2573_vm14 = vcmp.eq.f32.partialorder %v2572_v49, 8.507059e+37 }
 0xdad   :  { %v2721_v42 = vmul.f32 %v4942_v23, %v2720_v48 }
 0xdaf   :  { %v2722_v9 = vadd.f32 %v4942_v23, %v2721_v42 }
 0xdb0   :  { %v4944_v0 = vpop.eup %4943 }
 0xdb1   :  { %v2564_v13 = vmul.f32 %v4944_v0, %v2501_v15  ;;  %v2726_v26 = vsel %vm2725_vm6, %v4942_v23, %v2722_v9  ;;  %vm2569_vm9 = vweird.f32 %v4944_v0 }
 0xdb2   :  { %v2731_v6 = vsel %vm2728_vm8, %v2730_v17, %v2726_v26  ;;  %vm2570_vm13 = vmor %vm2568_vm10, %vm2569_vm9 }
 0xdb3   :  { %v2565_v22 = vsub.f32 1.0, %v2564_v13  ;;  %v2670_v50 = vpop.xlane.xlu0 %2669  ;;  %v2760_v41 = vmul.f32 %v2731_v6, %v2709_v2  ;;  %v2715_v13 = vpop.f32.mrf.mxu0 }
 0xdb4   :  { %4945 = vrcp.f32 %v2670_v50  ;;  %v2743_v46 = vand.u32 2147483648, %v2670_v50  ;;  %v2741_v57 = vand.u32 2147483647, %v2670_v50  ;;  %vm2737_vm0 = vweird.f32 %v2670_v50 }
 0xdb5   :  { %v2566_v32 = vmul.f32 %v4944_v0, %v2565_v22  ;;  %2766 = vrot.lane.b32.xlu2 %v2760_v41, %s7482_s2  ;;  %v2890_v41 = vpop.f32.mrf.mxu1 }
 0xdb6   :  { %v2744_v58 = vor.u32 1.1754944e-38, %v2743_v46  ;;  %vm2742_vm4 = vcmp.eq.f32.partialorder %v2741_v57, 8.507059e+37 }
 0xdb7   :  { %v2567_v33 = vadd.f32 %v4944_v0, %v2566_v32 }
 0xdb9   :  { %v2571_v45 = vsel %vm2570_vm13, %v4944_v0, %v2567_v33  ;;  %v6837_v10 = vpop.xlane.xlu2 %2853 }
 0xdba   :  { %v4946_v36 = vpop.eup %4945  ;;  %v2576_v5 = vsel %vm2573_vm14, %v2575_v20, %v2571_v45 }
 0xdbb   :  { %v2733_v34 = vmul.f32 %v4946_v36, %v2670_v50  ;;  %v2673_v1 = vpop.xlane.xlu0 %2672  ;;  %v2592_v19 = vmul.f32 %v2576_v5, %v2543_v38  ;;  %vm2738_vm15 = vweird.f32 %v4946_v36 }
 0xdbc   :  { %4947 = vrcp.f32 %v2673_v1  ;;  %vm2739_vm3 = vmor %vm2737_vm0, %vm2738_vm15  ;;  %v2757_v60 = vand.u32 2147483648, %v2673_v1  ;;  %vm2751_vm8 = vweird.f32 %v2673_v1  ;;  %v2755_v4 = vand.u32 2147483647, %v2673_v1 }
 0xdbd   :  { %v2734_v52 = vsub.f32 1.0, %v2733_v34  ;;  %2595 = vst.msk [vmem:[#allocation3 + $0x8] sm:$0xff] %vm387_vm12, %v2592_v19 }
 0xdbe   :  { %v2758_v28 = vor.u32 1.1754944e-38, %v2757_v60  ;;  %vm2756_vm10 = vcmp.eq.f32.partialorder %v2755_v4, 8.507059e+37 }
 0xdbf   :  { %v2735_v21 = vmul.f32 %v4946_v36, %v2734_v52 }
 0xdc1   :  { %v2736_v51 = vadd.f32 %v4946_v36, %v2735_v21 }
 0xdc2   :  { %v4948_v7 = vpop.eup %4947 }
 0xdc3   :  { %v2747_v11 = vmul.f32 %v4948_v7, %v2673_v1  ;;  %v2740_v54 = vsel %vm2739_vm3, %v4946_v36, %v2736_v51  ;;  %vm2752_vm6 = vweird.f32 %v4948_v7 }
 0xdc4   :  { %v2498_v55 = vpop.xlane.xlu1 %2497  ;;  %v6821_v18 = vpop.xlane.xlu0 %2847  ;;  %v2745_v43 = vsel %vm2742_vm4, %v2744_v58, %v2740_v54  ;;  %vm2753_vm9 = vmor %vm2751_vm8, %vm2752_vm6 }
 0xdc5   :  { %v2748_v56 = vsub.f32 1.0, %v2747_v11  ;;  %4949 = vrcp.f32 %v2498_v55  ;;  %v2761_v44 = vmul.f32 %v2745_v43, %v2712_v35  ;;  %v2558_v0 = vand.u32 2147483647, %v2498_v55 }
 0xdc6   :  { %4951 = vrcp.f32 %v6821_v18  ;;  %v2560_v17 = vand.u32 2147483648, %v2498_v55  ;;  %vm2554_vm14 = vweird.f32 %v2498_v55  ;;  %v2908_v6 = vand.u32 2147483647, %v6821_v18 }
 0xdc7   :  { %v2749_v62 = vmul.f32 %v4948_v7, %v2748_v56  ;;  %2768 = vrot.lane.b32.xlu0 %v2761_v44, %s7482_s2  ;;  %v2910_v63 = vand.u32 2147483648, %v6821_v18  ;;  %vm2559_vm0 = vcmp.eq.f32.partialorder %v2558_v0, 8.507059e+37  ;;  %vm2904_vm4 = vweird.f32 %v6821_v18  ;;  %v2893_v44 = vpop.f32.mrf.mxu1 }
 0xdc8   :  { %v2561_v33 = vor.u32 1.1754944e-38, %v2560_v17  ;;  %vm6857_vm6 = vcmp.eq.f32.partialorder %v2908_v6, 8.507059e+37 }
 0xdc9   :  { %v2750_v61 = vadd.f32 %v4948_v7, %v2749_v62  ;;  %v2911_v52 = vor.u32 1.1754944e-38, %v2910_v63  ;;  %v3071_v62 = vpop.f32.mrf.mxu0 }
 0xdcb   :  { %v4950_v3 = vpop.eup %4949  ;;  %v2754_v23 = vsel %vm2753_vm9, %v4948_v7, %v2750_v61 }
 0xdcc   :  { %v6827_v47 = vpop.eup %4951  ;;  %v2550_v59 = vmul.f32 %v4950_v3, %v2498_v55  ;;  %v6829_v14 = vpop.xlane.xlu1 %2503  ;;  %v2759_v42 = vsel %vm2756_vm10, %v2758_v28, %v2754_v23  ;;  %vm2555_vm13 = vweird.f32 %v4950_v3  ;;  %v3205_v23 = vsel %vm426_vm2, %v6783_v39, 0.0 }
 0xdcd   :  { %v6831_v27 = vpop.xlane.xlu0 %2850  ;;  %v2900_v15 = vmul.f32 %v6827_v47, %v6821_v18  ;;  %4953 = vrcp.f32 %v6829_v14  ;;  %v2762_v22 = vmul.f32 %v2759_v42, %v2715_v13  ;;  %vm2556_vm15 = vmor %vm2554_vm14, %vm2555_vm13  ;;  %vm2905_vm3 = vweird.f32 %v6827_v47 }
 0xdce   :  { %v2551_v48 = vsub.f32 1.0, %v2550_v59  ;;  %4955 = vrcp.f32 %v6831_v27  ;;  %v2586_v46 = vand.u32 2147483647, %v6829_v14  ;;  %vm2906_vm8 = vmor %vm2904_vm4, %vm2905_vm3  ;;  %v2588_v51 = vand.u32 2147483648, %v6829_v14 }
 0xdcf   :  { %v2901_v40 = vsub.f32 1.0, %v2900_v15  ;;  %4957 = vrcp.f32 %v6837_v10  ;;  %2770 = vrot.lane.b32.xlu1 %v2762_v22, %s7482_s2  ;;  %v2922_v7 = vand.u32 2147483647, %v6831_v27  ;;  %v2924_v54 = vand.u32 2147483648, %v6831_v27 }
 0xdd0   :  { %v2552_v9 = vmul.f32 %v4950_v3, %v2551_v48  ;;  %vm2582_vm10 = vweird.f32 %v6829_v14 }
 0xdd1   :  { %v2902_v26 = vmul.f32 %v6827_v47, %v2901_v40  ;;  %vm6891_vm3 = vcmp.eq.f32.partialorder %v2922_v7, 8.507059e+37  ;;  %v2925_v48 = vor.u32 1.1754944e-38, %v2924_v54 }
 0xdd2   :  { %v2553_v2 = vadd.f32 %v4950_v3, %v2552_v9 }
 0xdd3   :  { %v4954_v50 = vpop.eup %4953  ;;  %v2903_v38 = vadd.f32 %v6827_v47, %v2902_v26 }
 0xdd4   :  { %v6843_v32 = vpop.eup %4955  ;;  %v2557_v49 = vsel %vm2556_vm15, %v4950_v3, %v2553_v2  ;;  %v2578_v20 = vmul.f32 %v4954_v50, %v6829_v14  ;;  %v6847_v45 = vpop.xlane.xlu1 %3028  ;;  %vm2583_vm9 = vweird.f32 %v4954_v50  ;;  %v2589_v3 = vor.u32 1.1754944e-38, %v2588_v51 }
 0xdd5   :  { %v6849_v36 = vpop.xlane.xlu0 %3031  ;;  %v2914_v5 = vmul.f32 %v6843_v32, %v6831_v27  ;;  %4959 = vrcp.f32 %v6847_v45  ;;  %v2562_v34 = vsel %vm2559_vm0, %v2561_v33, %v2557_v49  ;;  %v6865_v58 = vpop.eup %4957  ;;  %v2907_v55 = vsel %vm2906_vm8, %v6827_v47, %v2903_v38  ;;  %vm6874_vm13 = vmor %vm2582_vm10, %vm2583_vm9 }
 0xdd6   :  { %v2579_v19 = vsub.f32 1.0, %v2578_v20  ;;  %4961 = vrcp.f32 %v6849_v36  ;;  %v2591_v18 = vmul.f32 %v2562_v34, %v6817_v24  ;;  %v2912_v56 = vsel %vm6857_vm6, %v2911_v52, %v2907_v55  ;;  %v3074_v49 = vpop.f32.mrf.mxu0 }
 0xdd7   :  { %v2915_v21 = vsub.f32 1.0, %v2914_v5  ;;  %vm2919_vm14 = vweird.f32 %v6843_v32  ;;  %v2941_v4 = vmul.f32 %v2912_v56, %v2890_v41  ;;  %vm2587_vm15 = vcmp.eq.f32.partialorder %v2586_v46, 8.507059e+37 }
 0xdd8   :  { %v2580_v57 = vmul.f32 %v4954_v50, %v2579_v19  ;;  %2594 = vst.msk [vmem:[#allocation3] sm:$0xff] %vm387_vm12, %v2591_v18  ;;  %vm2918_vm0 = vweird.f32 %v6831_v27  ;;  %v3089_v39 = vand.u32 2147483647, %v6847_v45  ;;  %v3091_v27 = vand.u32 2147483648, %v6847_v45 }
 0xdd9   :  { %v2916_v11 = vmul.f32 %v6843_v32, %v2915_v21  ;;  %2947 = vrot.lane.b32.xlu1 %v2941_v4, %s7489_s27  ;;  %vm2920_vm4 = vmor %vm2918_vm0, %vm2919_vm14  ;;  %v2928_v22 = vmul.f32 %v6865_v58, %v6837_v10  ;;  %vm3085_vm8 = vweird.f32 %v6847_v45  ;;  %v3105_v5 = vand.u32 2147483648, %v6849_v36 }
 0xdda   :  { %v2581_v43 = vadd.f32 %v4954_v50, %v2580_v57  ;;  %v3092_v63 = vor.u32 1.1754944e-38, %v3091_v27  ;;  %vm3090_vm10 = vcmp.eq.f32.partialorder %v3089_v39, 8.507059e+37  ;;  %vm3099_vm14 = vweird.f32 %v6849_v36 }
 0xddb   :  { %v4960_v35 = vpop.eup %4959  ;;  %v2917_v60 = vadd.f32 %v6843_v32, %v2916_v11  ;;  %v2929_v1 = vsub.f32 1.0, %v2928_v22  ;;  %v3103_v19 = vand.u32 2147483647, %v6849_v36  ;;  %v3106_v7 = vor.u32 1.1754944e-38, %v3105_v5 }
 0xddc   :  { %v2585_v24 = vsel %vm6874_vm13, %v4954_v50, %v2581_v43  ;;  %v3081_v47 = vmul.f32 %v4960_v35, %v6847_v45  ;;  %v6884_v59 = vpop.xlane.xlu1 %3375  ;;  %v4962_v28 = vpop.eup %4961  ;;  %vm3086_vm6 = vweird.f32 %v4960_v35 }
 0xddd   :  { %v6886_v14 = vpop.xlane.xlu0 %3034  ;;  %v2590_v40 = vsel %vm2587_vm15, %v2589_v3, %v2585_v24  ;;  %v3095_v9 = vmul.f32 %v4962_v28, %v6849_v36  ;;  %v2921_v0 = vsel %vm2920_vm4, %v6843_v32, %v2917_v60  ;;  %vm3087_vm9 = vmor %vm3085_vm8, %vm3086_vm6  ;;  %vm3100_vm13 = vweird.f32 %v4962_v28 }
 0xdde   :  { %v3082_v42 = vsub.f32 1.0, %v3081_v47  ;;  %4963 = vrcp.f32 %v6886_v14  ;;  %3206 = vadd.xlane.f32.xlu2 %v3205_v23  ;;  %v2926_v26 = vsel %vm6891_vm3, %v2925_v48, %v2921_v0  ;;  %v2593_v6 = vmul.f32 %v2590_v40, %v6824_v29  ;;  %v2896_v29 = vpop.f32.mrf.mxu1  ;;  %vm3101_vm15 = vmor %vm3099_vm14, %vm3100_vm13  ;;  %v3077_v61 = vpop.f32.mrf.mxu0 }
 0xddf   :  { %4965 = vrcp.f32 %v6884_v59  ;;  %v3096_v13 = vsub.f32 1.0, %v3095_v9  ;;  %v2942_v2 = vmul.f32 %v2926_v26, %v2893_v44  ;;  %v3119_v57 = vand.u32 2147483648, %v6886_v14 }
 0xde0   :  { %v3083_v17 = vmul.f32 %v4960_v35, %v3082_v42  ;;  %2596 = vst.msk [vmem:[#allocation3 + $0x10] sm:$0xff] %vm387_vm12, %v2593_v6  ;;  %v3117_v54 = vand.u32 2147483647, %v6886_v14  ;;  %v2930_v55 = vmul.f32 %v6865_v58, %v2929_v1  ;;  %vm3104_vm3 = vcmp.eq.f32.partialorder %v3103_v19, 8.507059e+37 }
 0xde1   :  { %v3097_v41 = vmul.f32 %v4962_v28, %v3096_v13  ;;  %2949 = vrot.lane.b32.xlu1 %v2942_v2, %s7489_s27  ;;  %vm3113_vm4 = vweird.f32 %v6886_v14  ;;  %v3120_v56 = vor.u32 1.1754944e-38, %v3119_v57  ;;  %v2938_v24 = vand.u32 2147483648, %v6837_v10 }
 0xde2   :  { %v3084_v50 = vadd.f32 %v4960_v35, %v3083_v17  ;;  %vm3118_vm8 = vcmp.eq.f32.partialorder %v3117_v54, 8.507059e+37  ;;  %v2931_v44 = vadd.f32 %v6865_v58, %v2930_v55  ;;  %v2936_v47 = vand.u32 2147483647, %v6837_v10 }
 0xde3   :  { %v3098_v33 = vadd.f32 %v4962_v28, %v3097_v41  ;;  %v3438_v40 = vand.u32 2147483648, %v6884_v59 }
 0xde4   :  { %v4964_v32 = vpop.eup %4963  ;;  %v3088_v20 = vsel %vm3087_vm9, %v4960_v35, %v3084_v50  ;;  %vm2933_vm9 = vweird.f32 %v6865_v58  ;;  %vm2937_vm14 = vcmp.eq.f32.partialorder %v2936_v47, 8.507059e+37 }
 0xde5   :  { %v6911_v38 = vpop.eup %4965  ;;  %v3109_v34 = vmul.f32 %v4964_v32, %v6886_v14  ;;  %v3093_v45 = vsel %vm3090_vm10, %v3092_v63, %v3088_v20  ;;  %v3102_v51 = vsel %vm3101_vm15, %v4962_v28, %v3098_v33  ;;  %vm3114_vm0 = vweird.f32 %v4964_v32 }
 0xde6   :  { %v3122_v52 = vmul.f32 %v3093_v45, %v3071_v62  ;;  %v3428_v21 = vmul.f32 %v6911_v38, %v6884_v59  ;;  %v3107_v18 = vsel %vm3104_vm3, %v3106_v7, %v3102_v51  ;;  %vm3115_vm6 = vmor %vm3113_vm4, %vm3114_vm0  ;;  %v6925_v35 = vpop.f32.mrf.mxu1  ;;  %vm2932_vm10 = vweird.f32 %v6837_v10  ;;  %v3418_v17 = vpop.f32.mrf.mxu0 }
 0xde7   :  { %v3110_v46 = vsub.f32 1.0, %v3109_v34  ;;  %v3123_v60 = vmul.f32 %v3107_v18, %v3074_v49  ;;  %vm2934_vm13 = vmor %vm2932_vm10, %vm2933_vm9  ;;  %v2939_v28 = vor.u32 1.1754944e-38, %v2938_v24  ;;  %vm3433_vm15 = vweird.f32 %v6911_v38  ;;  %v4575_v18 = vld [vmem:[%s7406_s7 + $0x30] sm:$0xff] }
 0xde8   :  { %3128 = vrot.lane.b32.xlu0 %v3122_v52, %s7490_s1  ;;  %v3429_v43 = vsub.f32 1.0, %v3428_v21  ;;  %v2935_v23 = vsel %vm2934_vm13, %v6865_v58, %v2931_v44  ;;  %vm3432_vm0 = vweird.f32 %v6884_v59  ;;  %v3436_v10 = vand.u32 2147483647, %v6884_v59 }
 0xde9   :  { %v3111_v11 = vmul.f32 %v4964_v32, %v3110_v46  ;;  %v2940_v48 = vsel %vm2937_vm14, %v2939_v28, %v2935_v23  ;;  %vm3434_vm3 = vmor %vm3432_vm0, %vm3433_vm15  ;;  %v3439_v27 = vor.u32 1.1754944e-38, %v3438_v40 }
 0xdea   :  { %v3430_v14 = vmul.f32 %v6911_v38, %v3429_v43  ;;  %v2943_v42 = vmul.f32 %v2940_v48, %v2896_v29  ;;  %vm3437_vm4 = vcmp.eq.f32.partialorder %v3436_v10, 8.507059e+37  ;;  %v4574_v43 = vld [vmem:[%s7406_s7 + $0x28] sm:$0xff] }
 0xdeb   :  { %v3112_v36 = vadd.f32 %v4964_v32, %v3111_v11 }
 0xdec   :  { %v3431_v15 = vadd.f32 %v6911_v38, %v3430_v14 }
 0xded   :  { %v3116_v62 = vsel %vm3115_vm6, %v4964_v32, %v3112_v36 }
 0xdee   :  { %v3121_v4 = vsel %vm3118_vm8, %v3120_v56, %v3116_v62  ;;  %v6943_v9 = vpop.f32.mrf.mxu1  ;;  %v3435_v58 = vsel %vm3434_vm3, %v6911_v38, %v3431_v15  ;;  %v4573_v56 = vld [vmem:[%s7406_s7 + $0x20] sm:$0xff] }
 0xdef   :  { %v3124_v3 = vmul.f32 %v3121_v4, %v3077_v61  ;;  %v3440_v0 = vsel %vm3437_vm4, %v3439_v27, %v3435_v58 }
 0xdf0   :  { %3130 = vrot.lane.b32.xlu0 %v3123_v60, %s7490_s1  ;;  %v3469_v13 = vmul.f32 %v3440_v0, %v3418_v17 }
 0xdf1   :  { %3132 = vrot.lane.b32.xlu1 %v3124_v3, %s7490_s1  ;;  %v6950_v34 = vpop.f32.mrf.mxu0 }
 0xdf6   :  { %3672 = vrot.lane.b32.xlu2 %v6509_v37, %s7477_s29 }
 0xdf8   :  { %2951 = vrot.lane.b32.xlu0 %v2943_v42, %s7489_s27  ;;  %v3557_v39 = vpop.xlane.xlu2 %3556 }
 0xdf9   :  { %4967 = vrcp.f32 %v3557_v39  ;;  %v6947_v2 = vpop.f32.mrf.mxu1  ;;  %v3619_v22 = vand.u32 2147483648, %v3557_v39  ;;  %v3617_v41 = vand.u32 2147483647, %v3557_v39  ;;  %vm3613_vm8 = vweird.f32 %v3557_v39  ;;  %v6956_v52 = vpop.f32.mrf.mxu0 }
 0xdfb   :  { %v3620_v49 = vor.u32 1.1754944e-38, %v3619_v22  ;;  %vm3618_vm10 = vcmp.eq.f32.partialorder %v3617_v41, 8.507059e+37 }
 0xdff   :  { %v4968_v26 = vpop.eup %4967 }
 0xe00   :  { %v3609_v59 = vmul.f32 %v4968_v26, %v3557_v39  ;;  %3475 = vrot.lane.b32.xlu0 %v3469_v13, %s7482_s2  ;;  %v3738_v37 = vpop.xlane.xlu0 %3737  ;;  %vm3614_vm6 = vweird.f32 %v4968_v26 }
 0xe01   :  { %4969 = vrcp.f32 %v3738_v37  ;;  %vm3615_vm9 = vmor %vm3613_vm8, %vm3614_vm6  ;;  %v3599_v20 = vpop.f32.mrf.mxu1  ;;  %v3800_v21 = vand.u32 2147483648, %v3738_v37  ;;  %vm3794_vm14 = vweird.f32 %v3738_v37  ;;  %v3798_v57 = vand.u32 2147483647, %v3738_v37 }
 0xe02   :  { %v3610_v6 = vsub.f32 1.0, %v3609_v59 }
 0xe03   :  { %v3801_v7 = vor.u32 1.1754944e-38, %v3800_v21  ;;  %vm3799_vm0 = vcmp.eq.f32.partialorder %v3798_v57, 8.507059e+37 }
 0xe04   :  { %v3611_v50 = vmul.f32 %v4968_v26, %v3610_v6 }
 0xe06   :  { %v3612_v63 = vadd.f32 %v4968_v26, %v3611_v50  ;;  %v3531_v50 = vpop.f32.mrf.mxu3 }
 0xe07   :  { %v4970_v32 = vpop.eup %4969 }
 0xe08   :  { %v3616_v33 = vsel %vm3615_vm9, %v4968_v26, %v3612_v63  ;;  %v3790_v29 = vmul.f32 %v4970_v32, %v3738_v37  ;;  %vm3795_vm13 = vweird.f32 %v4970_v32  ;;  %v6993_v63 = vld [vmem:[%s7407_s8 + $0x1] ss:$0 sm:$0xff] }
 0xe09   :  { %v3621_v38 = vsel %vm3618_vm10, %v3620_v49, %v3616_v33  ;;  %vm3796_vm15 = vmor %vm3794_vm14, %vm3795_vm13  ;;  %v5029_v33 = vld [vmem:[#allocation2] sm:$0xff] }
 0xe0a   :  { %v3650_v5 = vmul.f32 %v3621_v38, %v3599_v20  ;;  %v3791_v45 = vsub.f32 1.0, %v3790_v29 }
 0xe0c   :  { %3656 = vrot.lane.b32.xlu1 %v3650_v5, %s7489_s27  ;;  %v3792_v19 = vmul.f32 %v4970_v32, %v3791_v45  ;;  %v5030_v45 = vld [vmem:[#allocation2 + $0x8] sm:$0xff] }
 0xe0e   :  { %v3793_v46 = vadd.f32 %v4970_v32, %v3792_v19  ;;  %v3534_v41 = vpop.f32.mrf.mxu3 }
 0xe0f   :  { %v2767_v1 = vpop.permute.xlu2 %2766 }
 0xe10   :  { %2775 = vst.msk [vmem:[#allocation3] sm:$0xff] %vm724_vm11, %v2767_v1  ;;  %v3797_v51 = vsel %vm3796_vm15, %v4970_v32, %v3793_v46  ;;  %v3532_v46 = vadd.f32 %v3531_v50, %v5400_v30 }
 0xe11   :  { %v3802_v54 = vsel %vm3799_vm0, %v3801_v7, %v3797_v51  ;;  %v5031_v51 = vld [vmem:[#allocation2 + $0x10] sm:$0xff] }
 0xe14   :  { %3670 = vrot.lane.b32.xlu1 %v6495_v8, %s7477_s29  ;;  %v4576_v8 = vld [vmem:[%s7406_s7 + $0x38] sm:$0xff] }
 0xe15   :  { %3895 = vmatpush.msrb.mxu3 %v4576_v8 }
 0xe17   :  { %3896 = vmatpush.msrb.mxu3 %v4575_v18 }
 0xe19   :  { %3897 = vmatpush.msrb.mxu3 %v4574_v43  ;;  %v5032_v43 = vld [vmem:[#allocation2 + $0x18] sm:$0xff] }
 0xe1b   :  { %3898 = vmatpush.msrb.mxu3 %v4573_v56 }
 0xe1d   :  { %v3780_v11 = vpop.f32.mrf.mxu0 }
 0xe1e   :  { %v3831_v55 = vmul.f32 %v3802_v54, %v3780_v11  ;;  %v3540_v11 = vsel %vm426_vm2, %v3532_v46, -inf }
 0xe20   :  { %3837 = vrot.lane.b32.xlu0 %v3831_v55, %s7490_s1  ;;  %v3535_v55 = vadd.f32 %v3534_v41, %v5400_v30  ;;  %v3380_v41 = vsel %vm426_vm2, %v6802_v12, 0.0 }
 0xe39   :  { %v2769_v36 = vpop.permute.xlu0 %2768 }
 0xe3a   :  { %2776 = vst.msk [vmem:[#allocation3 + $0x8] sm:$0xff] %vm724_vm11, %v2769_v36  ;;  %v3543_v36 = vsel %vm426_vm2, %v3535_v55, -inf }
 0xe41   :  { %v2771_v62 = vpop.permute.xlu1 %2770 }
 0xe42   :  { %2777 = vst.msk [vmem:[#allocation3 + $0x10] sm:$0xff] %vm724_vm11, %v2771_v62 }
 0xe4b   :  { %v2948_v44 = vpop.permute.xlu1 %2947 }
 0xe4c   :  { %2956 = vst.msk [vmem:[#allocation3] sm:$0xff] %vm906_vm5, %v2948_v44 }
 0xe51   :  { %v3207_v61 = vpop.xlane.xlu2 %3206 }
 0xe52   :  { %4971 = vrcp.f32 %v3207_v61  ;;  %v3269_v14 = vand.u32 2147483648, %v3207_v61  ;;  %v3267_v28 = vand.u32 2147483647, %v3207_v61  ;;  %vm3263_vm4 = vweird.f32 %v3207_v61 }
 0xe53   :  { %v2950_v60 = vpop.permute.xlu1 %2949 }
 0xe54   :  { %2957 = vst.msk [vmem:[#allocation3 + $0x8] sm:$0xff] %vm906_vm5, %v2950_v60  ;;  %v3270_v48 = vor.u32 1.1754944e-38, %v3269_v14  ;;  %vm3268_vm8 = vcmp.eq.f32.partialorder %v3267_v28, 8.507059e+37 }
 0xe58   :  { %v4972_v4 = vpop.eup %4971 }
 0xe59   :  { %v3259_v24 = vmul.f32 %v4972_v4, %v3207_v61  ;;  %vm3264_vm3 = vweird.f32 %v4972_v4  ;;  %v3673_v37 = vpop.permute.xlu2 %3672 }
 0xe5a   :  { %v3129_v3 = vpop.permute.xlu0 %3128  ;;  %vm3265_vm6 = vmor %vm3263_vm4, %vm3264_vm3 }
 0xe5b   :  { %v3260_v47 = vsub.f32 1.0, %v3259_v24  ;;  %3137 = vst.msk [vmem:[#allocation3] sm:$0xff] %vm1088_vm7, %v3129_v3 }
 0xe5d   :  { %v3261_v23 = vmul.f32 %v4972_v4, %v3260_v47 }
 0xe5f   :  { %v3262_v15 = vadd.f32 %v4972_v4, %v3261_v23 }
 0xe61   :  { %v3266_v40 = vsel %vm3265_vm6, %v4972_v4, %v3262_v15 }
 0xe62   :  { %v3271_v42 = vsel %vm3268_vm8, %v3270_v48, %v3266_v40  ;;  %v3131_v10 = vpop.permute.xlu0 %3130  ;;  %v3849_v58 = vld [vmem:[#allocation3] sm:$0xff] }
 0xe63   :  { %3138 = vst.msk [vmem:[#allocation3 + $0x8] sm:$0xff] %vm1088_vm7, %v3131_v10  ;;  %4578 = vmatmul.msk.f32.vlgmr.msrb.gmra.mxu3 %vm141_vm1, %v3849_v58  ;;  %v3300_v39 = vmul.f32 %v3271_v42, %v6925_v35  ;;  %v3133_v17 = vpop.permute.xlu1 %3132 }
 0xe65   :  { %3303 = vst.msk [vmem:[#allocation3 + $0x18] sm:$0xff] %vm387_vm12, %v3300_v39 }
 0xe6a   :  { %v2952_v27 = vpop.permute.xlu0 %2951  ;;  %v3850_v0 = vld [vmem:[#allocation3 + $0x8] sm:$0xff] }
 0xe6b   :  { %2958 = vst.msk [vmem:[#allocation3 + $0x10] sm:$0xff] %vm906_vm5, %v2952_v27  ;;  %4579 = vmatmul.msk.f32.gmra.mxu3 %vm141_vm1, %v3850_v0 }
 0xe6c   :  { %3139 = vst.msk [vmem:[#allocation3 + $0x10] sm:$0xff] %vm1088_vm7, %v3133_v17 }
 0xe72   :  { %v3476_v13 = vpop.permute.xlu0 %3475 }
 0xe73   :  { %3484 = vst.msk [vmem:[#allocation3 + $0x18] sm:$0xff] %vm724_vm11, %v3476_v13  ;;  %v3851_v26 = vld [vmem:[#allocation3 + $0x10] sm:$0xff] }
 0xe74   :  { %4580 = vmatmul.msk.f32.gmra.mxu3 %vm141_vm1, %v3851_v26 }
 0xe7e   :  { %v3657_v59 = vpop.permute.xlu1 %3656 }
 0xe7f   :  { %3665 = vst.msk [vmem:[#allocation3 + $0x18] sm:$0xff] %vm906_vm5, %v3657_v59  ;;  %v3377_v59 = vsel %vm426_vm2, %v6797_v53, 0.0  ;;  %v3208_v53 = vsel %vm426_vm2, %v6791_v16, 0.0 }
 0xe86   :  { %v3671_v35 = vpop.permute.xlu1 %3670 }
 0xe87   :  { %4568 = vmatmul.msk.f32.gmra.mxu2 %vm387_vm12, %v3671_v35 }
 0xe8f   :  { %4569 = vmatmul.msk.f32.gmra.mxu2 %vm387_vm12, %v3673_v37 }
 0xe92   :  { %v3838_v6 = vpop.permute.xlu0 %3837 }
 0xe93   :  { %3846 = vst.msk [vmem:[#allocation3 + $0x18] sm:$0xff] %vm1088_vm7, %v3838_v6 }
 0xe9a   :  { %v3852_v22 = vld [vmem:[#allocation3 + $0x18] sm:$0xff] }
 0xe9b   :  { %4581 = vmatmul.msk.f32.gmra.mxu3 %vm141_vm1, %v3852_v22 }
 0xee6   :  { %v3900_v32 = vpop.f32.mrf.mxu3 }
 0xee7   :  { %v3901_v49 = vadd.f32 %v6993_v63, %v3900_v32 }
 0xee9   :  { %v6996_v20 = vadd.f32 %v5029_v33, %v3901_v49 }
 0xeeb   :  { %v3928_v38 = vsel %vm141_vm1, %v6996_v20, 0.0 }
 0xeec   :  { %3929 = vadd.xlane.f32.xlu0 %v3928_v38  ;;  %v3211_v38 = vsel %vm426_vm2, %v6804_v25, 0.0 }
 0xeee   :  { %v3903_v29 = vpop.f32.mrf.mxu3 }
 0xeef   :  { %v3904_v5 = vadd.f32 %v6993_v63, %v3903_v29 }
 0xef1   :  { %v7001_v1 = vadd.f32 %v5030_v45, %v3904_v5 }
 0xef3   :  { %v3931_v19 = vsel %vm141_vm1, %v7001_v1, 0.0 }
 0xef4   :  { %3932 = vadd.xlane.f32.xlu1 %v3931_v19 }
 0xef7   :  { %v3906_v21 = vpop.f32.mrf.mxu3 }
 0xef8   :  { %v3907_v57 = vadd.f32 %v6993_v63, %v3906_v21 }
 0xefa   :  { %v7007_v7 = vadd.f32 %v5031_v51, %v3907_v57 }
 0xefc   :  { %3541 = vmax.xlane.f32.xlu1 %v3540_v11  ;;  %v3934_v54 = vsel %vm141_vm1, %v7007_v7, 0.0 }
 0xefd   :  { %3935 = vadd.xlane.f32.xlu2 %v3934_v54 }
 0xf04   :  { %3544 = vmax.xlane.f32.xlu1 %v3543_v36 }
 0xf0a   :  { %v3712_v62 = vpop.f32.mrf.mxu2 }
 0xf0b   :  { %v3713_v61 = vadd.f32 %v3712_v62, %v5400_v30 }
 0xf0d   :  { %v3721_v60 = vsel %vm426_vm2, %v3713_v61, -inf }
 0xf12   :  { %v3715_v4 = vpop.f32.mrf.mxu2 }
 0xf13   :  { %v3716_v24 = vadd.f32 %v3715_v4, %v5400_v30 }
 0xf15   :  { %v3724_v3 = vsel %vm426_vm2, %v3716_v24, -inf }
 0xf1e   :  { %v3909_v8 = vpop.f32.mrf.mxu3 }
 0xf1f   :  { %v3910_v18 = vadd.f32 %v6993_v63, %v3909_v8  ;;  %v4589_v8 = vld [vmem:[%s7410_s11 + $0x38] sm:$0xff] }
 0xf20   :  { %4118 = vmatpush.msrb.mxu1 %v4589_v8 }
 0xf21   :  { %v7015_v56 = vadd.f32 %v5032_v43, %v3910_v18  ;;  %v4588_v18 = vld [vmem:[%s7410_s11 + $0x30] sm:$0xff]  ;;  %v4587_v43 = vld [vmem:[%s7410_s11 + $0x28] sm:$0xff] }
 0xf22   :  { %4119 = vmatpush.msrb.mxu1 %v4588_v18 }
 0xf23   :  { %v3937_v44 = vsel %vm141_vm1, %v7015_v56, 0.0 }
 0xf24   :  { %3938 = vadd.xlane.f32.xlu0 %v3937_v44  ;;  %4120 = vmatpush.msrb.mxu1 %v4587_v43 }
 0xf2c   :  { %3722 = vmax.xlane.f32.xlu0 %v3721_v60 }
 0xf34   :  { %3725 = vmax.xlane.f32.xlu0 %v3724_v3 }
 0xf5f   :  { %v3930_v47 = vpop.xlane.xlu0 %3929 }
 0xf60   :  { %v3946_v14 = vmul.f32 %v3930_v47, %v5237_v31 }
 0xf62   :  { %v7025_v23 = vsub.f32 %v6996_v20, %v3946_v14 }
 0xf64   :  { %v3958_v28 = vmul.f32 %v7025_v23, %v7025_v23 }
 0xf66   :  { %v3964_v15 = vsel %vm141_vm1, %v3958_v28, 0.0 }
 0xf67   :  { %v3933_v48 = vpop.xlane.xlu1 %3932  ;;  %3965 = vadd.xlane.f32.xlu2 %v3964_v15 }
 0xf68   :  { %v3947_v40 = vmul.f32 %v3933_v48, %v5237_v31 }
 0xf6a   :  { %v7032_v30 = vsub.f32 %v7001_v1, %v3947_v40 }
 0xf6c   :  { %v3959_v42 = vmul.f32 %v7032_v30, %v7032_v30 }
 0xf6e   :  { %v3967_v10 = vsel %vm141_vm1, %v3959_v42, 0.0 }
 0xf6f   :  { %3968 = vadd.xlane.f32.xlu1 %v3967_v10  ;;  %v3542_v58 = vpop.xlane.xlu1 %3541 }
 0xf70   :  { %v3547_v39 = vsub.f32 %v3532_v46, %v3542_v58  ;;  %v3936_v27 = vpop.xlane.xlu2 %3935 }
 0xf71   :  { %v3948_v0 = vmul.f32 %v3936_v27, %v5237_v31 }
 0xf72   :  { %v3551_v17 = vmul.f32 1.442695, %v3547_v39 }
 0xf73   :  { %v7039_v13 = vsub.f32 %v7007_v7, %v3948_v0 }
 0xf74   :  { %4973 = vpow2.f32 %v3551_v17  ;;  %v7087_v17 = vld [vmem:[%s7408_s9 + $0x1] ss:$0 sm:$0xff] }
 0xf75   :  { %v3960_v26 = vmul.f32 %v7039_v13, %v7039_v13 }
 0xf77   :  { %3378 = vadd.xlane.f32.xlu1 %v3377_v59  ;;  %v3545_v35 = vpop.xlane.xlu1 %3544  ;;  %v3970_v37 = vsel %vm141_vm1, %v3960_v26, 0.0 }
 0xf78   :  { %v3548_v6 = vsub.f32 %v3535_v55, %v3545_v35  ;;  %3971 = vadd.xlane.f32.xlu0 %v3970_v37  ;;  %v7093_v37 = vld [vmem:[%s7409_s10 + $0x1] ss:$0 sm:$0xff] }
 0xf7a   :  { %v4974_v22 = vpop.eup %4973  ;;  %v3553_v50 = vmul.f32 1.442695, %v3548_v6 }
 0xf7b   :  { %4562 = vmatmul.msk.f32.gmra.mxu1 %vm426_vm2, %v4974_v22  ;;  %v3558_v32 = vsel %vm426_vm2, %v4974_v22, 0.0 }
 0xf7c   :  { %4975 = vpow2.f32 %v3553_v50 }
 0xf7f   :  { %3381 = vadd.xlane.f32.xlu1 %v3380_v41 }
 0xf80   :  { %3559 = vadd.xlane.f32.xlu0 %v3558_v32 }
 0xf82   :  { %v4976_v49 = vpop.eup %4975 }
 0xf83   :  { %4563 = vmatmul.msk.f32.gmra.mxu1 %vm426_vm2, %v4976_v49  ;;  %v3561_v33 = vsel %vm426_vm2, %v4976_v49, 0.0 }
 0xf87   :  { %3209 = vadd.xlane.f32.xlu1 %v3208_v53 }
 0xf88   :  { %3562 = vadd.xlane.f32.xlu0 %v3561_v33 }
 0xf90   :  { %3212 = vadd.xlane.f32.xlu0 %v3211_v38 }
 0xf97   :  { %v3939_v29 = vpop.xlane.xlu0 %3938 }
 0xf98   :  { %v3949_v12 = vmul.f32 %v3939_v29, %v5237_v31 }
 0xf9a   :  { %v7058_v5 = vsub.f32 %v7015_v56, %v3949_v12 }
 0xf9c   :  { %v3961_v45 = vmul.f32 %v7058_v5, %v7058_v5 }
 0xf9e   :  { %v3973_v19 = vsel %vm141_vm1, %v3961_v45, 0.0 }
 0xf9f   :  { %v3723_v16 = vpop.xlane.xlu0 %3722  ;;  %3974 = vadd.xlane.f32.xlu2 %v3973_v19 }
 0xfa0   :  { %v3728_v46 = vsub.f32 %v3713_v61, %v3723_v16  ;;  %v4586_v61 = vld [vmem:[%s7410_s11 + $0x20] sm:$0xff] }
 0xfa1   :  { %4121 = vmatpush.msrb.mxu1 %v4586_v61 }
 0xfa2   :  { %v3732_v21 = vmul.f32 1.442695, %v3728_v46 }
 0xfa4   :  { %4977 = vpow2.f32 %v3732_v21 }
 0xfa7   :  { %v3726_v57 = vpop.xlane.xlu0 %3725 }
 0xfa8   :  { %v3729_v51 = vsub.f32 %v3716_v24, %v3726_v57 }
 0xfaa   :  { %v4978_v25 = vpop.eup %4977  ;;  %v3734_v11 = vmul.f32 1.442695, %v3729_v51 }
 0xfab   :  { %4571 = vmatmul.msk.f32.gmra.mxu0 %vm426_vm2, %v4978_v25  ;;  %v3739_v54 = vsel %vm426_vm2, %v4978_v25, 0.0 }
 0xfac   :  { %4979 = vpow2.f32 %v3734_v11  ;;  %3740 = vadd.xlane.f32.xlu2 %v3739_v54 }
 0xfb2   :  { %v4980_v55 = vpop.eup %4979 }
 0xfb3   :  { %4572 = vmatmul.msk.f32.gmra.mxu0 %vm426_vm2, %v4980_v55  ;;  %v3742_v36 = vsel %vm426_vm2, %v4980_v55, 0.0 }
 0xfb4   :  { %3743 = vadd.xlane.f32.xlu2 %v3742_v36 }
 0xfda   :  { %v3966_v62 = vpop.xlane.xlu2 %3965 }
 0xfdb   :  { %v3982_v44 = vmul.f32 %v3966_v62, %v5237_v31 }
 0xfdd   :  { %v3988_v60 = vadd.f32 1e-06, %v3982_v44 }
 0xfdf   :  { %4981 = vrsqrt.f32 %v3988_v60  ;;  %vm4000_vm9 = vweird.f32 %v3988_v60 }
 0xfe2   :  { %v3969_v4 = vpop.xlane.xlu1 %3968 }
 0xfe3   :  { %v3983_v24 = vmul.f32 %v3969_v4, %v5237_v31 }
 0xfe5   :  { %v4982_v3 = vpop.eup %4981  ;;  %v3989_v47 = vadd.f32 1e-06, %v3983_v24 }
 0xfe6   :  { %v3995_v14 = vmul.f32 %v4982_v3, %v3988_v60  ;;  %vm4001_vm2 = vweird.f32 %v4982_v3 }
 0xfe7   :  { %4983 = vrsqrt.f32 %v3989_v47  ;;  %vm4002_vm10 = vmor %vm4000_vm9, %vm4001_vm2  ;;  %vm4010_vm14 = vweird.f32 %v3989_v47 }
 0xfe8   :  { %v3996_v28 = vmul.f32 %v4982_v3, %v3995_v14 }
 0xfea   :  { %v3997_v15 = vmul.f32 0.5, %v3996_v28  ;;  %v3379_v48 = vpop.xlane.xlu1 %3378 }
 0xfeb   :  { %4985 = vrcp.f32 %v3379_v48  ;;  %v3972_v40 = vpop.xlane.xlu0 %3971  ;;  %v3450_v29 = vand.u32 2147483647, %v3379_v48  ;;  %v3452_v19 = vand.u32 2147483648, %v3379_v48  ;;  %vm3446_vm3 = vweird.f32 %v3379_v48 }
 0xfec   :  { %v3998_v42 = vsub.f32 1.5, %v3997_v15  ;;  %v3984_v10 = vmul.f32 %v3972_v40, %v5237_v31 }
 0xfed   :  { %v4984_v58 = vpop.eup %4983  ;;  %vm7118_vm6 = vcmp.eq.f32.partialorder %v3450_v29, 8.507059e+37  ;;  %v3453_v36 = vor.u32 1.1754944e-38, %v3452_v19 }
 0xfee   :  { %v3999_v39 = vmul.f32 %v4982_v3, %v3998_v42  ;;  %v4005_v27 = vmul.f32 %v4984_v58, %v3989_v47  ;;  %v7082_v0 = vadd.f32 1e-06, %v3984_v10  ;;  %vm4011_vm13 = vweird.f32 %v4984_v58 }
 0xfef   :  { %vm7104_vm0 = vmor %vm4010_vm14, %vm4011_vm13 }
 0xff0   :  { %v4003_v26 = vsel %vm4002_vm10, %v4982_v3, %v3999_v39  ;;  %v4006_v59 = vmul.f32 %v4984_v58, %v4005_v27  ;;  %4987 = vrsqrt.f32 %v7082_v0  ;;  %vm4020_vm8 = vweird.f32 %v7082_v0 }
 0xff1   :  { %v4986_v35 = vpop.eup %4985  ;;  %v4054_v6 = vmul.f32 %v4003_v26, %v7025_v23 }
 0xff2   :  { %v4007_v22 = vmul.f32 0.5, %v4006_v59  ;;  %v3442_v50 = vmul.f32 %v4986_v35, %v3379_v48  ;;  %v7096_v41 = vpop.xlane.xlu1 %3381  ;;  %vm3447_vm15 = vweird.f32 %v4986_v35 }
 0xff3   :  { %v4063_v32 = vmul.f32 %v7087_v17, %v4054_v6  ;;  %4989 = vrcp.f32 %v7096_v41  ;;  %v7100_v49 = vpop.xlane.xlu0 %3559  ;;  %vm7114_vm4 = vmor %vm3446_vm3, %vm3447_vm15  ;;  %v3464_v24 = vand.u32 2147483647, %v7096_v41  ;;  %vm3460_vm14 = vweird.f32 %v7096_v41 }
 0xff4   :  { %v4008_v53 = vsub.f32 1.5, %v4007_v22  ;;  %v3443_v33 = vsub.f32 1.0, %v3442_v50  ;;  %4991 = vrcp.f32 %v7100_v49  ;;  %v3631_v3 = vand.u32 2147483647, %v7100_v49 }
 0xff5   :  { %v4072_v38 = vadd.f32 %v7093_v37, %v4063_v32  ;;  %v3633_v15 = vand.u32 2147483648, %v7100_v49  ;;  %v3466_v27 = vand.u32 2147483648, %v7096_v41  ;;  %vm7163_vm3 = vcmp.eq.f32.partialorder %v3464_v24, 8.507059e+37 }
 0xff6   :  { %v4988_v23 = vpop.eup %4987  ;;  %v4009_v12 = vmul.f32 %v4984_v58, %v4008_v53  ;;  %v3444_v45 = vmul.f32 %v4986_v35, %v3443_v33 }
 0xff7   :  { %v4015_v46 = vmul.f32 %v4988_v23, %v7082_v0  ;;  %4591 = vmatmul.msk.f32.vlgmr.msrb.gmra.mxu1 %vm141_vm1, %v4072_v38  ;;  %vm4021_vm2 = vweird.f32 %v4988_v23  ;;  %v3634_v22 = vor.u32 1.1754944e-38, %v3633_v15  ;;  %v3467_v29 = vor.u32 1.1754944e-38, %v3466_v27 }
 0xff8   :  { %v4013_v21 = vsel %vm7104_vm0, %v4984_v58, %v4009_v12  ;;  %v3445_v57 = vadd.f32 %v4986_v35, %v3444_v45  ;;  %vm7147_vm13 = vmor %vm4020_vm8, %vm4021_vm2  ;;  %vm3627_vm0 = vweird.f32 %v7100_v49  ;;  %v3602_v53 = vpop.f32.mrf.mxu1 }
 0xff9   :  { %v7112_v51 = vpop.eup %4989  ;;  %v4016_v54 = vmul.f32 %v4988_v23, %v4015_v46  ;;  %v4055_v62 = vmul.f32 %v4013_v21, %v7032_v30 }
 0xffa   :  { %v4992_v55 = vpop.eup %4991  ;;  %v3456_v8 = vmul.f32 %v7112_v51, %v7096_v41  ;;  %v7125_v18 = vpop.xlane.xlu1 %3209  ;;  %v3449_v43 = vsel %vm7114_vm4, %v4986_v35, %v3445_v57  ;;  %vm3461_vm9 = vweird.f32 %v7112_v51 }
 0xffb   :  { %v4017_v44 = vmul.f32 0.5, %v4016_v54  ;;  %v3623_v61 = vmul.f32 %v4992_v55, %v7100_v49  ;;  %4993 = vrcp.f32 %v7125_v18  ;;  %v7132_v60 = vpop.xlane.xlu0 %3562  ;;  %v3454_v30 = vsel %vm7118_vm6, %v3453_v36, %v3449_v43  ;;  %vm7157_vm15 = vmor %vm3460_vm14, %vm3461_vm9 }
 0xffc   :  { %v3457_v4 = vsub.f32 1.0, %v3456_v8  ;;  %4995 = vrcp.f32 %v7132_v60  ;;  %v3470_v48 = vmul.f32 %v3454_v30, %v6950_v34  ;;  %vm3628_vm10 = vweird.f32 %v4992_v55 }
 0xffd   :  { %v4018_v47 = vsub.f32 1.5, %v4017_v44  ;;  %v3624_v14 = vsub.f32 1.0, %v3623_v61  ;;  %v4064_v10 = vmul.f32 %v7087_v17, %v4055_v62  ;;  %vm3629_vm4 = vmor %vm3627_vm0, %vm3628_vm10  ;;  %vm3632_vm6 = vcmp.eq.f32.partialorder %v3631_v3, 8.507059e+37 }
 0xffe   :  { %v3458_v28 = vmul.f32 %v7112_v51, %v3457_v4  ;;  %3477 = vrot.lane.b32.xlu2 %v3470_v48, %s7482_s2  ;;  %v3281_v16 = vand.u32 2147483647, %v7125_v18  ;;  %vm3277_vm2 = vweird.f32 %v7125_v18  ;;  %v3645_v36 = vand.u32 2147483647, %v7132_v60 }
 0xfff   :  { %v4019_v40 = vmul.f32 %v4988_v23, %v4018_v47  ;;  %v3625_v42 = vmul.f32 %v4992_v55, %v3624_v14  ;;  %v4073_v35 = vadd.f32 %v7093_v37, %v4064_v10  ;;  %vm3641_vm14 = vweird.f32 %v7132_v60 }
0x1000   :  { %v3459_v39 = vadd.f32 %v7112_v51, %v3458_v28  ;;  %vm3646_vm0 = vcmp.eq.f32.partialorder %v3645_v36, 8.507059e+37  ;;  %v3605_v47 = vpop.f32.mrf.mxu1 }
0x1001   :  { %v4994_v34 = vpop.eup %4993  ;;  %v4023_v26 = vsel %vm7147_vm13, %v4988_v23, %v4019_v40  ;;  %v3626_v0 = vadd.f32 %v4992_v55, %v3625_v42  ;;  %4592 = vmatmul.msk.f32.gmra.mxu1 %vm141_vm1, %v4073_v35  ;;  %vm3282_vm13 = vcmp.eq.f32.partialorder %v3281_v16, 8.507059e+37 }
0x1002   :  { %v3273_v50 = vmul.f32 %v4994_v34, %v7125_v18  ;;  %v4996_v41 = vpop.eup %4995  ;;  %v4056_v32 = vmul.f32 %v4023_v26, %v7039_v13  ;;  %v3463_v49 = vsel %vm7157_vm15, %v7112_v51, %v3459_v39  ;;  %v3283_v13 = vand.u32 2147483648, %v7125_v18 }
0x1003   :  { %v3630_v33 = vsel %vm3629_vm4, %v4992_v55, %v3626_v0  ;;  %v3213_v38 = vpop.xlane.xlu0 %3212  ;;  %v3637_v45 = vmul.f32 %v4996_v41, %v7132_v60  ;;  %vm3278_vm8 = vweird.f32 %v4994_v34  ;;  %v3468_v57 = vsel %vm7163_vm3, %v3467_v29, %v3463_v49 }
0x1004   :  { %v3635_v23 = vsel %vm3632_vm6, %v3634_v22, %v3630_v33  ;;  %v3274_v12 = vsub.f32 1.0, %v3273_v50  ;;  %4997 = vrcp.f32 %v3213_v38  ;;  %v3647_v51 = vand.u32 2147483648, %v7132_v60  ;;  %vm3279_vm10 = vmor %vm3277_vm2, %vm3278_vm8 }
0x1005   :  { %v3651_v19 = vmul.f32 %v3635_v23, %v3602_v53  ;;  %v3638_v21 = vsub.f32 1.0, %v3637_v45  ;;  %v3471_v25 = vmul.f32 %v3468_v57, %v6956_v52  ;;  %v4065_v11 = vmul.f32 %v7087_v17, %v4056_v32 }
0x1006   :  { %v3275_v46 = vmul.f32 %v4994_v34, %v3274_v12  ;;  %vm3642_vm9 = vweird.f32 %v4996_v41  ;;  %v3284_v8 = vor.u32 1.1754944e-38, %v3283_v13  ;;  %v3648_v61 = vor.u32 1.1754944e-38, %v3647_v51 }
0x1007   :  { %3658 = vrot.lane.b32.xlu1 %v3651_v19, %s7489_s27  ;;  %v3639_v55 = vmul.f32 %v4996_v41, %v3638_v21  ;;  %3479 = vrot.lane.b32.xlu2 %v3471_v25, %s7482_s2  ;;  %v4074_v43 = vadd.f32 %v7093_v37, %v4065_v11  ;;  %vm3643_vm15 = vmor %vm3641_vm14, %vm3642_vm9  ;;  %v3297_v15 = vand.u32 2147483648, %v3213_v38  ;;  %v3295_v60 = vand.u32 2147483647, %v3213_v38 }
0x1008   :  { %v3276_v54 = vadd.f32 %v4994_v34, %v3275_v46  ;;  %vm3291_vm4 = vweird.f32 %v3213_v38 }
0x1009   :  { %v3640_v62 = vadd.f32 %v4996_v41, %v3639_v55  ;;  %4593 = vmatmul.msk.f32.gmra.mxu1 %vm141_vm1, %v4074_v43  ;;  %v3298_v10 = vor.u32 1.1754944e-38, %v3297_v15  ;;  %vm3296_vm8 = vcmp.eq.f32.partialorder %v3295_v60, 8.507059e+37  ;;  %v4604_v15 = vld [vmem:[%s7412_s13 + $0xb8] sm:$0xff]  ;;  %v4603_v60 = vld [vmem:[%s7412_s13 + $0xb0] sm:$0xff] }
0x100a   :  { %v3280_v18 = vsel %vm3279_vm10, %v4994_v34, %v3276_v54  ;;  %v4998_v52 = vpop.eup %4997 }
0x100b   :  { %v3285_v44 = vsel %vm3282_vm13, %v3284_v8, %v3280_v18  ;;  %v3644_v4 = vsel %vm3643_vm15, %v4996_v41, %v3640_v62  ;;  %v3287_v24 = vmul.f32 %v4998_v52, %v3213_v38  ;;  %vm3292_vm3 = vweird.f32 %v4998_v52 }
0x100c   :  { %v3301_v3 = vmul.f32 %v3285_v44, %v6943_v9  ;;  %v3649_v14 = vsel %vm3646_vm0, %v3648_v61, %v3644_v4  ;;  %vm3293_vm6 = vmor %vm3291_vm4, %vm3292_vm3  ;;  %v4612_v44 = vld [vmem:[%s7412_s13 + $0xf8] sm:$0xff]  ;;  %v4611_v61 = vld [vmem:[%s7412_s13 + $0xf0] sm:$0xff] }
0x100d   :  { %v3652_v30 = vmul.f32 %v3649_v14, %v3605_v47  ;;  %v3288_v28 = vsub.f32 1.0, %v3287_v24  ;;  %4217 = vmatpush.msra.mxu2 %v4612_v44  ;;  %v4610_v4 = vld [vmem:[%s7412_s13 + $0xe8] sm:$0xff]  ;;  %v4609_v24 = vld [vmem:[%s7412_s13 + $0xe0] sm:$0xff]  ;;  %v4608_v47 = vld [vmem:[%s7412_s13 + $0xd8] sm:$0xff] }
0x100e   :  { %3304 = vst.msk [vmem:[#allocation3 + $0x20] sm:$0xff] %vm387_vm12, %v3301_v3  ;;  %v4607_v14 = vld [vmem:[%s7412_s13 + $0xd0] sm:$0xff] }
0x100f   :  { %v3289_v48 = vmul.f32 %v4998_v52, %v3288_v28  ;;  %3660 = vrot.lane.b32.xlu1 %v3652_v30, %s7489_s27  ;;  %4218 = vmatpush.msra.mxu2 %v4611_v61  ;;  %v4606_v30 = vld [vmem:[%s7412_s13 + $0xc8] sm:$0xff]  ;;  %v4605_v28 = vld [vmem:[%s7412_s13 + $0xc0] sm:$0xff] }
0x1011   :  { %v3290_v40 = vadd.f32 %v4998_v52, %v3289_v48  ;;  %4219 = vmatpush.msra.mxu2 %v4610_v4 }
0x1012   :  { %v3975_v42 = vpop.xlane.xlu2 %3974 }
0x1013   :  { %v3985_v58 = vmul.f32 %v3975_v42, %v5237_v31  ;;  %v3294_v9 = vsel %vm3293_vm6, %v4998_v52, %v3290_v40  ;;  %4220 = vmatpush.msra.mxu2 %v4609_v24  ;;  %v4602_v40 = vld [vmem:[%s7412_s13 + $0xa8] sm:$0xff]  ;;  %v4601_v42 = vld [vmem:[%s7412_s13 + $0xa0] sm:$0xff] }
0x1014   :  { %v3299_v39 = vsel %vm3296_vm8, %v3298_v10, %v3294_v9  ;;  %v4600_v10 = vld [vmem:[%s7412_s13 + $0x98] sm:$0xff]  ;;  %v4598_v9 = vld [vmem:[%s7412_s13 + $0x88] sm:$0xff] }
0x1015   :  { %v3991_v27 = vadd.f32 1e-06, %v3985_v58  ;;  %v3302_v34 = vmul.f32 %v3299_v39, %v6947_v2  ;;  %4221 = vmatpush.msra.mxu2 %v4608_v47  ;;  %v4599_v58 = vld [vmem:[%s7412_s13 + $0x90] sm:$0xff]  ;;  %v4597_v39 = vld [vmem:[%s7412_s13 + $0x80] sm:$0xff] }
0x1017   :  { %4999 = vrsqrt.f32 %v3991_v27  ;;  %3305 = vst.msk [vmem:[#allocation3 + $0x28] sm:$0xff] %vm387_vm12, %v3302_v34  ;;  %vm4030_vm9 = vweird.f32 %v3991_v27  ;;  %4222 = vmatpush.msra.mxu2 %v4607_v14 }
0x1019   :  { %4223 = vmatpush.msra.mxu2 %v4606_v30 }
0x101b   :  { %4224 = vmatpush.msra.mxu2 %v4605_v28 }
0x101d   :  { %v5000_v26 = vpop.eup %4999  ;;  %4225 = vmatpush.msra.mxu2 %v4604_v15 }
0x101e   :  { %v4025_v59 = vmul.f32 %v5000_v26, %v3991_v27  ;;  %vm4031_vm2 = vweird.f32 %v5000_v26  ;;  %v7253_v27 = vld [vmem:[%s7411_s12 + $0x1] ss:$0 sm:$0xff] }
0x101f   :  { %v3741_v0 = vpop.xlane.xlu2 %3740  ;;  %vm4032_vm10 = vmor %vm4030_vm9, %vm4031_vm2  ;;  %4226 = vmatpush.msra.mxu2 %v4603_v60 }
0x1020   :  { %v4026_v35 = vmul.f32 %v5000_v26, %v4025_v59  ;;  %5001 = vrcp.f32 %v3741_v0  ;;  %v3814_v49 = vand.u32 2147483648, %v3741_v0  ;;  %v3812_v23 = vand.u32 2147483647, %v3741_v0 }
0x1021   :  { %vm3808_vm13 = vweird.f32 %v3741_v0  ;;  %4227 = vmatpush.msra.mxu2 %v4602_v40 }
0x1022   :  { %v4027_v6 = vmul.f32 0.5, %v4026_v35  ;;  %v3815_v46 = vor.u32 1.1754944e-38, %v3814_v49  ;;  %vm3813_vm15 = vcmp.eq.f32.partialorder %v3812_v23, 8.507059e+37 }
0x1023   :  { %4228 = vmatpush.msra.mxu2 %v4601_v42  ;;  %v7268_v42 = vld [vmem:[%s7413_s14 + $0x1] ss:$0 sm:$0xff] }
0x1024   :  { %v4028_v22 = vsub.f32 1.5, %v4027_v6 }
0x1025   :  { %4229 = vmatpush.msra.mxu2 %v4600_v10 }
0x1026   :  { %v5002_v50 = vpop.eup %5001  ;;  %v4029_v41 = vmul.f32 %v5000_v26, %v4028_v22 }
0x1027   :  { %v3804_v32 = vmul.f32 %v5002_v50, %v3741_v0  ;;  %v3744_v53 = vpop.xlane.xlu2 %3743  ;;  %vm3809_vm12 = vweird.f32 %v5002_v50  ;;  %4230 = vmatpush.msra.mxu2 %v4599_v58 }
0x1028   :  { %v4033_v33 = vsel %vm4032_vm10, %v5000_v26, %v4029_v41  ;;  %5003 = vrcp.f32 %v3744_v53  ;;  %v3783_v13 = vpop.f32.mrf.mxu0  ;;  %vm3810_vm14 = vmor %vm3808_vm13, %vm3809_vm12  ;;  %v3828_v11 = vand.u32 2147483648, %v3744_v53  ;;  %v3826_v55 = vand.u32 2147483647, %v3744_v53 }
0x1029   :  { %v4057_v2 = vmul.f32 %v4033_v33, %v7058_v5  ;;  %v3805_v38 = vsub.f32 1.0, %v3804_v32  ;;  %vm3822_vm3 = vweird.f32 %v3744_v53  ;;  %4231 = vmatpush.msra.mxu2 %v4598_v9 }
0x102a   :  { %v3829_v8 = vor.u32 1.1754944e-38, %v3828_v11  ;;  %vm3827_vm6 = vcmp.eq.f32.partialorder %v3826_v55, 8.507059e+37 }
0x102b   :  { %v3806_v29 = vmul.f32 %v5002_v50, %v3805_v38  ;;  %v4066_v12 = vmul.f32 %v7087_v17, %v4057_v2  ;;  %4232 = vmatpush.msra.mxu2 %v4597_v39 }
0x102d   :  { %v3807_v45 = vadd.f32 %v5002_v50, %v3806_v29  ;;  %v4075_v19 = vadd.f32 %v7093_v37, %v4066_v12 }
0x102e   :  { %v5004_v16 = vpop.eup %5003 }
0x102f   :  { %v3818_v21 = vmul.f32 %v5004_v16, %v3744_v53  ;;  %v3811_v57 = vsel %vm3810_vm14, %v5002_v50, %v3807_v45  ;;  %4594 = vmatmul.msk.f32.gmra.mxu1 %vm141_vm1, %v4075_v19  ;;  %vm3823_vm0 = vweird.f32 %v5004_v16 }
0x1030   :  { %v3816_v5 = vsel %vm3813_vm15, %v3815_v46, %v3811_v57  ;;  %vm3824_vm4 = vmor %vm3822_vm3, %vm3823_vm0  ;;  %v3786_v18 = vpop.f32.mrf.mxu0 }
0x1031   :  { %v3819_v51 = vsub.f32 1.0, %v3818_v21  ;;  %v3832_v25 = vmul.f32 %v3816_v5, %v3783_v13 }
0x1033   :  { %v3820_v54 = vmul.f32 %v5004_v16, %v3819_v51  ;;  %3839 = vrot.lane.b32.xlu0 %v3832_v25, %s7490_s1 }
0x1035   :  { %v3821_v36 = vadd.f32 %v5004_v16, %v3820_v54 }
0x1037   :  { %v3825_v43 = vsel %vm3824_vm4, %v5004_v16, %v3821_v36 }
0x1038   :  { %v3830_v62 = vsel %vm3827_vm6, %v3829_v8, %v3825_v43 }
0x1039   :  { %v3833_v52 = vmul.f32 %v3830_v62, %v3786_v18 }
0x103b   :  { %3841 = vrot.lane.b32.xlu0 %v3833_v52, %s7490_s1  ;;  %s5077_s1 = smov [#allocation4]  }
0x103c   :  { %s4381_s8 = sshll.u32 %s5077_s1, 4  ;;  %s4382_s8 = int_to_ptr.vmem [resolvable:$true] %s4381_s8 }
0x1058   :  { %v3478_v3 = vpop.permute.xlu2 %3477 }
0x1059   :  { %3485 = vst.msk [vmem:[#allocation3 + $0x20] sm:$0xff] %vm724_vm11, %v3478_v3 }
0x1061   :  { %v3480_v48 = vpop.permute.xlu2 %3479 }
0x1062   :  { %3486 = vst.msk [vmem:[#allocation3 + $0x28] sm:$0xff] %vm724_vm11, %v3480_v48  ;;  %vm4269_vm11 = vcmask 1040384  }
0x1074   :  { %v4123_v34 = vpop.f32.mrf.mxu1 }
0x1075   :  { %v4124_v26 = vadd.f32 %v7253_v27, %v4123_v34 }
0x1077   :  { %v4147_v59 = vmul.f32 0.044715, %v4124_v26  ;;  %v4141_v29 = vmul.f32 0.5, %v4124_v26 }
0x1079   :  { %v4153_v0 = vmul.f32 %v4147_v59, %v4124_v26  ;;  %v3659_v35 = vpop.permute.xlu1 %3658 }
0x107a   :  { %3666 = vst.msk [vmem:[#allocation3 + $0x20] sm:$0xff] %vm906_vm5, %v3659_v35 }
0x107b   :  { %v4159_v6 = vmul.f32 %v4153_v0, %v4124_v26 }
0x107d   :  { %v4165_v22 = vadd.f32 %v4159_v6, %v4124_v26 }
0x107e   :  { %v4126_v41 = vpop.f32.mrf.mxu1 }
0x107f   :  { %v4171_v50 = vmul.f32 0.7978846, %v4165_v22  ;;  %v4127_v32 = vadd.f32 %v7253_v27, %v4126_v41 }
0x1081   :  { %5005 = vtanh.f32 %v4171_v50  ;;  %v3661_v53 = vpop.permute.xlu1 %3660  ;;  %v4148_v33 = vmul.f32 0.044715, %v4127_v32  ;;  %v4142_v11 = vmul.f32 0.5, %v4127_v32 }
0x1082   :  { %3667 = vst.msk [vmem:[#allocation3 + $0x28] sm:$0xff] %vm906_vm5, %v3661_v53  ;;  %v5034_v53 = vld [vmem:[#allocation2 + $0x28] sm:$0xff]  ;;  %vm4273_vm5 = vcmask 254976  }
0x1083   :  { %v4154_v2 = vmul.f32 %v4148_v33, %v4127_v32 }
0x1085   :  { %v4160_v49 = vmul.f32 %v4154_v2, %v4127_v32 }
0x1086   :  { %v4129_v23 = vpop.f32.mrf.mxu1 }
0x1087   :  { %v5006_v38 = vpop.eup %5005  ;;  %v4130_v45 = vadd.f32 %v7253_v27, %v4129_v23  ;;  %v4166_v19 = vadd.f32 %v4160_v49, %v4127_v32 }
0x1088   :  { %v4183_v12 = vadd.f32 1.0, %v5006_v38 }
0x1089   :  { %v4149_v13 = vmul.f32 0.044715, %v4130_v45  ;;  %v4172_v46 = vmul.f32 0.7978846, %v4166_v19  ;;  %v4143_v8 = vmul.f32 0.5, %v4130_v45 }
0x108a   :  { %v4189_v16 = vmul.f32 %v4183_v12, %v4141_v29 }
0x108b   :  { %5007 = vtanh.f32 %v4172_v46  ;;  %v4155_v21 = vmul.f32 %v4149_v13, %v4130_v45 }
0x108c   :  { %4233 = vmatmul.f32.vlgmr.msra.gmra.mxu2 %v4189_v16 }
0x108d   :  { %v4161_v57 = vmul.f32 %v4155_v21, %v4130_v45 }
0x108f   :  { %v4167_v5 = vadd.f32 %v4161_v57, %v4130_v45 }
0x1091   :  { %v5008_v51 = vpop.eup %5007  ;;  %v4173_v25 = vmul.f32 0.7978846, %v4167_v5 }
0x1092   :  { %v4184_v54 = vadd.f32 1.0, %v5008_v51 }
0x1093   :  { %5009 = vtanh.f32 %v4173_v25 }
0x1094   :  { %v4190_v55 = vmul.f32 %v4184_v54, %v4142_v11 }
0x1096   :  { %4236 = vmatmul.f32.gmra.mxu2 %v4190_v55 }
0x1099   :  { %v5010_v36 = vpop.eup %5009 }
0x109a   :  { %v4185_v43 = vadd.f32 1.0, %v5010_v36 }
0x109c   :  { %v4191_v18 = vmul.f32 %v4185_v43, %v4143_v8 }
0x109e   :  { %4239 = vmatmul.f32.gmra.mxu2 %v4191_v18 }
0x10a5   :  { %v3840_v62 = vpop.permute.xlu0 %3839 }
0x10a6   :  { %3847 = vst.msk [vmem:[#allocation3 + $0x20] sm:$0xff] %vm1088_vm7, %v3840_v62 }
0x10ac   :  { %v4132_v52 = vpop.f32.mrf.mxu1 }
0x10ad   :  { %v4133_v44 = vadd.f32 %v7253_v27, %v4132_v52  ;;  %v3842_v61 = vpop.permute.xlu0 %3841  ;;  %v3853_v4 = vld [vmem:[#allocation3 + $0x20] sm:$0xff] }
0x10ae   :  { %3848 = vst.msk [vmem:[#allocation3 + $0x28] sm:$0xff] %vm1088_vm7, %v3842_v61  ;;  %4582 = vmatmul.msk.f32.gmra.mxu3 %vm141_vm1, %v3853_v4 }
0x10af   :  { %v4150_v24 = vmul.f32 0.044715, %v4133_v44  ;;  %v4144_v48 = vmul.f32 0.5, %v4133_v44 }
0x10b1   :  { %v4156_v3 = vmul.f32 %v4150_v24, %v4133_v44 }
0x10b3   :  { %v4162_v47 = vmul.f32 %v4156_v3, %v4133_v44 }
0x10b5   :  { %v3854_v14 = vld [vmem:[#allocation3 + $0x28] sm:$0xff]  ;;  %v4168_v30 = vadd.f32 %v4162_v47, %v4133_v44 }
0x10b6   :  { %4583 = vmatmul.msk.f32.gmra.mxu3 %vm141_vm1, %v3854_v14 }
0x10b7   :  { %v4174_v28 = vmul.f32 0.7978846, %v4168_v30 }
0x10b9   :  { %5011 = vtanh.f32 %v4174_v28 }
0x10bf   :  { %v5012_v15 = vpop.eup %5011 }
0x10c0   :  { %v4186_v60 = vadd.f32 1.0, %v5012_v15 }
0x10c2   :  { %v4192_v40 = vmul.f32 %v4186_v60, %v4144_v48 }
0x10c4   :  { %4242 = vmatmul.f32.gmra.mxu2 %v4192_v40 }
0x110f   :  { %v4234_v10 = vpop.f32.mrf.mxu2 }
0x1110   :  { %v4235_v58 = vadd.f32 %v7268_v42, %v4234_v10 }
0x1112   :  { %v4252_v9 = vadd.f32 %v4235_v58, %v6996_v20  ;;  %v5033_v20 = vld [vmem:[#allocation2 + $0x20] sm:$0xff] }
0x1114   :  { %4258 = vst.msk [vmem:[#allocation2] sm:$0xff] %vm141_vm1, %v4252_v9 }
0x1119   :  { %v4237_v39 = vpop.f32.mrf.mxu2 }
0x111a   :  { %v4238_v34 = vadd.f32 %v7268_v42, %v4237_v39 }
0x111b   :  { %v4264_v12 = vld [vmem:[#allocation2] sm:$0x1] }
0x111c   :  { %v4253_v26 = vadd.f32 %v4238_v34, %v7001_v1 }
0x111e   :  { %4259 = vst.msk [vmem:[#allocation2 + $0x8] sm:$0xff] %vm141_vm1, %v4253_v26  ;;  %v4307_v26 = vld [vmem:[%s7416_s17 + $0x18] sm:$0xff] }
0x111f   :  { %4327 = vmatpush.msrb.mxu0 %v4307_v26 }
0x1121   :  { %v4240_v59 = vpop.f32.mrf.mxu2 }
0x1122   :  { %v4241_v0 = vadd.f32 %v7268_v42, %v4240_v59  ;;  %v4306_v59 = vld [vmem:[%s7416_s17 + $0x10] sm:$0xff] }
0x1123   :  { %4328 = vmatpush.msrb.mxu0 %v4306_v59 }
0x1124   :  { %v4254_v35 = vadd.f32 %v4241_v0, %v7007_v7 }
0x1126   :  { %4260 = vst.msk [vmem:[#allocation2 + $0x10] sm:$0xff] %vm141_vm1, %v4254_v35  ;;  %v4305_v35 = vld [vmem:[%s7416_s17 + $0x8] sm:$0xff] }
0x1127   :  { %4329 = vmatpush.msrb.mxu0 %v4305_v35 }
0x1131   :  { %v3912_v6 = vpop.f32.mrf.mxu3 }
0x1132   :  { %v3913_v22 = vadd.f32 %v6993_v63, %v3912_v6 }
0x1134   :  { %v7280_v50 = vadd.f32 %v5033_v20, %v3913_v22  ;;  %v4304_v22 = vld [vmem:[%s7416_s17] sm:$0xff] }
0x1135   :  { %4330 = vmatpush.msrb.mxu0 %v4304_v22 }
0x1136   :  { %v3940_v41 = vsel %vm141_vm1, %v7280_v50, 0.0 }
0x1137   :  { %3941 = vadd.xlane.f32.xlu2 %v3940_v41 }
0x1139   :  { %v3915_v1 = vpop.f32.mrf.mxu3 }
0x113a   :  { %v3916_v32 = vadd.f32 %v6993_v63, %v3915_v1 }
0x113c   :  { %v7285_v33 = vadd.f32 %v5034_v53, %v3916_v32 }
0x113e   :  { %v3943_v7 = vsel %vm141_vm1, %v7285_v33, 0.0 }
0x113f   :  { %3944 = vadd.xlane.f32.xlu1 %v3943_v7 }
0x1147   :  { %v4243_v2 = vpop.f32.mrf.mxu2 }
0x1148   :  { %v4244_v38 = vadd.f32 %v7268_v42, %v4243_v2 }
0x114a   :  { %v4255_v49 = vadd.f32 %v4244_v38, %v7015_v56 }
0x114c   :  { %4261 = vst.msk [vmem:[#allocation2 + $0x18] sm:$0xff] %vm141_vm1, %v4255_v49 }
0x1153   :  { %v4265_v29 = vld [vmem:[#allocation2 + $0x18] sm:$0x1] }
0x1154   :  { %v4267_v23 = vrot.slane %v4265_v29, 7 }
0x1156   :  { %v4270_v63 = vsel %vm4269_vm11, %v4264_v12, %v4267_v23 }
0x1157   :  { %v4274_v45 = vsel %vm4273_vm5, %v4270_v63, 0.0 }
0x1158   :  { %4275 = vadd.xlane.f32.xlu0 %v4274_v45 }
0x11aa   :  { %v3942_v19 = vpop.xlane.xlu2 %3941 }
0x11ab   :  { %v3950_v16 = vmul.f32 %v3942_v19, %v5237_v31  ;;  %v4350_v19 = vld [vmem:[%s7418_s19 + $0x78] sm:$0xff] }
0x11ac   :  { %4355 = vmatpush.msra.mxu0 %v4350_v19 }
0x11ad   :  { %v3956_v13 = vsub.f32 %v7280_v50, %v3950_v16  ;;  %v4349_v16 = vld [vmem:[%s7418_s19 + $0x70] sm:$0xff] }
0x11ae   :  { %4356 = vmatpush.msra.mxu0 %v4349_v16 }
0x11af   :  { %v3962_v46 = vmul.f32 %v3956_v13, %v3956_v13 }
0x11b1   :  { %v3976_v21 = vsel %vm141_vm1, %v3962_v46, 0.0  ;;  %v4347_v46 = vld [vmem:[%s7418_s19 + $0x60] sm:$0xff] }
0x11b2   :  { %v3945_v56 = vpop.xlane.xlu1 %3944  ;;  %3977 = vadd.xlane.f32.xlu2 %v3976_v21  ;;  %v4346_v21 = vld [vmem:[%s7418_s19 + $0x58] sm:$0xff] }
0x11b3   :  { %v3951_v57 = vmul.f32 %v3945_v56, %v5237_v31  ;;  %v4345_v56 = vld [vmem:[%s7418_s19 + $0x50] sm:$0xff] }
0x11b5   :  { %v3957_v5 = vsub.f32 %v7285_v33, %v3951_v57  ;;  %v4344_v57 = vld [vmem:[%s7418_s19 + $0x48] sm:$0xff] }
0x11b7   :  { %v3963_v51 = vmul.f32 %v3957_v5, %v3957_v5 }
0x11b9   :  { %v3979_v25 = vsel %vm141_vm1, %v3963_v51, 0.0  ;;  %v4342_v51 = vld [vmem:[%s7418_s19 + $0x38] sm:$0xff] }
0x11ba   :  { %3980 = vadd.xlane.f32.xlu1 %v3979_v25  ;;  %v4341_v25 = vld [vmem:[%s7418_s19 + $0x30] sm:$0xff] }
0x11cb   :  { %v4276_v11 = vpop.xlane.xlu0 %4275 }
0x11cc   :  { %v4277_v54 = vmul.f32 %v4276_v11, %v5237_v31  ;;  %v4340_v11 = vld [vmem:[%s7418_s19 + $0x28] sm:$0xff] }
0x11ce   :  { %v7300_v55 = vsub.f32 %v4270_v63, %v4277_v54  ;;  %v4339_v54 = vld [vmem:[%s7418_s19 + $0x20] sm:$0xff] }
0x11d0   :  { %v4279_v36 = vmul.f32 %v7300_v55, %v7300_v55 }
0x11d2   :  { %v4280_v8 = vsel %vm4273_vm5, %v4279_v36, 0.0  ;;  %v4337_v36 = vld [vmem:[%s7418_s19 + $0x10] sm:$0xff] }
0x11d3   :  { %4281 = vadd.xlane.f32.xlu0 %v4280_v8 }
0x1225   :  { %v3978_v43 = vpop.xlane.xlu2 %3977 }
0x1226   :  { %v3986_v18 = vmul.f32 %v3978_v43, %v5237_v31 }
0x1228   :  { %v3992_v62 = vadd.f32 1e-06, %v3986_v18  ;;  %v4336_v18 = vld [vmem:[%s7418_s19 + $0x8] sm:$0xff] }
0x122a   :  { %5013 = vrsqrt.f32 %v3992_v62  ;;  %vm4040_vm8 = vweird.f32 %v3992_v62 }
0x122d   :  { %v3981_v52 = vpop.xlane.xlu1 %3980 }
0x122e   :  { %v3987_v44 = vmul.f32 %v3981_v52, %v5237_v31  ;;  %v4335_v52 = vld [vmem:[%s7418_s19] sm:$0xff] }
0x1230   :  { %v5014_v61 = vpop.eup %5013  ;;  %v3993_v4 = vadd.f32 1e-06, %v3987_v44 }
0x1231   :  { %v4035_v24 = vmul.f32 %v5014_v61, %v3992_v62  ;;  %vm4041_vm7 = vweird.f32 %v5014_v61 }
0x1232   :  { %5015 = vrsqrt.f32 %v3993_v4  ;;  %vm4042_vm2 = vmor %vm4040_vm8, %vm4041_vm7  ;;  %vm4050_vm10 = vweird.f32 %v3993_v4 }
0x1233   :  { %v4036_v3 = vmul.f32 %v5014_v61, %v4035_v24 }
0x1235   :  { %v4037_v47 = vmul.f32 0.5, %v4036_v3 }
0x1237   :  { %v4038_v14 = vsub.f32 1.5, %v4037_v47 }
0x1238   :  { %v5016_v30 = vpop.eup %5015 }
0x1239   :  { %v4039_v28 = vmul.f32 %v5014_v61, %v4038_v14  ;;  %v4045_v15 = vmul.f32 %v5016_v30, %v3993_v4  ;;  %vm4051_vm9 = vweird.f32 %v5016_v30 }
0x123a   :  { %vm4052_vm12 = vmor %vm4050_vm10, %vm4051_vm9 }
0x123b   :  { %v4043_v48 = vsel %vm4042_vm2, %v5014_v61, %v4039_v28  ;;  %v4046_v60 = vmul.f32 %v5016_v30, %v4045_v15 }
0x123c   :  { %v4058_v40 = vmul.f32 %v4043_v48, %v3956_v13  ;;  %v4348_v13 = vld [vmem:[%s7418_s19 + $0x68] sm:$0xff] }
0x123d   :  { %v4047_v10 = vmul.f32 0.5, %v4046_v60  ;;  %4357 = vmatpush.msra.mxu0 %v4348_v13 }
0x123e   :  { %v4067_v58 = vmul.f32 %v7087_v17, %v4058_v40 }
0x123f   :  { %v4048_v9 = vsub.f32 1.5, %v4047_v10  ;;  %4358 = vmatpush.msra.mxu0 %v4347_v46 }
0x1240   :  { %v4076_v39 = vadd.f32 %v7093_v37, %v4067_v58 }
0x1241   :  { %v4049_v34 = vmul.f32 %v5016_v30, %v4048_v9  ;;  %4359 = vmatpush.msra.mxu0 %v4346_v21 }
0x1242   :  { %4595 = vmatmul.msk.f32.gmra.mxu1 %vm141_vm1, %v4076_v39 }
0x1243   :  { %v4053_v0 = vsel %vm4052_vm12, %v5016_v30, %v4049_v34  ;;  %4360 = vmatpush.msra.mxu0 %v4345_v56 }
0x1244   :  { %v4059_v6 = vmul.f32 %v4053_v0, %v3957_v5  ;;  %v4343_v5 = vld [vmem:[%s7418_s19 + $0x40] sm:$0xff] }
0x1245   :  { %4361 = vmatpush.msra.mxu0 %v4344_v57 }
0x1246   :  { %v4282_v20 = vpop.xlane.xlu0 %4281  ;;  %v4068_v41 = vmul.f32 %v7087_v17, %v4059_v6  ;;  %v4751_v17 = vld [vmem:[%s7414_s15] ss:$0 sm:$0xff] }
0x1247   :  { %v4283_v1 = vmul.f32 %v4282_v20, %v5237_v31  ;;  %4362 = vmatpush.msra.mxu0 %v4343_v5  ;;  %v4754_v20 = vld [vmem:[%s7419_s20] ss:$0 sm:$0xff] }
0x1248   :  { %v4077_v32 = vadd.f32 %v7093_v37, %v4068_v41  ;;  %v4752_v37 = vld [vmem:[%s7415_s16] ss:$0 sm:$0xff] }
0x1249   :  { %v4284_v53 = vadd.f32 1e-06, %v4283_v1  ;;  %4363 = vmatpush.msra.mxu0 %v4342_v51 }
0x124a   :  { %4596 = vmatmul.msk.f32.gmra.mxu1 %vm141_vm1, %v4077_v32 }
0x124b   :  { %5017 = vrsqrt.f32 %v4284_v53  ;;  %vm4291_vm14 = vweird.f32 %v4284_v53  ;;  %4364 = vmatpush.msra.mxu0 %v4341_v25 }
0x124d   :  { %4365 = vmatpush.msra.mxu0 %v4340_v11 }
0x124f   :  { %4366 = vmatpush.msra.mxu0 %v4339_v54 }
0x1251   :  { %v5018_v7 = vpop.eup %5017 }
0x1252   :  { %v4286_v2 = vmul.f32 %v5018_v7, %v4284_v53  ;;  %vm4292_vm13 = vweird.f32 %v5018_v7 }
0x1253   :  { %vm4293_vm15 = vmor %vm4291_vm14, %vm4292_vm13 }
0x1254   :  { %v4287_v38 = vmul.f32 %v5018_v7, %v4286_v2 }
0x1256   :  { %v4288_v49 = vmul.f32 0.5, %v4287_v38 }
0x1258   :  { %v4289_v29 = vsub.f32 1.5, %v4288_v49 }
0x125a   :  { %v4290_v23 = vmul.f32 %v5018_v7, %v4289_v29 }
0x125c   :  { %v4294_v31 = vsel %vm4293_vm15, %v5018_v7, %v4290_v23 }
0x125d   :  { %v4295_v12 = vmul.f32 %v4294_v31, %v7300_v55  ;;  %v4338_v55 = vld [vmem:[%s7418_s19 + $0x18] sm:$0xff] }
0x125e   :  { %4367 = vmatpush.msra.mxu0 %v4338_v55 }
0x125f   :  { %v4299_v63 = vmul.f32 %v4751_v17, %v4295_v12 }
0x1260   :  { %4368 = vmatpush.msra.mxu0 %v4337_v36 }
0x1261   :  { %v4303_v45 = vadd.f32 %v4752_v37, %v4299_v63 }
0x1262   :  { %4369 = vmatpush.msra.mxu0 %v4336_v18 }
0x1263   :  { %4614 = vmatmul.msk.f32.vlgmr.msrb.gmra.mxu0 %vm141_vm1, %v4303_v45 }
0x1264   :  { %4370 = vmatpush.msra.mxu0 %v4335_v52 }
0x12bf   :  { %v4135_v8 = vpop.f32.mrf.mxu1 }
0x12c0   :  { %v4136_v43 = vadd.f32 %v7253_v27, %v4135_v8 }
0x12c2   :  { %v4151_v62 = vmul.f32 0.044715, %v4136_v43  ;;  %v4145_v40 = vmul.f32 0.5, %v4136_v43 }
0x12c4   :  { %v4157_v44 = vmul.f32 %v4151_v62, %v4136_v43 }
0x12c6   :  { %v4163_v61 = vmul.f32 %v4157_v44, %v4136_v43 }
0x12c7   :  { %v4138_v4 = vpop.f32.mrf.mxu1 }
0x12c8   :  { %v4139_v24 = vadd.f32 %v7253_v27, %v4138_v4  ;;  %v4169_v3 = vadd.f32 %v4163_v61, %v4136_v43  ;;  %v4753_v27 = vld [vmem:[%s7417_s18] ss:$0 sm:$0xff] }
0x12ca   :  { %v4152_v47 = vmul.f32 0.044715, %v4139_v24  ;;  %v4175_v14 = vmul.f32 0.7978846, %v4169_v3  ;;  %v4146_v39 = vmul.f32 0.5, %v4139_v24 }
0x12cc   :  { %5019 = vtanh.f32 %v4175_v14  ;;  %v4158_v30 = vmul.f32 %v4152_v47, %v4139_v24 }
0x12ce   :  { %v4164_v28 = vmul.f32 %v4158_v30, %v4139_v24 }
0x12d0   :  { %v4170_v15 = vadd.f32 %v4164_v28, %v4139_v24 }
0x12d2   :  { %v5020_v48 = vpop.eup %5019  ;;  %v4176_v60 = vmul.f32 0.7978846, %v4170_v15 }
0x12d3   :  { %v4187_v10 = vadd.f32 1.0, %v5020_v48 }
0x12d4   :  { %5021 = vtanh.f32 %v4176_v60 }
0x12d5   :  { %v4193_v58 = vmul.f32 %v4187_v10, %v4145_v40 }
0x12d7   :  { %4245 = vmatmul.f32.gmra.mxu2 %v4193_v58 }
0x12da   :  { %v5022_v9 = vpop.eup %5021 }
0x12db   :  { %v4188_v34 = vadd.f32 1.0, %v5022_v9 }
0x12dd   :  { %v4194_v26 = vmul.f32 %v4188_v34, %v4146_v39 }
0x12df   :  { %4248 = vmatmul.f32.gmra.mxu2 %v4194_v26 }
0x12e0   :  { %v4332_v59 = vpop.f32.mrf.mxu0 }
0x12e1   :  { %v4333_v0 = vadd.f32 %v4753_v27, %v4332_v59 }
0x12e3   :  { %4371 = vmatmul.f32.vlgmr.msra.gmra.mxu0 %v4333_v0 }
0x135a   :  { %v4246_v35 = vpop.f32.mrf.mxu2 }
0x135b   :  { %v4247_v6 = vadd.f32 %v7268_v42, %v4246_v35 }
0x135d   :  { %v4256_v22 = vadd.f32 %v4247_v6, %v7280_v50 }
0x135f   :  { %4262 = vst.msk [vmem:[#allocation2 + $0x20] sm:$0xff] %vm141_vm1, %v4256_v22 }
0x1360   :  { %v4372_v41 = vpop.f32.mrf.mxu0 }
0x1361   :  { %v4373_v1 = vadd.f32 %v4754_v20, %v4372_v41 }
0x1362   :  { %v4249_v32 = vpop.f32.mrf.mxu2 }
0x1363   :  { %4375 = vst [vmem:[#allocation4] sm:$0x3] %v4373_v1  ;;  %v4250_v50 = vadd.f32 %v7268_v42, %v4249_v32 }
0x1364   :  { %4386 = dma.vmem_to_hbm [thread:$0]  %s4382_s8, 32, %s4384_s22, [#allocation5]  }
0x1365   :  { %v4257_v53 = vadd.f32 %v4250_v50, %v7285_v33 }
0x1367   :  { %4263 = vst.msk [vmem:[#allocation2 + $0x28] sm:$0xff] %vm141_vm1, %v4257_v53 }
0x1368   :  { %5059 = dma.done.wait [#allocation5], 32  }
0x1369   :  { %5060 = vsyncadd [#allocation5], 4294967264 }
0x136a   :  { %4391 = vsyncpa [#allocation5], 1 }

</bundles_post_ra>
